<compile_context>
chip_gen: v5e
topology: v5e:2x2
jax: 0.10.0
libtpu: 0.0.40
codegen_flags: <defaults>
</compile_context>

<pallas_src>
import functools

import numpy as np
import jax
import jax.numpy as jnp
from jax import lax
from jax.experimental import pallas as pl
from jax.experimental.pallas import tpu as pltpu


TB_MAX = 128                       # batch tile; sweep 128-256 per generation
VMEM_LIMIT = 48 * 1024 * 1024      # raised scoped VMEM limit (fits v7x's 64 MiB)


def _round_up(n, m):
    return ((n + m - 1) // m) * m


# ----------------------------------------------------------------------------
# Fused Pallas kernel: conv1+relu+pool -> conv2+relu+pool -> fc1 -> fc2 -> out
# ----------------------------------------------------------------------------
def _lenet_kernel(xh_ref, w1_ref, b1_ref, w2_ref, b2_ref,
                  fc1w_ref, fc1b_ref, fc2w_ref, fc2b_ref,
                  outw_ref, outb_ref, o_ref, c2lhs_ref, *, TB):
    f32 = jnp.float32

    # ---- stage 1: conv1 (1->6, 5x5) + ReLU + 2x2 max-pool -------------------
    # xh_ref[a] : (TB*6, 140) H-im2col rows for conv output rows oh = 4*t + a
    #             (row = b*6 + t, lane = i*28 + w  <->  input pixel [oh+i, w]).
    # w1_ref    : (140, 256) banded weights; output col = lo*128 + hi*6 + oc
    #             with ow = 2*hi + lo, so the W-pool is a full-vreg lane max.
    def conv1_chain(a):
        r = jnp.dot(xh_ref[a], w1_ref[...], preferred_element_type=f32)
        r = jnp.maximum(r + b1_ref[...], 0.0)            # (TB*6, 256)
        return jnp.maximum(r[:, :128], r[:, 128:])       # W-pool -> (TB*6, 128)

    # H-pool: chains 0/1 -> even pooled rows (y = 2t), chains 2/3 -> odd rows.
    fe = jnp.maximum(conv1_chain(0), conv1_chain(1)).reshape(TB, 6, 128)
    fo = jnp.maximum(conv1_chain(2), conv1_chain(3)).reshape(TB, 6, 128)
    # lanes: x*6 + c for x < 12, c < 6; lanes 72..127 are exactly zero.

    # ---- stage 2: conv2 (6->12, 5x5) + ReLU + 2x2 max-pool ------------------
    # For chain a (oy = 2*t + a) the 5 band slabs are written into a VMEM
    # scratch at 128-aligned lane offsets, then ONE (TB*4,640)x(640,256) dot.
    # w2_ref col = lo*128 + hi*12 + oc with ox = 2*hi + lo.
    def conv2_chain(a):
        for i in range(5):
            src = fe if (a + i) % 2 == 0 else fo
            m = (a + i) // 2
            c2lhs_ref[:, 128 * i:128 * (i + 1)] = (
                src[:, m:m + 4, :].reshape(TB * 4, 128))
        r = jnp.dot(c2lhs_ref[...], w2_ref[...], preferred_element_type=f32)
        r = jnp.maximum(r + b2_ref[...], 0.0)            # (TB*4, 256)
        return jnp.maximum(r[:, :128], r[:, 128:])       # W-pool -> (TB*4, 128)

    g = jnp.maximum(conv2_chain(0), conv2_chain(1)).reshape(TB, 4, 128)
    # g[b, z, x*12 + c] for z < 4, x < 4, c < 12; lanes 48..127 are zero.

    # ---- FC head (all widths padded to 128 lanes) ---------------------------
    a1 = jnp.dot(g[:, 0, :], fc1w_ref[0], preferred_element_type=f32)
    for y in range(1, 4):
        a1 = a1 + jnp.dot(g[:, y, :], fc1w_ref[y], preferred_element_type=f32)
    a1 = jnp.maximum(a1 + fc1b_ref[...], 0.0)            # (TB, 128), 120 used
    a2 = jnp.maximum(
        jnp.dot(a1, fc2w_ref[...], preferred_element_type=f32) + fc2b_ref[...],
        0.0)                                             # (TB, 128), 60 used
    o_ref[...] = (jnp.dot(a2, outw_ref[...], preferred_element_type=f32)
                  + outb_ref[...])                       # (TB, 128), cols >= 10 are 0


# ----------------------------------------------------------------------------
# One-time weight preparation (band-fused conv matrices, padded / permuted FCs)
# ----------------------------------------------------------------------------
def prepare_params(params):
    w1 = np.asarray(params["conv1_w"], np.float32)   # (6,1,5,5)
    b1 = np.asarray(params["conv1_b"], np.float32)   # (6,)
    w2 = np.asarray(params["conv2_w"], np.float32)   # (12,6,5,5)
    b2 = np.asarray(params["conv2_b"], np.float32)   # (12,)

    # conv1 band-fused: W1[i*28 + ow + j, lo*128 + hi*6 + oc] = w1[oc,0,i,j],
    # where ow = 2*hi + lo (W-pool parity aligned to the 128-lane boundary).
    W1 = np.zeros((140, 256), np.float32)
    b1f = np.zeros((1, 256), np.float32)
    for ow in range(24):
        hi, lo = ow // 2, ow % 2
        col = lo * 128 + hi * 6
        b1f[0, col:col + 6] = b1
        for i in range(5):
            for j in range(5):
                W1[i * 28 + ow + j, col:col + 6] = w1[:, 0, i, j]

    # conv2 band-fused: rows i*128 + x*6 + c (x = pooled conv1 column),
    # cols lo*128 + hi*12 + oc with ox = 2*hi + lo:
    #   W2[i*128 + (ox+j)*6 + c, col] = w2[oc, c, i, j].
    W2 = np.zeros((640, 256), np.float32)
    b2f = np.zeros((1, 256), np.float32)
    for ox in range(8):
        hi, lo = ox // 2, ox % 2
        col = lo * 128 + hi * 12
        b2f[0, col:col + 12] = b2
        for i in range(5):
            for j in range(5):
                for c in range(6):
                    W2[i * 128 + (ox + j) * 6 + c, col:col + 12] = w2[:, c, i, j]

    # fc1 in per-pooled-row chunks; row lane = x*12 + c, col = output unit n.
    # PyTorch flatten feature index is c*16 + y*4 + x.  Padded to 128/128.
    fw1 = np.asarray(params["fc1_w"], np.float32)    # (120, 192)
    fc1 = np.zeros((4, 128, 128), np.float32)
    for y in range(4):
        for x in range(4):
            for c in range(12):
                fc1[y, x * 12 + c, :120] = fw1[:, c * 16 + y * 4 + x]
    fc1b = np.zeros((1, 128), np.float32)
    fc1b[0, :120] = np.asarray(params["fc1_b"], np.float32)

    fc2 = np.zeros((128, 128), np.float32)
    fc2[:120, :60] = np.asarray(params["fc2_w"], np.float32).T
    fc2b = np.zeros((1, 128), np.float32)
    fc2b[0, :60] = np.asarray(params["fc2_b"], np.float32)

    outw = np.zeros((128, 128), np.float32)
    outw[:60, :10] = np.asarray(params["out_w"], np.float32).T
    outb = np.zeros((1, 128), np.float32)
    outb[0, :10] = np.asarray(params["out_b"], np.float32)

    prep = {"w1": W1, "b1": b1f, "w2": W2, "b2": b2f,
            "fc1w": fc1, "fc1b": fc1b, "fc2w": fc2, "fc2b": fc2b,
            "outw": outw, "outb": outb}
    return {k: jnp.asarray(v) for k, v in prep.items()}


# ----------------------------------------------------------------------------
# Forward wrapper (single pallas_call over batch tiles)
# ----------------------------------------------------------------------------
def network_forward(prep, x, tb=TB_MAX):
    """x: (B, 1, 28, 28) NCHW float32 -> logits (B, 10)."""
    B = x.shape[0]
    TB = min(tb, _round_up(B, 8))
    Bp = _round_up(B, TB)
    xs = x.reshape(B, 28, 28).astype(jnp.float32)
    if Bp != B:
        xs = jnp.pad(xs, ((0, Bp - B), (0, 0), (0, 0)))
    # H-only im2col (W handled by the banded weights): output row oh gets input
    # rows oh..oh+4 concatenated along lanes; reorder to chain-major layout
    # xh[a, b*6 + t, :] = row for conv output row oh = 4*t + a.
    xh = jnp.concatenate([xs[:, i:i + 24, :] for i in range(5)], axis=-1)
    xh = xh.reshape(Bp, 6, 4, 140).transpose(2, 0, 1, 3).reshape(4, Bp * 6, 140)

    out = pl.pallas_call(
        functools.partial(_lenet_kernel, TB=TB),
        out_shape=jax.ShapeDtypeStruct((Bp, 128), jnp.float32),
        grid_spec=pltpu.PrefetchScalarGridSpec(
            num_scalar_prefetch=0,
            grid=(Bp // TB,),
            in_specs=[
                pl.BlockSpec((4, TB * 6, 140), lambda b: (0, b, 0)),
                pl.BlockSpec((140, 256), lambda b: (0, 0)),
                pl.BlockSpec((1, 256), lambda b: (0, 0)),
                pl.BlockSpec((640, 256), lambda b: (0, 0)),
                pl.BlockSpec((1, 256), lambda b: (0, 0)),
                pl.BlockSpec((4, 128, 128), lambda b: (0, 0, 0)),
                pl.BlockSpec((1, 128), lambda b: (0, 0)),
                pl.BlockSpec((128, 128), lambda b: (0, 0)),
                pl.BlockSpec((1, 128), lambda b: (0, 0)),
                pl.BlockSpec((128, 128), lambda b: (0, 0)),
                pl.BlockSpec((1, 128), lambda b: (0, 0)),
            ],
            out_specs=pl.BlockSpec((TB, 128), lambda b: (b, 0)),
            scratch_shapes=[pltpu.VMEM((TB * 4, 640), jnp.float32)],
        ),
        compiler_params=pltpu.CompilerParams(
            dimension_semantics=("parallel",),
            vmem_limit_bytes=VMEM_LIMIT),
    )(xh, prep["w1"], prep["b1"], prep["w2"], prep["b2"],
      prep["fc1w"], prep["fc1b"], prep["fc2w"], prep["fc2b"],
      prep["outw"], prep["outb"])
    return out[:B, :10]


# ----------------------------------------------------------------------------
# Parameter init (PyTorch layout) and pure-JAX reference
# ----------------------------------------------------------------------------
def init_params(key):
    ks = jax.random.split(key, 10)

    def u(k, shape, fan_in):
        bound = 1.0 / jnp.sqrt(fan_in)
        return jax.random.uniform(k, shape, jnp.float32, -bound, bound)

    return {
        "conv1_w": u(ks[0], (6, 1, 5, 5), 1 * 5 * 5),
        "conv1_b": u(ks[1], (6,), 1 * 5 * 5),
        "conv2_w": u(ks[2], (12, 6, 5, 5), 6 * 5 * 5),
        "conv2_b": u(ks[3], (12,), 6 * 5 * 5),
        "fc1_w": u(ks[4], (120, 192), 192),
        "fc1_b": u(ks[5], (120,), 192),
        "fc2_w": u(ks[6], (60, 120), 120),
        "fc2_b": u(ks[7], (60,), 120),
        "out_w": u(ks[8], (10, 60), 60),
        "out_b": u(ks[9], (10,), 60),
    }


def reference_forward(params, t):
    dn = lax.conv_dimension_numbers(t.shape, params["conv1_w"].shape,
                                    ("NCHW", "OIHW", "NCHW"))

    def pool(x):
        B, C, H, W = x.shape
        return x.reshape(B, C, H // 2, 2, W // 2, 2).max(axis=(3, 5))

    x = lax.conv_general_dilated(t, params["conv1_w"], (1, 1), "VALID",
                                 dimension_numbers=dn)
    x = jax.nn.relu(x + params["conv1_b"][None, :, None, None])
    x = pool(x)
    dn2 = lax.conv_dimension_numbers(x.shape, params["conv2_w"].shape,
                                     ("NCHW", "OIHW", "NCHW"))
    x = lax.conv_general_dilated(x, params["conv2_w"], (1, 1), "VALID",
                                 dimension_numbers=dn2)
    x = jax.nn.relu(x + params["conv2_b"][None, :, None, None])
    x = pool(x)
    x = x.reshape(-1, 12 * 4 * 4)
    x = jax.nn.relu(x @ params["fc1_w"].T + params["fc1_b"])
    x = jax.nn.relu(x @ params["fc2_w"].T + params["fc2_b"])
    return x @ params["out_w"].T + params["out_b"]


if __name__ == "__main__":
    key = jax.random.PRNGKey(0)
    pkey, xkey, xkey2 = jax.random.split(key, 3)
    params = init_params(pkey)
    prep = prepare_params(params)          # one-time weight preparation

    fwd = jax.jit(network_forward)

    # Small demo batch (28x28 input implied by the 12*4*4 flatten).
    x = jax.random.normal(xkey, (2, 1, 28, 28), dtype=jnp.float32)
    out = jax.block_until_ready(fwd(prep, x))
    ref = jax.block_until_ready(reference_forward(params, x))
    assert out.shape == (2, 10), out.shape
    assert jnp.allclose(out, ref, atol=1e-4, rtol=1e-4), \
        f"max abs err = {jnp.max(jnp.abs(out - ref))}"

    # Larger batch exercising the full 128-image tile and a 2-step grid.
    xb = jax.random.normal(xkey2, (144, 1, 28, 28), dtype=jnp.float32)
    outb = jax.block_until_ready(fwd(prep, xb))
    refb = jax.block_until_ready(reference_forward(params, xb))
    assert outb.shape == (144, 10), outb.shape
    assert jnp.allclose(outb, refb, atol=1e-4, rtol=1e-4), \
        f"max abs err = {jnp.max(jnp.abs(outb - refb))}"

    print("KERNEL_OK")
</pallas_src>

<mosaic_0001>
module attributes {stable_mosaic.version = 11 : i64} {
  func.func @_lenet_kernel(%arg0: i32, %arg1: memref<4x48x140xf32, #tpu.memory_space<vmem>>, %arg2: memref<140x256xf32, #tpu.memory_space<vmem>>, %arg3: memref<1x256xf32, #tpu.memory_space<vmem>>, %arg4: memref<640x256xf32, #tpu.memory_space<vmem>>, %arg5: memref<1x256xf32, #tpu.memory_space<vmem>>, %arg6: memref<4x128x128xf32, #tpu.memory_space<vmem>>, %arg7: memref<1x128xf32, #tpu.memory_space<vmem>>, %arg8: memref<128x128xf32, #tpu.memory_space<vmem>>, %arg9: memref<1x128xf32, #tpu.memory_space<vmem>>, %arg10: memref<128x128xf32, #tpu.memory_space<vmem>>, %arg11: memref<1x128xf32, #tpu.memory_space<vmem>>, %arg12: memref<8x128xf32, #tpu.memory_space<vmem>>, %arg13: memref<32x640xf32, #tpu.memory_space<vmem>>) attributes {dimension_semantics = [#tpu.dimension_semantics<parallel>], iteration_bounds = array<i64: 1>, scalar_prefetch = 0 : i64, scratch_operands = 1 : i64, tpu.core_type = #tpu.core_type<tc>, window_params = [{transform_indices = @transform_0, window_bounds = array<i64: 4, 48, 140>}, {pipeline_mode = #tpu.pipeline_mode<synchronous>, transform_indices = @transform_1, window_bounds = array<i64: 140, 256>}, {pipeline_mode = #tpu.pipeline_mode<synchronous>, transform_indices = @transform_2, window_bounds = array<i64: 1, 256>}, {pipeline_mode = #tpu.pipeline_mode<synchronous>, transform_indices = @transform_3, window_bounds = array<i64: 640, 256>}, {pipeline_mode = #tpu.pipeline_mode<synchronous>, transform_indices = @transform_4, window_bounds = array<i64: 1, 256>}, {pipeline_mode = #tpu.pipeline_mode<synchronous>, transform_indices = @transform_5, window_bounds = array<i64: 4, 128, 128>}, {pipeline_mode = #tpu.pipeline_mode<synchronous>, transform_indices = @transform_6, window_bounds = array<i64: 1, 128>}, {pipeline_mode = #tpu.pipeline_mode<synchronous>, transform_indices = @transform_7, window_bounds = array<i64: 128, 128>}, {pipeline_mode = #tpu.pipeline_mode<synchronous>, transform_indices = @transform_8, window_bounds = array<i64: 1, 128>}, {pipeline_mode = #tpu.pipeline_mode<synchronous>, transform_indices = @transform_9, window_bounds = array<i64: 128, 128>}, {pipeline_mode = #tpu.pipeline_mode<synchronous>, transform_indices = @transform_10, window_bounds = array<i64: 1, 128>}, {transform_indices = @transform_11, window_bounds = array<i64: 8, 128>}]} {
    %c0 = arith.constant 0 : index
    %c0_0 = arith.constant 0 : index
    %c0_1 = arith.constant 0 : index
    %0 = vector.load %arg1[%c0, %c0_0, %c0_1] : memref<4x48x140xf32, #tpu.memory_space<vmem>>, vector<1x48x140xf32>
    %1 = vector.shape_cast %0 : vector<1x48x140xf32> to vector<48x140xf32>
    %c0_2 = arith.constant 0 : index
    %c0_3 = arith.constant 0 : index
    %2 = vector.load %arg2[%c0_2, %c0_3] : memref<140x256xf32, #tpu.memory_space<vmem>>, vector<140x256xf32>
    %cst = arith.constant dense<0.000000e+00> : vector<48x256xf32>
    %3 = tpu.matmul %1, %2, %cst {dimension_numbers = #tpu.dot_dimension_numbers<[1], [0], [0], [1], [0, 0, 1, 1], [], []>} : vector<48x140xf32>, vector<140x256xf32>, vector<48x256xf32> -> vector<48x256xf32>
    %c0_4 = arith.constant 0 : index
    %c0_5 = arith.constant 0 : index
    %4 = vector.load %arg3[%c0_4, %c0_5] : memref<1x256xf32, #tpu.memory_space<vmem>>, vector<1x256xf32>
    %5 = vector.broadcast %4 : vector<1x256xf32> to vector<48x256xf32>
    %6 = arith.addf %3, %5 : vector<48x256xf32>
    %cst_6 = arith.constant 0.000000e+00 : f32
    %7 = vector.broadcast %cst_6 : f32 to vector<48x256xf32>
    %8 = arith.maximumf %6, %7 : vector<48x256xf32>
    %9 = vector.extract_strided_slice %8 {offsets = [0, 0], sizes = [48, 128], strides = [1, 1]} : vector<48x256xf32> to vector<48x128xf32>
    %10 = vector.extract_strided_slice %8 {offsets = [0, 128], sizes = [48, 128], strides = [1, 1]} : vector<48x256xf32> to vector<48x128xf32>
    %11 = arith.maximumf %9, %10 : vector<48x128xf32>
    %c1 = arith.constant 1 : index
    %c0_7 = arith.constant 0 : index
    %c0_8 = arith.constant 0 : index
    %12 = vector.load %arg1[%c1, %c0_7, %c0_8] : memref<4x48x140xf32, #tpu.memory_space<vmem>>, vector<1x48x140xf32>
    %13 = vector.shape_cast %12 : vector<1x48x140xf32> to vector<48x140xf32>
    %c0_9 = arith.constant 0 : index
    %c0_10 = arith.constant 0 : index
    %14 = vector.load %arg2[%c0_9, %c0_10] : memref<140x256xf32, #tpu.memory_space<vmem>>, vector<140x256xf32>
    %cst_11 = arith.constant dense<0.000000e+00> : vector<48x256xf32>
    %15 = tpu.matmul %13, %14, %cst_11 {dimension_numbers = #tpu.dot_dimension_numbers<[1], [0], [0], [1], [0, 0, 1, 1], [], []>} : vector<48x140xf32>, vector<140x256xf32>, vector<48x256xf32> -> vector<48x256xf32>
    %c0_12 = arith.constant 0 : index
    %c0_13 = arith.constant 0 : index
    %16 = vector.load %arg3[%c0_12, %c0_13] : memref<1x256xf32, #tpu.memory_space<vmem>>, vector<1x256xf32>
    %17 = vector.broadcast %16 : vector<1x256xf32> to vector<48x256xf32>
    %18 = arith.addf %15, %17 : vector<48x256xf32>
    %cst_14 = arith.constant 0.000000e+00 : f32
    %19 = vector.broadcast %cst_14 : f32 to vector<48x256xf32>
    %20 = arith.maximumf %18, %19 : vector<48x256xf32>
    %21 = vector.extract_strided_slice %20 {offsets = [0, 0], sizes = [48, 128], strides = [1, 1]} : vector<48x256xf32> to vector<48x128xf32>
    %22 = vector.extract_strided_slice %20 {offsets = [0, 128], sizes = [48, 128], strides = [1, 1]} : vector<48x256xf32> to vector<48x128xf32>
    %23 = arith.maximumf %21, %22 : vector<48x128xf32>
    %24 = arith.maximumf %11, %23 : vector<48x128xf32>
    %25 = vector.shape_cast %24 : vector<48x128xf32> to vector<8x6x128xf32>
    %c2 = arith.constant 2 : index
    %c0_15 = arith.constant 0 : index
    %c0_16 = arith.constant 0 : index
    %26 = vector.load %arg1[%c2, %c0_15, %c0_16] : memref<4x48x140xf32, #tpu.memory_space<vmem>>, vector<1x48x140xf32>
    %27 = vector.shape_cast %26 : vector<1x48x140xf32> to vector<48x140xf32>
    %c0_17 = arith.constant 0 : index
    %c0_18 = arith.constant 0 : index
    %28 = vector.load %arg2[%c0_17, %c0_18] : memref<140x256xf32, #tpu.memory_space<vmem>>, vector<140x256xf32>
    %cst_19 = arith.constant dense<0.000000e+00> : vector<48x256xf32>
    %29 = tpu.matmul %27, %28, %cst_19 {dimension_numbers = #tpu.dot_dimension_numbers<[1], [0], [0], [1], [0, 0, 1, 1], [], []>} : vector<48x140xf32>, vector<140x256xf32>, vector<48x256xf32> -> vector<48x256xf32>
    %c0_20 = arith.constant 0 : index
    %c0_21 = arith.constant 0 : index
    %30 = vector.load %arg3[%c0_20, %c0_21] : memref<1x256xf32, #tpu.memory_space<vmem>>, vector<1x256xf32>
    %31 = vector.broadcast %30 : vector<1x256xf32> to vector<48x256xf32>
    %32 = arith.addf %29, %31 : vector<48x256xf32>
    %cst_22 = arith.constant 0.000000e+00 : f32
    %33 = vector.broadcast %cst_22 : f32 to vector<48x256xf32>
    %34 = arith.maximumf %32, %33 : vector<48x256xf32>
    %35 = vector.extract_strided_slice %34 {offsets = [0, 0], sizes = [48, 128], strides = [1, 1]} : vector<48x256xf32> to vector<48x128xf32>
    %36 = vector.extract_strided_slice %34 {offsets = [0, 128], sizes = [48, 128], strides = [1, 1]} : vector<48x256xf32> to vector<48x128xf32>
    %37 = arith.maximumf %35, %36 : vector<48x128xf32>
    %c3 = arith.constant 3 : index
    %c0_23 = arith.constant 0 : index
    %c0_24 = arith.constant 0 : index
    %38 = vector.load %arg1[%c3, %c0_23, %c0_24] : memref<4x48x140xf32, #tpu.memory_space<vmem>>, vector<1x48x140xf32>
    %39 = vector.shape_cast %38 : vector<1x48x140xf32> to vector<48x140xf32>
    %c0_25 = arith.constant 0 : index
    %c0_26 = arith.constant 0 : index
    %40 = vector.load %arg2[%c0_25, %c0_26] : memref<140x256xf32, #tpu.memory_space<vmem>>, vector<140x256xf32>
    %cst_27 = arith.constant dense<0.000000e+00> : vector<48x256xf32>
    %41 = tpu.matmul %39, %40, %cst_27 {dimension_numbers = #tpu.dot_dimension_numbers<[1], [0], [0], [1], [0, 0, 1, 1], [], []>} : vector<48x140xf32>, vector<140x256xf32>, vector<48x256xf32> -> vector<48x256xf32>
    %c0_28 = arith.constant 0 : index
    %c0_29 = arith.constant 0 : index
    %42 = vector.load %arg3[%c0_28, %c0_29] : memref<1x256xf32, #tpu.memory_space<vmem>>, vector<1x256xf32>
    %43 = vector.broadcast %42 : vector<1x256xf32> to vector<48x256xf32>
    %44 = arith.addf %41, %43 : vector<48x256xf32>
    %cst_30 = arith.constant 0.000000e+00 : f32
    %45 = vector.broadcast %cst_30 : f32 to vector<48x256xf32>
    %46 = arith.maximumf %44, %45 : vector<48x256xf32>
    %47 = vector.extract_strided_slice %46 {offsets = [0, 0], sizes = [48, 128], strides = [1, 1]} : vector<48x256xf32> to vector<48x128xf32>
    %48 = vector.extract_strided_slice %46 {offsets = [0, 128], sizes = [48, 128], strides = [1, 1]} : vector<48x256xf32> to vector<48x128xf32>
    %49 = arith.maximumf %47, %48 : vector<48x128xf32>
    %50 = arith.maximumf %37, %49 : vector<48x128xf32>
    %51 = vector.shape_cast %50 : vector<48x128xf32> to vector<8x6x128xf32>
    %52 = vector.extract_strided_slice %25 {offsets = [0, 0, 0], sizes = [8, 4, 128], strides = [1, 1, 1]} : vector<8x6x128xf32> to vector<8x4x128xf32>
    %53 = vector.shape_cast %52 : vector<8x4x128xf32> to vector<32x128xf32>
    %c0_31 = arith.constant 0 : index
    %c0_32 = arith.constant 0 : index
    %54 = vector.load %arg13[%c0_31, %c0_32] : memref<32x640xf32, #tpu.memory_space<vmem>>, vector<32x128xf32>
    tpu.vector_store %arg13[%c0_31, %c0_32], %53 {strides = array<i32>} : memref<32x640xf32, #tpu.memory_space<vmem>>, vector<32x128xf32>,
    %55 = vector.extract_strided_slice %51 {offsets = [0, 0, 0], sizes = [8, 4, 128], strides = [1, 1, 1]} : vector<8x6x128xf32> to vector<8x4x128xf32>
    %56 = vector.shape_cast %55 : vector<8x4x128xf32> to vector<32x128xf32>
    %c0_33 = arith.constant 0 : index
    %c128 = arith.constant 128 : index
    %57 = vector.load %arg13[%c0_33, %c128] : memref<32x640xf32, #tpu.memory_space<vmem>>, vector<32x128xf32>
    tpu.vector_store %arg13[%c0_33, %c128], %56 {strides = array<i32>} : memref<32x640xf32, #tpu.memory_space<vmem>>, vector<32x128xf32>,
    %58 = vector.extract_strided_slice %25 {offsets = [0, 1, 0], sizes = [8, 4, 128], strides = [1, 1, 1]} : vector<8x6x128xf32> to vector<8x4x128xf32>
    %59 = vector.shape_cast %58 : vector<8x4x128xf32> to vector<32x128xf32>
    %c0_34 = arith.constant 0 : index
    %c256 = arith.constant 256 : index
    %60 = vector.load %arg13[%c0_34, %c256] : memref<32x640xf32, #tpu.memory_space<vmem>>, vector<32x128xf32>
    tpu.vector_store %arg13[%c0_34, %c256], %59 {strides = array<i32>} : memref<32x640xf32, #tpu.memory_space<vmem>>, vector<32x128xf32>,
    %61 = vector.extract_strided_slice %51 {offsets = [0, 1, 0], sizes = [8, 4, 128], strides = [1, 1, 1]} : vector<8x6x128xf32> to vector<8x4x128xf32>
    %62 = vector.shape_cast %61 : vector<8x4x128xf32> to vector<32x128xf32>
    %c0_35 = arith.constant 0 : index
    %c384 = arith.constant 384 : index
    %63 = vector.load %arg13[%c0_35, %c384] : memref<32x640xf32, #tpu.memory_space<vmem>>, vector<32x128xf32>
    tpu.vector_store %arg13[%c0_35, %c384], %62 {strides = array<i32>} : memref<32x640xf32, #tpu.memory_space<vmem>>, vector<32x128xf32>,
    %64 = vector.extract_strided_slice %25 {offsets = [0, 2, 0], sizes = [8, 4, 128], strides = [1, 1, 1]} : vector<8x6x128xf32> to vector<8x4x128xf32>
    %65 = vector.shape_cast %64 : vector<8x4x128xf32> to vector<32x128xf32>
    %c0_36 = arith.constant 0 : index
    %c512 = arith.constant 512 : index
    %66 = vector.load %arg13[%c0_36, %c512] : memref<32x640xf32, #tpu.memory_space<vmem>>, vector<32x128xf32>
    tpu.vector_store %arg13[%c0_36, %c512], %65 {strides = array<i32>} : memref<32x640xf32, #tpu.memory_space<vmem>>, vector<32x128xf32>,
    %c0_37 = arith.constant 0 : index
    %c0_38 = arith.constant 0 : index
    %67 = vector.load %arg13[%c0_37, %c0_38] : memref<32x640xf32, #tpu.memory_space<vmem>>, vector<32x640xf32>
    %c0_39 = arith.constant 0 : index
    %c0_40 = arith.constant 0 : index
    %68 = vector.load %arg4[%c0_39, %c0_40] : memref<640x256xf32, #tpu.memory_space<vmem>>, vector<640x256xf32>
    %cst_41 = arith.constant dense<0.000000e+00> : vector<32x256xf32>
    %69 = tpu.matmul %67, %68, %cst_41 {dimension_numbers = #tpu.dot_dimension_numbers<[1], [0], [0], [1], [0, 0, 1, 1], [], []>} : vector<32x640xf32>, vector<640x256xf32>, vector<32x256xf32> -> vector<32x256xf32>
    %c0_42 = arith.constant 0 : index
    %c0_43 = arith.constant 0 : index
    %70 = vector.load %arg5[%c0_42, %c0_43] : memref<1x256xf32, #tpu.memory_space<vmem>>, vector<1x256xf32>
    %71 = vector.broadcast %70 : vector<1x256xf32> to vector<32x256xf32>
    %72 = arith.addf %69, %71 : vector<32x256xf32>
    %cst_44 = arith.constant 0.000000e+00 : f32
    %73 = vector.broadcast %cst_44 : f32 to vector<32x256xf32>
    %74 = arith.maximumf %72, %73 : vector<32x256xf32>
    %75 = vector.extract_strided_slice %74 {offsets = [0, 0], sizes = [32, 128], strides = [1, 1]} : vector<32x256xf32> to vector<32x128xf32>
    %76 = vector.extract_strided_slice %74 {offsets = [0, 128], sizes = [32, 128], strides = [1, 1]} : vector<32x256xf32> to vector<32x128xf32>
    %77 = arith.maximumf %75, %76 : vector<32x128xf32>
    %78 = vector.extract_strided_slice %51 {offsets = [0, 0, 0], sizes = [8, 4, 128], strides = [1, 1, 1]} : vector<8x6x128xf32> to vector<8x4x128xf32>
    %79 = vector.shape_cast %78 : vector<8x4x128xf32> to vector<32x128xf32>
    %c0_45 = arith.constant 0 : index
    %c0_46 = arith.constant 0 : index
    %80 = vector.load %arg13[%c0_45, %c0_46] : memref<32x640xf32, #tpu.memory_space<vmem>>, vector<32x128xf32>
    tpu.vector_store %arg13[%c0_45, %c0_46], %79 {strides = array<i32>} : memref<32x640xf32, #tpu.memory_space<vmem>>, vector<32x128xf32>,
    %81 = vector.extract_strided_slice %25 {offsets = [0, 1, 0], sizes = [8, 4, 128], strides = [1, 1, 1]} : vector<8x6x128xf32> to vector<8x4x128xf32>
    %82 = vector.shape_cast %81 : vector<8x4x128xf32> to vector<32x128xf32>
    %c0_47 = arith.constant 0 : index
    %c128_48 = arith.constant 128 : index
    %83 = vector.load %arg13[%c0_47, %c128_48] : memref<32x640xf32, #tpu.memory_space<vmem>>, vector<32x128xf32>
    tpu.vector_store %arg13[%c0_47, %c128_48], %82 {strides = array<i32>} : memref<32x640xf32, #tpu.memory_space<vmem>>, vector<32x128xf32>,
    %84 = vector.extract_strided_slice %51 {offsets = [0, 1, 0], sizes = [8, 4, 128], strides = [1, 1, 1]} : vector<8x6x128xf32> to vector<8x4x128xf32>
    %85 = vector.shape_cast %84 : vector<8x4x128xf32> to vector<32x128xf32>
    %c0_49 = arith.constant 0 : index
    %c256_50 = arith.constant 256 : index
    %86 = vector.load %arg13[%c0_49, %c256_50] : memref<32x640xf32, #tpu.memory_space<vmem>>, vector<32x128xf32>
    tpu.vector_store %arg13[%c0_49, %c256_50], %85 {strides = array<i32>} : memref<32x640xf32, #tpu.memory_space<vmem>>, vector<32x128xf32>,
    %87 = vector.extract_strided_slice %25 {offsets = [0, 2, 0], sizes = [8, 4, 128], strides = [1, 1, 1]} : vector<8x6x128xf32> to vector<8x4x128xf32>
    %88 = vector.shape_cast %87 : vector<8x4x128xf32> to vector<32x128xf32>
    %c0_51 = arith.constant 0 : index
    %c384_52 = arith.constant 384 : index
    %89 = vector.load %arg13[%c0_51, %c384_52] : memref<32x640xf32, #tpu.memory_space<vmem>>, vector<32x128xf32>
    tpu.vector_store %arg13[%c0_51, %c384_52], %88 {strides = array<i32>} : memref<32x640xf32, #tpu.memory_space<vmem>>, vector<32x128xf32>,
    %90 = vector.extract_strided_slice %51 {offsets = [0, 2, 0], sizes = [8, 4, 128], strides = [1, 1, 1]} : vector<8x6x128xf32> to vector<8x4x128xf32>
    %91 = vector.shape_cast %90 : vector<8x4x128xf32> to vector<32x128xf32>
    %c0_53 = arith.constant 0 : index
    %c512_54 = arith.constant 512 : index
    %92 = vector.load %arg13[%c0_53, %c512_54] : memref<32x640xf32, #tpu.memory_space<vmem>>, vector<32x128xf32>
    tpu.vector_store %arg13[%c0_53, %c512_54], %91 {strides = array<i32>} : memref<32x640xf32, #tpu.memory_space<vmem>>, vector<32x128xf32>,
    %c0_55 = arith.constant 0 : index
    %c0_56 = arith.constant 0 : index
    %93 = vector.load %arg13[%c0_55, %c0_56] : memref<32x640xf32, #tpu.memory_space<vmem>>, vector<32x640xf32>
    %c0_57 = arith.constant 0 : index
    %c0_58 = arith.constant 0 : index
    %94 = vector.load %arg4[%c0_57, %c0_58] : memref<640x256xf32, #tpu.memory_space<vmem>>, vector<640x256xf32>
    %cst_59 = arith.constant dense<0.000000e+00> : vector<32x256xf32>
    %95 = tpu.matmul %93, %94, %cst_59 {dimension_numbers = #tpu.dot_dimension_numbers<[1], [0], [0], [1], [0, 0, 1, 1], [], []>} : vector<32x640xf32>, vector<640x256xf32>, vector<32x256xf32> -> vector<32x256xf32>
    %c0_60 = arith.constant 0 : index
    %c0_61 = arith.constant 0 : index
    %96 = vector.load %arg5[%c0_60, %c0_61] : memref<1x256xf32, #tpu.memory_space<vmem>>, vector<1x256xf32>
    %97 = vector.broadcast %96 : vector<1x256xf32> to vector<32x256xf32>
    %98 = arith.addf %95, %97 : vector<32x256xf32>
    %cst_62 = arith.constant 0.000000e+00 : f32
    %99 = vector.broadcast %cst_62 : f32 to vector<32x256xf32>
    %100 = arith.maximumf %98, %99 : vector<32x256xf32>
    %101 = vector.extract_strided_slice %100 {offsets = [0, 0], sizes = [32, 128], strides = [1, 1]} : vector<32x256xf32> to vector<32x128xf32>
    %102 = vector.extract_strided_slice %100 {offsets = [0, 128], sizes = [32, 128], strides = [1, 1]} : vector<32x256xf32> to vector<32x128xf32>
    %103 = arith.maximumf %101, %102 : vector<32x128xf32>
    %104 = arith.maximumf %77, %103 : vector<32x128xf32>
    %105 = vector.shape_cast %104 : vector<32x128xf32> to vector<8x4x128xf32>
    %106 = vector.extract_strided_slice %105 {offsets = [0, 0, 0], sizes = [8, 1, 128], strides = [1, 1, 1]} : vector<8x4x128xf32> to vector<8x1x128xf32>
    %107 = vector.shape_cast %106 : vector<8x1x128xf32> to vector<8x128xf32>
    %c0_63 = arith.constant 0 : index
    %c0_64 = arith.constant 0 : index
    %c0_65 = arith.constant 0 : index
    %108 = vector.load %arg6[%c0_63, %c0_64, %c0_65] : memref<4x128x128xf32, #tpu.memory_space<vmem>>, vector<1x128x128xf32>
    %109 = vector.shape_cast %108 : vector<1x128x128xf32> to vector<128x128xf32>
    %cst_66 = arith.constant dense<0.000000e+00> : vector<8x128xf32>
    %110 = tpu.matmul %107, %109, %cst_66 {dimension_numbers = #tpu.dot_dimension_numbers<[1], [0], [0], [1], [0, 0, 1, 1], [], []>} : vector<8x128xf32>, vector<128x128xf32>, vector<8x128xf32> -> vector<8x128xf32>
    %111 = vector.extract_strided_slice %105 {offsets = [0, 1, 0], sizes = [8, 1, 128], strides = [1, 1, 1]} : vector<8x4x128xf32> to vector<8x1x128xf32>
    %112 = vector.shape_cast %111 : vector<8x1x128xf32> to vector<8x128xf32>
    %c1_67 = arith.constant 1 : index
    %c0_68 = arith.constant 0 : index
    %c0_69 = arith.constant 0 : index
    %113 = vector.load %arg6[%c1_67, %c0_68, %c0_69] : memref<4x128x128xf32, #tpu.memory_space<vmem>>, vector<1x128x128xf32>
    %114 = vector.shape_cast %113 : vector<1x128x128xf32> to vector<128x128xf32>
    %cst_70 = arith.constant dense<0.000000e+00> : vector<8x128xf32>
    %115 = tpu.matmul %112, %114, %cst_70 {dimension_numbers = #tpu.dot_dimension_numbers<[1], [0], [0], [1], [0, 0, 1, 1], [], []>} : vector<8x128xf32>, vector<128x128xf32>, vector<8x128xf32> -> vector<8x128xf32>
    %116 = arith.addf %110, %115 : vector<8x128xf32>
    %117 = vector.extract_strided_slice %105 {offsets = [0, 2, 0], sizes = [8, 1, 128], strides = [1, 1, 1]} : vector<8x4x128xf32> to vector<8x1x128xf32>
    %118 = vector.shape_cast %117 : vector<8x1x128xf32> to vector<8x128xf32>
    %c2_71 = arith.constant 2 : index
    %c0_72 = arith.constant 0 : index
    %c0_73 = arith.constant 0 : index
    %119 = vector.load %arg6[%c2_71, %c0_72, %c0_73] : memref<4x128x128xf32, #tpu.memory_space<vmem>>, vector<1x128x128xf32>
    %120 = vector.shape_cast %119 : vector<1x128x128xf32> to vector<128x128xf32>
    %cst_74 = arith.constant dense<0.000000e+00> : vector<8x128xf32>
    %121 = tpu.matmul %118, %120, %cst_74 {dimension_numbers = #tpu.dot_dimension_numbers<[1], [0], [0], [1], [0, 0, 1, 1], [], []>} : vector<8x128xf32>, vector<128x128xf32>, vector<8x128xf32> -> vector<8x128xf32>
    %122 = arith.addf %116, %121 : vector<8x128xf32>
    %123 = vector.extract_strided_slice %105 {offsets = [0, 3, 0], sizes = [8, 1, 128], strides = [1, 1, 1]} : vector<8x4x128xf32> to vector<8x1x128xf32>
    %124 = vector.shape_cast %123 : vector<8x1x128xf32> to vector<8x128xf32>
    %c3_75 = arith.constant 3 : index
    %c0_76 = arith.constant 0 : index
    %c0_77 = arith.constant 0 : index
    %125 = vector.load %arg6[%c3_75, %c0_76, %c0_77] : memref<4x128x128xf32, #tpu.memory_space<vmem>>, vector<1x128x128xf32>
    %126 = vector.shape_cast %125 : vector<1x128x128xf32> to vector<128x128xf32>
    %cst_78 = arith.constant dense<0.000000e+00> : vector<8x128xf32>
    %127 = tpu.matmul %124, %126, %cst_78 {dimension_numbers = #tpu.dot_dimension_numbers<[1], [0], [0], [1], [0, 0, 1, 1], [], []>} : vector<8x128xf32>, vector<128x128xf32>, vector<8x128xf32> -> vector<8x128xf32>
    %128 = arith.addf %122, %127 : vector<8x128xf32>
    %c0_79 = arith.constant 0 : index
    %c0_80 = arith.constant 0 : index
    %129 = vector.load %arg7[%c0_79, %c0_80] : memref<1x128xf32, #tpu.memory_space<vmem>>, vector<1x128xf32>
    %130 = vector.broadcast %129 : vector<1x128xf32> to vector<8x128xf32>
    %131 = arith.addf %128, %130 : vector<8x128xf32>
    %cst_81 = arith.constant 0.000000e+00 : f32
    %132 = vector.broadcast %cst_81 : f32 to vector<8x128xf32>
    %133 = arith.maximumf %131, %132 : vector<8x128xf32>
    %c0_82 = arith.constant 0 : index
    %c0_83 = arith.constant 0 : index
    %134 = vector.load %arg8[%c0_82, %c0_83] : memref<128x128xf32, #tpu.memory_space<vmem>>, vector<128x128xf32>
    %cst_84 = arith.constant dense<0.000000e+00> : vector<8x128xf32>
    %135 = tpu.matmul %133, %134, %cst_84 {dimension_numbers = #tpu.dot_dimension_numbers<[1], [0], [0], [1], [0, 0, 1, 1], [], []>} : vector<8x128xf32>, vector<128x128xf32>, vector<8x128xf32> -> vector<8x128xf32>
    %c0_85 = arith.constant 0 : index
    %c0_86 = arith.constant 0 : index
    %136 = vector.load %arg9[%c0_85, %c0_86] : memref<1x128xf32, #tpu.memory_space<vmem>>, vector<1x128xf32>
    %137 = vector.broadcast %136 : vector<1x128xf32> to vector<8x128xf32>
    %138 = arith.addf %135, %137 : vector<8x128xf32>
    %cst_87 = arith.constant 0.000000e+00 : f32
    %139 = vector.broadcast %cst_87 : f32 to vector<8x128xf32>
    %140 = arith.maximumf %138, %139 : vector<8x128xf32>
    %c0_88 = arith.constant 0 : index
    %c0_89 = arith.constant 0 : index
    %141 = vector.load %arg10[%c0_88, %c0_89] : memref<128x128xf32, #tpu.memory_space<vmem>>, vector<128x128xf32>
    %cst_90 = arith.constant dense<0.000000e+00> : vector<8x128xf32>
    %142 = tpu.matmul %140, %141, %cst_90 {dimension_numbers = #tpu.dot_dimension_numbers<[1], [0], [0], [1], [0, 0, 1, 1], [], []>} : vector<8x128xf32>, vector<128x128xf32>, vector<8x128xf32> -> vector<8x128xf32>
    %c0_91 = arith.constant 0 : index
    %c0_92 = arith.constant 0 : index
    %143 = vector.load %arg11[%c0_91, %c0_92] : memref<1x128xf32, #tpu.memory_space<vmem>>, vector<1x128xf32>
    %144 = vector.broadcast %143 : vector<1x128xf32> to vector<8x128xf32>
    %145 = arith.addf %142, %144 : vector<8x128xf32>
    %c0_93 = arith.constant 0 : index
    %c0_94 = arith.constant 0 : index
    %146 = vector.load %arg12[%c0_93, %c0_94] : memref<8x128xf32, #tpu.memory_space<vmem>>, vector<8x128xf32>
    tpu.vector_store %arg12[%c0_93, %c0_94], %145 {strides = array<i32>} : memref<8x128xf32, #tpu.memory_space<vmem>>, vector<8x128xf32>,
    return
  }
  func.func @transform_0(%arg0: i32) -> (i32, i32, i32) {
    %c0_i32 = arith.constant 0 : i32
    %c0_i32_0 = arith.constant 0 : i32
    %c0_i32_1 = arith.constant 0 : i32
    return %c0_i32, %arg0, %c0_i32_0 : i32, i32, i32
  }
  func.func @transform_1(%arg0: i32) -> (i32, i32) {
    %c0_i32 = arith.constant 0 : i32
    %c0_i32_0 = arith.constant 0 : i32
    %c0_i32_1 = arith.constant 0 : i32
    return %c0_i32, %c0_i32_0 : i32, i32
  }
  func.func @transform_2(%arg0: i32) -> (i32, i32) {
    %c0_i32 = arith.constant 0 : i32
    %c0_i32_0 = arith.constant 0 : i32
    %c0_i32_1 = arith.constant 0 : i32
    return %c0_i32, %c0_i32_0 : i32, i32
  }
  func.func @transform_3(%arg0: i32) -> (i32, i32) {
    %c0_i32 = arith.constant 0 : i32
    %c0_i32_0 = arith.constant 0 : i32
    %c0_i32_1 = arith.constant 0 : i32
    return %c0_i32, %c0_i32_0 : i32, i32
  }
  func.func @transform_4(%arg0: i32) -> (i32, i32) {
    %c0_i32 = arith.constant 0 : i32
    %c0_i32_0 = arith.constant 0 : i32
    %c0_i32_1 = arith.constant 0 : i32
    return %c0_i32, %c0_i32_0 : i32, i32
  }
  func.func @transform_5(%arg0: i32) -> (i32, i32, i32) {
    %c0_i32 = arith.constant 0 : i32
    %c0_i32_0 = arith.constant 0 : i32
    %c0_i32_1 = arith.constant 0 : i32
    %c0_i32_2 = arith.constant 0 : i32
    return %c0_i32, %c0_i32_0, %c0_i32_1 : i32, i32, i32
  }
  func.func @transform_6(%arg0: i32) -> (i32, i32) {
    %c0_i32 = arith.constant 0 : i32
    %c0_i32_0 = arith.constant 0 : i32
    %c0_i32_1 = arith.constant 0 : i32
    return %c0_i32, %c0_i32_0 : i32, i32
  }
  func.func @transform_7(%arg0: i32) -> (i32, i32) {
    %c0_i32 = arith.constant 0 : i32
    %c0_i32_0 = arith.constant 0 : i32
    %c0_i32_1 = arith.constant 0 : i32
    return %c0_i32, %c0_i32_0 : i32, i32
  }
  func.func @transform_8(%arg0: i32) -> (i32, i32) {
    %c0_i32 = arith.constant 0 : i32
    %c0_i32_0 = arith.constant 0 : i32
    %c0_i32_1 = arith.constant 0 : i32
    return %c0_i32, %c0_i32_0 : i32, i32
  }
  func.func @transform_9(%arg0: i32) -> (i32, i32) {
    %c0_i32 = arith.constant 0 : i32
    %c0_i32_0 = arith.constant 0 : i32
    %c0_i32_1 = arith.constant 0 : i32
    return %c0_i32, %c0_i32_0 : i32, i32
  }
  func.func @transform_10(%arg0: i32) -> (i32, i32) {
    %c0_i32 = arith.constant 0 : i32
    %c0_i32_0 = arith.constant 0 : i32
    %c0_i32_1 = arith.constant 0 : i32
    return %c0_i32, %c0_i32_0 : i32, i32
  }
  func.func @transform_11(%arg0: i32) -> (i32, i32) {
    %c0_i32 = arith.constant 0 : i32
    %c0_i32_0 = arith.constant 0 : i32
    return %arg0, %c0_i32 : i32, i32
  }
}

</mosaic_0001>

<bundles_post_ra>
// kernel: network_forward.1
= control target key start
LH: loop header
LB: loop body
LE: loop exit
PB: predicated region body
PF: predicated region fallthrough
CT: control target
= control target key end

     0   :  { %vm111_vm0 = vcmask 1043456   ;;  %vm92_vm1 = vcmask 97280   ;;  %vm973_vm2 = vcmask 1040384   ;;  %vm974_vm3 = vcmask 1042434   ;;  %s5787_s1 = inlined_call_operand.vmem [shape: f32[140,256], index: 1, kind: input, shape index: {}]   ;;  %s5788_s0 = inlined_call_operand.vmem [shape: f32[4,48,140], index: 0, kind: input, shape index: {}]   ;;  %s5789_s3 = inlined_call_operand.vmem [shape: f32[640,256], index: 3, kind: input, shape index: {}]   ;;  %s5790_s2 = inlined_call_operand.vmem [shape: f32[1,256], index: 2, kind: input, shape index: {}]   ;;  %s5791_s4 = inlined_call_operand.vmem [shape: f32[1,256], index: 4, kind: input, shape index: {}]   ;;  %s5792_s5 = inlined_call_operand.vmem [shape: f32[4,128,128], index: 5, kind: input, shape index: {}]   ;;  %s5793_s7 = inlined_call_operand.vmem [shape: f32[128,128], index: 7, kind: input, shape index: {}]   ;;  %s5794_s6 = inlined_call_operand.vmem [shape: f32[1,128], index: 6, kind: input, shape index: {}]   ;;  %s5795_s8 = inlined_call_operand.vmem [shape: f32[1,128], index: 8, kind: input, shape index: {}]   ;;  %s5796_s9 = inlined_call_operand.vmem [shape: f32[128,128], index: 9, kind: input, shape index: {}]   ;;  %s5797_s10 = inlined_call_operand.vmem [shape: f32[1,128], index: 10, kind: input, shape index: {}]   ;;  %s5798_s11 = inlined_call_operand.vmem [shape: f32[8,128], index: 11, kind: output, shape index: {}]  }
   0x1   :  { %v2918_v0 = vld [vmem:[%s5787_s1 + $0xf8] sm:$0xff]  ;;  %v2923_v1 = vld [vmem:[%s5787_s1 + $0xf0] sm:$0xff]  ;;  %v2928_v2 = vld [vmem:[%s5787_s1 + $0xe8] sm:$0xff]  ;;  %vm976_vm5 = vcmask 1044484   ;;  %vm978_vm7 = vcmask 1046534   ;;  %vm2401_vm9 = vcmask 1041409  }
   0x2   :  { %188 = vmatpush.msra.mxu2 %v2918_v0  ;;  %118 = vmatpush.msra.mxu0 %v2923_v1  ;;  %v2935_v3 = vld [vmem:[%s5787_s1 + $0xe0] sm:$0xff]  ;;  %v2940_v4 = vld [vmem:[%s5787_s1 + $0xd8] sm:$0xff]  ;;  %v2945_v5 = vld [vmem:[%s5787_s1 + $0xd0] sm:$0xff]  ;;  %vm2404_vm10 = vcmask 1043459   ;;  %vm2407_vm11 = vcmask 1045509   ;;  %vm2410_vm12 = vcmask 1047559  }
   0x3   :  { %v2952_v6 = vld [vmem:[%s5787_s1 + $0xc8] sm:$0xff]  ;;  %v2957_v7 = vld [vmem:[%s5787_s1 + $0xc0] sm:$0xff]  ;;  %v2964_v8 = vld [vmem:[%s5787_s1 + $0xb8] sm:$0xff] }
   0x4   :  { %189 = vmatpush.msra.mxu2 %v2928_v2  ;;  %119 = vmatpush.msra.mxu0 %v2935_v3  ;;  %v2969_v9 = vld [vmem:[%s5787_s1 + $0xb0] sm:$0xff]  ;;  %v2976_v10 = vld [vmem:[%s5787_s1 + $0xa8] sm:$0xff]  ;;  %v2981_v11 = vld [vmem:[%s5787_s1 + $0xa0] sm:$0xff] }
   0x5   :  { %v2988_v12 = vld [vmem:[%s5787_s1 + $0x118] sm:$0xf]  ;;  %v2998_v14 = vld [vmem:[%s5787_s1 + $0x90] sm:$0xff]  ;;  %v3005_v15 = vld [vmem:[%s5787_s1 + $0x108] sm:$0xff] }
   0x6   :  { %190 = vmatpush.msra.mxu2 %v2940_v4  ;;  %120 = vmatpush.msra.mxu0 %v2945_v5  ;;  %v2993_v13 = vld [vmem:[%s5787_s1 + $0x98] sm:$0xff]  ;;  %v39_v16 = vld [vmem:[%s5788_s0 + $0x8] sm:$0xff]  ;;  %v3015_v17 = vld [vmem:[%s5787_s1 + $0x110] sm:$0xf] }
   0x7   :  { %2676 = vmatpush.msk.msra.mxu3 %vm111_vm0, %v2988_v12  ;;  %v3020_v18 = vld [vmem:[%s5787_s1 + $0x88] sm:$0xff]  ;;  %v3025_v19 = vld [vmem:[%s5787_s1 + $0x80] sm:$0xff]  ;;  %2669 = vmatpush.msk.msra.mxu1 %vm111_vm0, %v3015_v17  ;;  %v3040_v21 = vld [vmem:[%s5787_s1 + $0x78] sm:$0xff] }
   0x8   :  { %191 = vmatpush.msra.mxu2 %v2952_v6  ;;  %121 = vmatpush.msra.mxu0 %v2957_v7  ;;  %v3033_v20 = vld [vmem:[%s5787_s1 + $0x100] sm:$0xff]  ;;  %v3045_v22 = vld [vmem:[%s5787_s1 + $0x70] sm:$0xff]  ;;  %v3054_v23 = vld [vmem:[%s5787_s1 + $0x68] sm:$0xff] }
   0x9   :  { %238 = vmatpush.msra.mxu3 %v3005_v15  ;;  %168 = vmatpush.msra.mxu1 %v3033_v20  ;;  %v3059_v24 = vld [vmem:[%s5787_s1 + $0x60] sm:$0xff]  ;;  %v3069_v25 = vld [vmem:[%s5787_s1 + $0x58] sm:$0xff]  ;;  %v3074_v26 = vld [vmem:[%s5787_s1 + $0x50] sm:$0xff] }
   0xa   :  { %192 = vmatpush.msra.mxu2 %v2964_v8  ;;  %122 = vmatpush.msra.mxu0 %v2969_v9  ;;  %v41_v27 = vld [vmem:[%s5788_s0 + $0x18] sm:$0xff]  ;;  %v3086_v28 = vld [vmem:[%s5787_s1 + $0x48] sm:$0xff]  ;;  %v3091_v29 = vld [vmem:[%s5787_s1 + $0x40] sm:$0xff] }
   0xb   :  { %2677 = vmatmul.msk.f32.vlgmr.msra.gmra.mxu3 %vm92_vm1, %v39_v16  ;;  %2670 = vmatmul.msk.f32.vlgmr.msra.gmra.mxu1 %vm92_vm1, %v39_v16  ;;  %v3101_v30 = vld [vmem:[%s5787_s1 + $0x38] sm:$0xff]  ;;  %v3106_v31 = vld [vmem:[%s5787_s1 + $0x30] sm:$0xff]  ;;  %v3115_v32 = vld [vmem:[%s5787_s1 + $0x28] sm:$0xff] }
   0xc   :  { %193 = vmatpush.msra.mxu2 %v2976_v10  ;;  %123 = vmatpush.msra.mxu0 %v2981_v11  ;;  %v3120_v33 = vld [vmem:[%s5787_s1 + $0x20] sm:$0xff]  ;;  %v3129_v34 = vld [vmem:[%s5787_s1 + $0x18] sm:$0xff]  ;;  %v3134_v35 = vld [vmem:[%s5787_s1 + $0x10] sm:$0xff] }
   0xd   :  { %2695 = vmatpush.msk.msrb.mxu3 %vm111_vm0, %v3015_v17  ;;  %307 = vmatpush.msrb.mxu1 %v2923_v1  ;;  %v43_v36 = vld [vmem:[%s5788_s0 + $0x28] sm:$0xff]  ;;  %v3150_v38 = vld [vmem:[%s5787_s1] sm:$0xff]  ;;  %v45_v40 = vld [vmem:[%s5788_s0 + $0x38] sm:$0xff] }
   0xe   :  { %194 = vmatpush.msra.mxu2 %v2993_v13  ;;  %124 = vmatpush.msra.mxu0 %v2998_v14  ;;  %v3145_v37 = vld [vmem:[%s5787_s1 + $0x8] sm:$0xff]  ;;  %v38_v39 = vld [vmem:[%s5788_s0] sm:$0xff]  ;;  %v40_v41 = vld [vmem:[%s5788_s0 + $0x10] sm:$0xff] }
   0xf   :  { %357 = vmatpush.msrb.mxu3 %v3033_v20  ;;  %308 = vmatpush.msrb.mxu1 %v2935_v3  ;;  %v47_v42 = vld [vmem:[%s5788_s0 + $0x48] sm:$0xff]  ;;  %v42_v43 = vld [vmem:[%s5788_s0 + $0x20] sm:$0xff]  ;;  %v49_v44 = vld [vmem:[%s5788_s0 + $0x58] sm:$0xff] }
  0x10   :  { %195 = vmatpush.msra.mxu2 %v3020_v18  ;;  %125 = vmatpush.msra.mxu0 %v3025_v19  ;;  %v44_v45 = vld [vmem:[%s5788_s0 + $0x30] sm:$0xff]  ;;  %v2684_v46 = vld [vmem:[%s5788_s0 + $0x68] sm:$0xff]  ;;  %v46_v47 = vld [vmem:[%s5788_s0 + $0x40] sm:$0xff] }
  0x11   :  { %2721 = vmatpush.msk.msra.mxu3 %vm111_vm0, %v3015_v17  ;;  %309 = vmatpush.msrb.mxu1 %v2945_v5  ;;  %v2683_v48 = vld [vmem:[%s5788_s0 + $0x60] sm:$0xff]  ;;  %v2686_v49 = vld [vmem:[%s5788_s0 + $0x78] sm:$0xff]  ;;  %v48_v50 = vld [vmem:[%s5788_s0 + $0x50] sm:$0xff] }
  0x12   :  { %196 = vmatpush.msra.mxu2 %v3040_v21  ;;  %126 = vmatpush.msra.mxu0 %v3045_v22  ;;  %v2685_v51 = vld [vmem:[%s5788_s0 + $0x70] sm:$0xff]  ;;  %v2688_v52 = vld [vmem:[%s5788_s0 + $0x88] sm:$0xff]  ;;  %v2687_v53 = vld [vmem:[%s5788_s0 + $0x80] sm:$0xff] }
  0x13   :  { %2678 = vmatmul.msk.f32.gmra.mxu3 %vm92_vm1, %v41_v27  ;;  %2671 = vmatmul.msk.f32.gmra.mxu1 %vm92_vm1, %v41_v27  ;;  %v2690_v54 = vld [vmem:[%s5788_s0 + $0x98] sm:$0xff]  ;;  %v2689_v55 = vld [vmem:[%s5788_s0 + $0x90] sm:$0xff]  ;;  %v2692_v56 = vld [vmem:[%s5788_s0 + $0xa8] sm:$0xff] }
  0x14   :  { %197 = vmatpush.msra.mxu2 %v3054_v23  ;;  %127 = vmatpush.msra.mxu0 %v3059_v24  ;;  %v2691_v57 = vld [vmem:[%s5788_s0 + $0xa0] sm:$0xff]  ;;  %v2694_v58 = vld [vmem:[%s5788_s0 + $0xb8] sm:$0xff]  ;;  %v2693_v59 = vld [vmem:[%s5788_s0 + $0xb0] sm:$0xff] }
  0x15   :  { %576 = vmatpush.msra.mxu3 %v3033_v20  ;;  %310 = vmatpush.msrb.mxu1 %v2957_v7  ;;  %v2710_v60 = vld [vmem:[%s5788_s0 + $0xc8] sm:$0xff]  ;;  %v2709_v61 = vld [vmem:[%s5788_s0 + $0xc0] sm:$0xff]  ;;  %v2712_v62 = vld [vmem:[%s5788_s0 + $0xd8] sm:$0xff] }
  0x16   :  { %198 = vmatpush.msra.mxu2 %v3069_v25  ;;  %128 = vmatpush.msra.mxu0 %v3074_v26  ;;  %v2711_v63 = vld [vmem:[%s5788_s0 + $0xd0] sm:$0xff]  ;;  %v1245_v27 = vld [vmem:[%s5789_s3 + $0xe0] sm:$0xff]  ;;  %vm975_vm4 = vmor %vm973_vm2, %vm974_vm3 }
  0x17   :  { %311 = vmatpush.msrb.mxu1 %v2969_v9  ;;  %vm3874_vm6 = vmor %vm975_vm4, %vm976_vm5 }
  0x18   :  { %199 = vmatpush.msra.mxu2 %v3086_v28  ;;  %129 = vmatpush.msra.mxu0 %v3091_v29  ;;  %vm3903_vm8 = vmor %vm3874_vm6, %vm978_vm7 }
  0x19   :  { %312 = vmatpush.msrb.mxu1 %v2981_v11 }
  0x1a   :  { %200 = vmatpush.msra.mxu2 %v3101_v30  ;;  %130 = vmatpush.msra.mxu0 %v3106_v31 }
  0x1b   :  { %2679 = vmatmul.msk.f32.gmra.mxu3 %vm92_vm1, %v43_v36  ;;  %2672 = vmatmul.msk.f32.gmra.mxu1 %vm92_vm1, %v43_v36  ;;  %v1239_v36 = vld [vmem:[%s5789_s3 + $0xb0] sm:$0xff] }
  0x1c   :  { %201 = vmatpush.msra.mxu2 %v3115_v32  ;;  %131 = vmatpush.msra.mxu0 %v3120_v33 }
  0x1d   :  { %313 = vmatpush.msrb.mxu1 %v2998_v14 }
  0x1e   :  { %202 = vmatpush.msra.mxu2 %v3129_v34  ;;  %132 = vmatpush.msra.mxu0 %v3134_v35 }
  0x1f   :  { %314 = vmatpush.msrb.mxu1 %v3025_v19 }
  0x20   :  { %203 = vmatpush.msra.mxu2 %v3145_v37  ;;  %133 = vmatpush.msra.mxu0 %v3150_v38 }
  0x21   :  { %204 = vmatmul.f32.vlgmr.msra.gmra.mxu2 %v38_v39  ;;  %134 = vmatmul.f32.vlgmr.msra.gmra.mxu0 %v38_v39  ;;  %v1237_v39 = vld [vmem:[%s5789_s3 + $0xa0] sm:$0xff] }
  0x22   :  { %2702 = vmatpush.msk.msrb.mxu2 %vm111_vm0, %v2988_v12  ;;  %377 = vmatpush.msrb.mxu0 %v2918_v0 }
  0x23   :  { %2680 = vmatmul.msk.f32.gmra.mxu3 %vm92_vm1, %v45_v40  ;;  %315 = vmatpush.msrb.mxu1 %v3045_v22 }
  0x24   :  { %378 = vmatpush.msrb.mxu0 %v2928_v2  ;;  %427 = vmatpush.msrb.mxu2 %v3005_v15 }
  0x25   :  { %316 = vmatpush.msrb.mxu1 %v3059_v24 }
  0x26   :  { %379 = vmatpush.msrb.mxu0 %v2940_v4  ;;  %2728 = vmatpush.msk.msra.mxu2 %vm111_vm0, %v2988_v12 }
  0x27   :  { %2673 = vmatmul.msk.f32.gmra.mxu1 %vm92_vm1, %v45_v40 }
  0x28   :  { %380 = vmatpush.msrb.mxu0 %v2952_v6  ;;  %646 = vmatpush.msra.mxu2 %v3005_v15 }
  0x29   :  { %207 = vmatmul.f32.gmra.mxu2 %v40_v41  ;;  %137 = vmatmul.f32.gmra.mxu0 %v40_v41  ;;  %v1235_v41 = vld [vmem:[%s5789_s3 + $0x90] sm:$0xff] }
  0x2a   :  { %381 = vmatpush.msrb.mxu0 %v2964_v8  ;;  %317 = vmatpush.msrb.mxu1 %v3074_v26 }
  0x2b   :  { %2681 = vmatmul.msk.f32.gmra.mxu3 %vm92_vm1, %v47_v42 }
  0x2c   :  { %382 = vmatpush.msrb.mxu0 %v2976_v10  ;;  %318 = vmatpush.msrb.mxu1 %v3091_v29 }
  0x2e   :  { %383 = vmatpush.msrb.mxu0 %v2993_v13  ;;  %319 = vmatpush.msrb.mxu1 %v3106_v31 }
  0x2f   :  { %2674 = vmatmul.msk.f32.gmra.mxu1 %vm92_vm1, %v47_v42 }
  0x30   :  { %384 = vmatpush.msrb.mxu0 %v3020_v18  ;;  %320 = vmatpush.msrb.mxu1 %v3120_v33 }
  0x31   :  { %210 = vmatmul.f32.gmra.mxu2 %v42_v43  ;;  %140 = vmatmul.f32.gmra.mxu0 %v42_v43  ;;  %v2744_v43 = vld [vmem:[%s5788_s0 + $0x168] sm:$0xff] }
  0x32   :  { %385 = vmatpush.msrb.mxu0 %v3040_v21  ;;  %321 = vmatpush.msrb.mxu1 %v3134_v35 }
  0x33   :  { %2682 = vmatmul.msk.f32.gmra.mxu3 %vm92_vm1, %v49_v44 }
  0x34   :  { %386 = vmatpush.msrb.mxu0 %v3054_v23  ;;  %322 = vmatpush.msrb.mxu1 %v3150_v38 }
  0x36   :  { %387 = vmatpush.msrb.mxu0 %v3069_v25  ;;  %526 = vmatpush.msra.mxu1 %v2923_v1 }
  0x37   :  { %2675 = vmatmul.msk.f32.gmra.mxu1 %vm92_vm1, %v49_v44  ;;  %v1233_v44 = vld [vmem:[%s5789_s3 + $0x80] sm:$0xff] }
  0x38   :  { %388 = vmatpush.msrb.mxu0 %v3086_v28  ;;  %527 = vmatpush.msra.mxu1 %v2935_v3 }
  0x39   :  { %213 = vmatmul.f32.gmra.mxu2 %v44_v45  ;;  %143 = vmatmul.f32.gmra.mxu0 %v44_v45 }
  0x3a   :  { %389 = vmatpush.msrb.mxu0 %v3101_v30  ;;  %528 = vmatpush.msra.mxu1 %v2945_v5 }
  0x3b   :  { %2696 = vmatmul.msk.f32.vlgmr.msrb.gmra.mxu3 %vm92_vm1, %v2684_v46 }
  0x3c   :  { %390 = vmatpush.msrb.mxu0 %v3115_v32  ;;  %529 = vmatpush.msra.mxu1 %v2957_v7 }
  0x3d   :  { %2747 = vmatpush.msk.msrb.mxu3 %vm111_vm0, %v3015_v17 }
  0x3e   :  { %391 = vmatpush.msrb.mxu0 %v3129_v34  ;;  %530 = vmatpush.msra.mxu1 %v2969_v9 }
  0x3f   :  { %323 = vmatmul.f32.vlgmr.msrb.gmra.mxu1 %v2683_v48  ;;  %765 = vmatpush.msrb.mxu3 %v3033_v20 }
  0x40   :  { %392 = vmatpush.msrb.mxu0 %v3145_v37  ;;  %531 = vmatpush.msra.mxu1 %v2981_v11 }
  0x41   :  { %216 = vmatmul.f32.gmra.mxu2 %v46_v47  ;;  %146 = vmatmul.f32.gmra.mxu0 %v46_v47 }
  0x42   :  { %596 = vmatpush.msra.mxu0 %v2918_v0  ;;  %532 = vmatpush.msra.mxu1 %v2998_v14 }
  0x43   :  { %2697 = vmatmul.msk.f32.gmra.mxu3 %vm92_vm1, %v2686_v49 }
  0x44   :  { %597 = vmatpush.msra.mxu0 %v2928_v2  ;;  %533 = vmatpush.msra.mxu1 %v3025_v19 }
  0x46   :  { %598 = vmatpush.msra.mxu0 %v2940_v4  ;;  %534 = vmatpush.msra.mxu1 %v3045_v22 }
  0x47   :  { %326 = vmatmul.f32.gmra.mxu1 %v2685_v51 }
  0x48   :  { %599 = vmatpush.msra.mxu0 %v2952_v6  ;;  %535 = vmatpush.msra.mxu1 %v3059_v24 }
  0x49   :  { %219 = vmatmul.f32.gmra.mxu2 %v48_v50  ;;  %149 = vmatmul.f32.gmra.mxu0 %v48_v50 }
  0x4a   :  { %600 = vmatpush.msra.mxu0 %v2964_v8  ;;  %536 = vmatpush.msra.mxu1 %v3074_v26 }
  0x4b   :  { %2698 = vmatmul.msk.f32.gmra.mxu3 %vm92_vm1, %v2688_v52 }
  0x4c   :  { %601 = vmatpush.msra.mxu0 %v2976_v10  ;;  %537 = vmatpush.msra.mxu1 %v3091_v29 }
  0x4e   :  { %602 = vmatpush.msra.mxu0 %v2993_v13  ;;  %538 = vmatpush.msra.mxu1 %v3106_v31 }
  0x4f   :  { %329 = vmatmul.f32.gmra.mxu1 %v2687_v53 }
  0x50   :  { %603 = vmatpush.msra.mxu0 %v3020_v18  ;;  %539 = vmatpush.msra.mxu1 %v3120_v33 }
  0x51   :  { %2703 = vmatmul.msk.f32.vlgmr.msrb.gmra.mxu2 %vm92_vm1, %v2684_v46  ;;  %393 = vmatmul.f32.vlgmr.msrb.gmra.mxu0 %v2683_v48  ;;  %v1231_v46 = vld [vmem:[%s5789_s3 + $0x70] sm:$0xff]  ;;  %v2743_v48 = vld [vmem:[%s5788_s0 + $0x160] sm:$0xff] }
  0x52   :  { %604 = vmatpush.msra.mxu0 %v3040_v21  ;;  %2754 = vmatpush.msk.msrb.mxu2 %vm111_vm0, %v2988_v12  ;;  %v2736_v12 = vld [vmem:[%s5788_s0 + $0x128] sm:$0xff] }
  0x53   :  { %540 = vmatpush.msra.mxu1 %v3134_v35  ;;  %2699 = vmatmul.msk.f32.gmra.mxu3 %vm92_vm1, %v2690_v54 }
  0x54   :  { %605 = vmatpush.msra.mxu0 %v3054_v23  ;;  %835 = vmatpush.msrb.mxu2 %v3005_v15  ;;  %v2735_v15 = vld [vmem:[%s5788_s0 + $0x120] sm:$0xff] }
  0x55   :  { %541 = vmatpush.msra.mxu1 %v3150_v38 }
  0x56   :  { %606 = vmatpush.msra.mxu0 %v3069_v25 }
  0x57   :  { %715 = vmatpush.msrb.mxu1 %v2923_v1  ;;  %v2713_v1 = vld [vmem:[%s5788_s0 + $0xe0] sm:$0xff] }
  0x58   :  { %607 = vmatpush.msra.mxu0 %v3086_v28  ;;  %332 = vmatmul.f32.gmra.mxu1 %v2689_v55 }
  0x59   :  { %2704 = vmatmul.msk.f32.gmra.mxu2 %vm92_vm1, %v2686_v49  ;;  %396 = vmatmul.f32.gmra.mxu0 %v2685_v51  ;;  %v1229_v49 = vld [vmem:[%s5789_s3 + $0x60] sm:$0xff]  ;;  %v1227_v51 = vld [vmem:[%s5789_s3 + $0x50] sm:$0xff] }
  0x5a   :  { %608 = vmatpush.msra.mxu0 %v3101_v30  ;;  %716 = vmatpush.msrb.mxu1 %v2935_v3  ;;  %v2715_v3 = vld [vmem:[%s5788_s0 + $0xf0] sm:$0xff] }
  0x5b   :  { %2700 = vmatmul.msk.f32.gmra.mxu3 %vm92_vm1, %v2692_v56 }
  0x5c   :  { %609 = vmatpush.msra.mxu0 %v3115_v32  ;;  %717 = vmatpush.msrb.mxu1 %v2945_v5 }
  0x5e   :  { %610 = vmatpush.msra.mxu0 %v3129_v34  ;;  %718 = vmatpush.msrb.mxu1 %v2957_v7 }
  0x60   :  { %611 = vmatpush.msra.mxu0 %v3145_v37  ;;  %719 = vmatpush.msrb.mxu1 %v2969_v9 }
  0x61   :  { %2705 = vmatmul.msk.f32.gmra.mxu2 %vm92_vm1, %v2688_v52  ;;  %399 = vmatmul.f32.gmra.mxu0 %v2687_v53  ;;  %v2746_v53 = vld [vmem:[%s5788_s0 + $0x178] sm:$0xff] }
  0x62   :  { %785 = vmatpush.msrb.mxu0 %v2918_v0  ;;  %720 = vmatpush.msrb.mxu1 %v2981_v11  ;;  %v2714_v0 = vld [vmem:[%s5788_s0 + $0xe8] sm:$0xff] }
  0x63   :  { %335 = vmatmul.f32.gmra.mxu1 %v2691_v57  ;;  %2701 = vmatmul.msk.f32.gmra.mxu3 %vm92_vm1, %v2694_v58 }
  0x64   :  { %786 = vmatpush.msrb.mxu0 %v2928_v2  ;;  %721 = vmatpush.msrb.mxu1 %v2998_v14  ;;  %v2716_v2 = vld [vmem:[%s5788_s0 + $0xf8] sm:$0xff] }
  0x66   :  { %787 = vmatpush.msrb.mxu0 %v2940_v4  ;;  %722 = vmatpush.msrb.mxu1 %v3025_v19  ;;  %v2718_v4 = vld [vmem:[%s5788_s0 + $0x108] sm:$0xff] }
  0x68   :  { %788 = vmatpush.msrb.mxu0 %v2952_v6  ;;  %723 = vmatpush.msrb.mxu1 %v3045_v22  ;;  %v2717_v6 = vld [vmem:[%s5788_s0 + $0x100] sm:$0xff] }
  0x69   :  { %2706 = vmatmul.msk.f32.gmra.mxu2 %vm92_vm1, %v2690_v54  ;;  %402 = vmatmul.f32.gmra.mxu0 %v2689_v55  ;;  %v1225_v54 = vld [vmem:[%s5789_s3 + $0x40] sm:$0xff] }
  0x6a   :  { %789 = vmatpush.msrb.mxu0 %v2964_v8  ;;  %724 = vmatpush.msrb.mxu1 %v3059_v24  ;;  %v2720_v8 = vld [vmem:[%s5788_s0 + $0x118] sm:$0xff]  ;;  %v2740_v24 = vld [vmem:[%s5788_s0 + $0x148] sm:$0xff] }
  0x6b   :  { %338 = vmatmul.f32.gmra.mxu1 %v2693_v59  ;;  %2722 = vmatmul.msk.f32.vlgmr.msra.gmra.mxu3 %vm92_vm1, %v2710_v60 }
  0x6c   :  { %790 = vmatpush.msrb.mxu0 %v2976_v10  ;;  %725 = vmatpush.msrb.mxu1 %v3074_v26  ;;  %v2719_v10 = vld [vmem:[%s5788_s0 + $0x110] sm:$0xff] }
  0x6e   :  { %791 = vmatpush.msrb.mxu0 %v2993_v13  ;;  %726 = vmatpush.msrb.mxu1 %v3091_v29  ;;  %v2739_v29 = vld [vmem:[%s5788_s0 + $0x140] sm:$0xff] }
  0x70   :  { %792 = vmatpush.msrb.mxu0 %v3020_v18  ;;  %727 = vmatpush.msrb.mxu1 %v3106_v31  ;;  %v2738_v18 = vld [vmem:[%s5788_s0 + $0x138] sm:$0xff] }
  0x71   :  { %2707 = vmatmul.msk.f32.gmra.mxu2 %vm92_vm1, %v2692_v56  ;;  %405 = vmatmul.f32.gmra.mxu0 %v2691_v57  ;;  %v1223_v56 = vld [vmem:[%s5789_s3 + $0x30] sm:$0xff]  ;;  %v86_v57 = vld [vmem:[%s5790_s2] sm:$0x3] }
  0x72   :  { %793 = vmatpush.msrb.mxu0 %v3040_v21  ;;  %728 = vmatpush.msrb.mxu1 %v3120_v33  ;;  %v2737_v21 = vld [vmem:[%s5788_s0 + $0x130] sm:$0xff]  ;;  %v2742_v33 = vld [vmem:[%s5788_s0 + $0x158] sm:$0xff] }
  0x73   :  { %542 = vmatmul.f32.vlgmr.msra.gmra.mxu1 %v2709_v61  ;;  %2723 = vmatmul.msk.f32.gmra.mxu3 %vm92_vm1, %v2712_v62 }
  0x74   :  { %794 = vmatpush.msrb.mxu0 %v3054_v23  ;;  %729 = vmatpush.msrb.mxu1 %v3134_v35 }
  0x76   :  { %795 = vmatpush.msrb.mxu0 %v3069_v25  ;;  %730 = vmatpush.msrb.mxu1 %v3150_v38  ;;  %v1247_v25 = vld [vmem:[%s5789_s3 + $0xf0] sm:$0xff] }
  0x77   :  { %v2741_v38 = vld [vmem:[%s5788_s0 + $0x150] sm:$0xff] }
  0x78   :  { %796 = vmatpush.msrb.mxu0 %v3086_v28  ;;  %1383 = vmatpush.msra.mxu1 %v1247_v25 }
  0x79   :  { %2708 = vmatmul.msk.f32.gmra.mxu2 %vm92_vm1, %v2694_v58  ;;  %408 = vmatmul.f32.gmra.mxu0 %v2693_v59  ;;  %v2745_v59 = vld [vmem:[%s5788_s0 + $0x170] sm:$0xff] }
  0x7a   :  { %797 = vmatpush.msrb.mxu0 %v3101_v30  ;;  %1384 = vmatpush.msra.mxu1 %v1245_v27  ;;  %v1243_v30 = vld [vmem:[%s5789_s3 + $0xd0] sm:$0xff] }
  0x7b   :  { %545 = vmatmul.f32.gmra.mxu1 %v2711_v63  ;;  %2724 = vmatmul.msk.f32.gmra.mxu3 %vm92_vm1, %v2714_v0 }
  0x7c   :  { %798 = vmatpush.msrb.mxu0 %v3115_v32  ;;  %1385 = vmatpush.msra.mxu1 %v1243_v30 }
  0x7e   :  { %799 = vmatpush.msrb.mxu0 %v3129_v34  ;;  %v1241_v34 = vld [vmem:[%s5789_s3 + $0xc0] sm:$0xff] }
  0x7f   :  { %1386 = vmatpush.msra.mxu1 %v1241_v34 }
  0x80   :  { %800 = vmatpush.msrb.mxu0 %v3145_v37 }
  0x81   :  { %2729 = vmatmul.msk.f32.vlgmr.msra.gmra.mxu2 %vm92_vm1, %v2710_v60  ;;  %612 = vmatmul.f32.vlgmr.msra.gmra.mxu0 %v2709_v61  ;;  %v3524_v60 = vperm.slane %v86_v57, 1  ;;  %v1221_v61 = vld [vmem:[%s5789_s3 + $0x20] sm:$0xff] }
  0x82   :  { %1387 = vmatpush.msra.mxu1 %v1239_v36 }
  0x83   :  { %548 = vmatmul.f32.gmra.mxu1 %v2713_v1  ;;  %2725 = vmatmul.msk.f32.gmra.mxu3 %vm92_vm1, %v2716_v2 }
  0x84   :  { %1388 = vmatpush.msra.mxu1 %v1237_v39 }
  0x86   :  { %1389 = vmatpush.msra.mxu1 %v1235_v41 }
  0x88   :  { %v3376_v5 = vpop.f32.mrf.mxu1  ;;  %1390 = vmatpush.msra.mxu1 %v1233_v44 }
  0x89   :  { %2730 = vmatmul.msk.f32.gmra.mxu2 %vm92_vm1, %v2712_v62  ;;  %615 = vmatmul.f32.gmra.mxu0 %v2711_v63  ;;  %v3530_v63 = vperm.slane %v86_v57, 0 }
  0x8a   :  { %1391 = vmatpush.msra.mxu1 %v1231_v46 }
  0x8b   :  { %551 = vmatmul.f32.gmra.mxu1 %v2715_v3  ;;  %2726 = vmatmul.msk.f32.gmra.mxu3 %vm92_vm1, %v2718_v4 }
  0x8c   :  { %1392 = vmatpush.msra.mxu1 %v1229_v49 }
  0x8e   :  { %v3383_v7 = vpop.f32.mrf.mxu3  ;;  %1393 = vmatpush.msra.mxu1 %v1227_v51 }
  0x90   :  { %v3388_v9 = vpop.f32.mrf.mxu1  ;;  %1394 = vmatpush.msra.mxu1 %v1225_v54 }
  0x91   :  { %2731 = vmatmul.msk.f32.gmra.mxu2 %vm92_vm1, %v2714_v0  ;;  %618 = vmatmul.f32.gmra.mxu0 %v2713_v1  ;;  %v1219_v0 = vld [vmem:[%s5789_s3 + $0x10] sm:$0xff] }
  0x92   :  { %1395 = vmatpush.msra.mxu1 %v1223_v56 }
  0x93   :  { %554 = vmatmul.f32.gmra.mxu1 %v2717_v6  ;;  %2727 = vmatmul.msk.f32.gmra.mxu3 %vm92_vm1, %v2720_v8 }
  0x94   :  { %1396 = vmatpush.msra.mxu1 %v1221_v61 }
  0x96   :  { %v3395_v11 = vpop.f32.mrf.mxu3  ;;  %1397 = vmatpush.msra.mxu1 %v1219_v0 }
  0x98   :  { %v3403_v14 = vpop.f32.mrf.mxu1 }
  0x99   :  { %2732 = vmatmul.msk.f32.gmra.mxu2 %vm92_vm1, %v2716_v2  ;;  %621 = vmatmul.f32.gmra.mxu0 %v2715_v3 }
  0x9b   :  { %557 = vmatmul.f32.gmra.mxu1 %v2719_v10  ;;  %2748 = vmatmul.msk.f32.vlgmr.msrb.gmra.mxu3 %vm92_vm1, %v2736_v12 }
  0x9e   :  { %v3400_v13 = vpop.f32.mrf.mxu0  ;;  %v3409_v16 = vpop.f32.mrf.mxu3 }
  0xa1   :  { %2733 = vmatmul.msk.f32.gmra.mxu2 %vm92_vm1, %v2718_v4  ;;  %624 = vmatmul.f32.gmra.mxu0 %v2717_v6  ;;  %v1217_v4 = vld [vmem:[%s5789_s3] sm:$0xff] }
  0xa2   :  { %1398 = vmatpush.msra.mxu1 %v1217_v4 }
  0xa3   :  { %731 = vmatmul.f32.vlgmr.msrb.gmra.mxu1 %v2735_v15  ;;  %2749 = vmatmul.msk.f32.gmra.mxu3 %vm92_vm1, %v2738_v18 }
  0xa4   :  { %v3411_v17 = vpop.f32.mrf.mxu2  ;;  %v3419_v20 = vpop.f32.mrf.mxu1 }
  0xa5   :  { %v206_v2 = vadd.f32 %v3411_v17, %v3524_v60 }
  0xa6   :  { %v3416_v19 = vpop.f32.mrf.mxu0  ;;  %v3425_v22 = vpop.f32.mrf.mxu3 }
  0xa7   :  { %v139_v36 = vadd.f32 %v3416_v19, %v3530_v63 }
  0xa9   :  { %2734 = vmatmul.msk.f32.gmra.mxu2 %vm92_vm1, %v2720_v8  ;;  %627 = vmatmul.f32.gmra.mxu0 %v2719_v10  ;;  %v136_v8 = vadd.f32 %v3400_v13, %v3530_v63 }
  0xab   :  { %734 = vmatmul.f32.gmra.mxu1 %v2737_v21  ;;  %2750 = vmatmul.msk.f32.gmra.mxu3 %vm92_vm1, %v2740_v24 }
  0xac   :  { %v3427_v23 = vpop.f32.mrf.mxu2  ;;  %v3441_v28 = vpop.f32.mrf.mxu1 }
  0xad   :  { %v209_v30 = vadd.f32 %v3427_v23, %v3524_v60 }
  0xae   :  { %v3435_v26 = vpop.f32.mrf.mxu0  ;;  %v3450_v31 = vpop.f32.mrf.mxu3 }
  0xb1   :  { %2755 = vmatmul.msk.f32.vlgmr.msrb.gmra.mxu2 %vm92_vm1, %v2736_v12  ;;  %801 = vmatmul.f32.vlgmr.msrb.gmra.mxu0 %v2735_v15  ;;  %v241_v12 = vadd.f32 %v3383_v7, %v206_v2 }
  0xb3   :  { %737 = vmatmul.f32.gmra.mxu1 %v2739_v29  ;;  %2751 = vmatmul.msk.f32.gmra.mxu3 %vm92_vm1, %v2742_v33  ;;  %v259_v25 = vmax.f32 %v241_v12, 0.0 }
  0xb4   :  { %v3452_v32 = vpop.f32.mrf.mxu2  ;;  %v3466_v37 = vpop.f32.mrf.mxu1 }
  0xb5   :  { %v212_v19 = vadd.f32 %v3452_v32, %v3524_v60 }
  0xb6   :  { %v3460_v35 = vpop.f32.mrf.mxu0  ;;  %v3475_v40 = vpop.f32.mrf.mxu3 }
  0xb9   :  { %2756 = vmatmul.msk.f32.gmra.mxu2 %vm92_vm1, %v2738_v18  ;;  %804 = vmatmul.f32.gmra.mxu0 %v2737_v21  ;;  %v171_v21 = vadd.f32 %v3376_v5, %v136_v8  ;;  %v244_v5 = vadd.f32 %v3395_v11, %v209_v30 }
  0xbb   :  { %740 = vmatmul.f32.gmra.mxu1 %v2741_v38  ;;  %2752 = vmatmul.msk.f32.gmra.mxu3 %vm92_vm1, %v2744_v43  ;;  %v258_v7 = vmax.f32 %v171_v21, 0.0  ;;  %v261_v51 = vmax.f32 %v244_v5, 0.0 }
  0xbc   :  { %v3480_v42 = vpop.f32.mrf.mxu2  ;;  %v324_v47 = vpop.f32.mrf.mxu1 }
  0xbd   :  { %v325_v3 = vadd.f32 %v324_v47, %v3530_v63  ;;  %v270_v39 = vmax.f32 %v258_v7, %v259_v25  ;;  %v174_v47 = vadd.f32 %v3388_v9, %v139_v36  ;;  %v142_v9 = vadd.f32 %v3435_v26, %v3530_v63 }
  0xbe   :  { %v3488_v45 = vpop.f32.mrf.mxu0  ;;  %v359_v50 = vpop.f32.mrf.mxu3  ;;  %v215_v26 = vadd.f32 %v3480_v42, %v3524_v60  ;;  %v145_v42 = vadd.f32 %v3460_v35, %v3530_v63 }
  0xbf   :  { %v360_v18 = vadd.f32 %v359_v50, %v325_v3  ;;  %v260_v57 = vmax.f32 %v174_v47, 0.0  ;;  %v177_v4 = vadd.f32 %v3403_v14, %v142_v9 }
  0xc0   :  { %v250_v25 = vadd.f32 %v3425_v22, %v215_v26 }
  0xc1   :  { %2757 = vmatmul.msk.f32.gmra.mxu2 %vm92_vm1, %v2740_v24  ;;  %807 = vmatmul.f32.gmra.mxu0 %v2739_v29  ;;  %v447_v27 = vmax.f32 %v360_v18, 0.0  ;;  %v271_v0 = vmax.f32 %v260_v57, %v261_v51  ;;  %v262_v14 = vmax.f32 %v177_v4, 0.0 }
  0xc2   :  { %v265_v35 = vmax.f32 %v250_v25, 0.0 }
  0xc3   :  { %743 = vmatmul.f32.gmra.mxu1 %v2743_v48  ;;  %2753 = vmatmul.msk.f32.gmra.mxu3 %vm92_vm1, %v2746_v53 }
  0xc4   :  { %v3504_v52 = vpop.f32.mrf.mxu2  ;;  %v327_v58 = vpop.f32.mrf.mxu1 }
  0xc5   :  { %v328_v13 = vadd.f32 %v327_v58, %v3530_v63 }
  0xc6   :  { %v3512_v55 = vpop.f32.mrf.mxu0  ;;  %v362_v62 = vpop.f32.mrf.mxu3 }
  0xc7   :  { %v363_v44 = vadd.f32 %v362_v62, %v328_v13 }
  0xc9   :  { %2758 = vmatmul.msk.f32.gmra.mxu2 %vm92_vm1, %v2742_v33  ;;  %810 = vmatmul.f32.gmra.mxu0 %v2741_v38 }
  0xcb   :  { %746 = vmatmul.f32.gmra.mxu1 %v2745_v59 }
  0xcc   :  { %v3535_v1 = vpop.f32.mrf.mxu2  ;;  %v330_v10 = vpop.f32.mrf.mxu1 }
  0xcd   :  { %v331_v11 = vadd.f32 %v330_v10, %v3530_v63 }
  0xce   :  { %v394_v6 = vpop.f32.mrf.mxu0  ;;  %v365_v17 = vpop.f32.mrf.mxu3 }
  0xcf   :  { %v395_v15 = vadd.f32 %v394_v6, %v3524_v60  ;;  %v366_v62 = vadd.f32 %v365_v17, %v331_v11 }
  0xd1   :  { %2759 = vmatmul.msk.f32.gmra.mxu2 %vm92_vm1, %v2744_v43  ;;  %813 = vmatmul.f32.gmra.mxu0 %v2743_v48  ;;  %v451_v12 = vmax.f32 %v366_v62, 0.0 }
  0xd4   :  { %v429_v24 = vpop.f32.mrf.mxu2 }
  0xd5   :  { %v430_v29 = vadd.f32 %v429_v24, %v395_v15  ;;  %v333_v38 = vpop.f32.mrf.mxu1 }
  0xd6   :  { %v397_v33 = vpop.f32.mrf.mxu0  ;;  %v368_v23 = vpop.f32.mrf.mxu3  ;;  %v334_v18 = vadd.f32 %v333_v38, %v3530_v63 }
  0xd7   :  { %v448_v34 = vmax.f32 %v430_v29, 0.0  ;;  %v398_v43 = vadd.f32 %v397_v33, %v3524_v60 }
  0xd8   :  { %v369_v33 = vadd.f32 %v368_v23, %v334_v18 }
  0xd9   :  { %v459_v41 = vmax.f32 %v447_v27, %v448_v34  ;;  %2760 = vmatmul.msk.f32.gmra.mxu2 %vm92_vm1, %v2746_v53  ;;  %816 = vmatmul.f32.gmra.mxu0 %v2745_v59  ;;  %v449_v53 = vmax.f32 %v363_v44, 0.0  ;;  %v247_v59 = vadd.f32 %v3409_v16, %v212_v19  ;;  %v180_v34 = vadd.f32 %v3419_v20, %v145_v42 }
  0xda   :  { %v453_v5 = vmax.f32 %v369_v33, 0.0  ;;  %v218_v44 = vadd.f32 %v3504_v52, %v3524_v60  ;;  %v148_v19 = vadd.f32 %v3488_v45, %v3530_v63  ;;  %v221_v45 = vadd.f32 %v3535_v1, %v3524_v60 }
  0xdb   :  { %v3557_v46 = vmax.f32 %v270_v39, %v459_v41  ;;  %v263_v10 = vmax.f32 %v247_v59, 0.0  ;;  %v264_v47 = vmax.f32 %v180_v34, 0.0 }
  0xdc   :  { %v432_v48 = vpop.f32.mrf.mxu2  ;;  %v253_v52 = vadd.f32 %v3450_v31, %v218_v44 }
  0xdd   :  { %v3563_v49 = vrot.slane %v3557_v46, 2  ;;  %v479_v50 = vrot.slane %v3557_v46, 6  ;;  %903 = vst [vmem:[#allocation1] ss:$4 sm:$0xff] %v3557_v46  ;;  %v433_v54 = vadd.f32 %v432_v48, %v398_v43  ;;  %v272_v29 = vmax.f32 %v262_v14, %v263_v10 }
  0xde   :  { %v400_v56 = vpop.f32.mrf.mxu0  ;;  %v371_v3 = vpop.f32.mrf.mxu3  ;;  %v273_v51 = vmax.f32 %v264_v47, %v265_v35  ;;  %v267_v62 = vmax.f32 %v253_v52, 0.0  ;;  %v256_v10 = vadd.f32 %v3475_v40, %v221_v45 }
  0xdf   :  { %5916 = vst [vmem:[#allocation3_spill] sm:$0xff] %v3563_v49  ;;  %v450_v32 = vmax.f32 %v433_v54, 0.0  ;;  %v401_v61 = vadd.f32 %v400_v56, %v3524_v60 }
  0xe0   :  { %905 = vst [vmem:[#allocation1 + $0x1] ss:$4 sm:$0xff] %v3563_v49  ;;  %v336_v58 = vpop.f32.mrf.mxu1  ;;  %v269_v25 = vmax.f32 %v256_v10, 0.0 }
  0xe1   :  { %907 = vst [vmem:[#allocation1 + $0x2] ss:$4 sm:$0xff] %v479_v50  ;;  %v460_v2 = vmax.f32 %v449_v53, %v450_v32  ;;  %v337_v20 = vadd.f32 %v336_v58, %v3530_v63  ;;  %v183_v32 = vadd.f32 %v3441_v28, %v148_v19  ;;  %v151_v28 = vadd.f32 %v3512_v55, %v3530_v63 }
  0xe3   :  { %v3578_v6 = vmax.f32 %v271_v0, %v460_v2  ;;  %v372_v56 = vadd.f32 %v371_v3, %v337_v20  ;;  %v266_v1 = vmax.f32 %v183_v32, 0.0  ;;  %v186_v14 = vadd.f32 %v3466_v37, %v151_v28  ;;  %v1277_v32 = vld [vmem:[%s5789_s3 + $0x1e0] sm:$0xff] }
  0xe4   :  { %v435_v8 = vpop.f32.mrf.mxu2  ;;  %v1269_v28 = vld [vmem:[%s5789_s3 + $0x1a0] sm:$0xff] }
  0xe5   :  { %5917 = vst [vmem:[#allocation4_spill] sm:$0xff] %v3578_v6  ;;  %v436_v15 = vadd.f32 %v435_v8, %v401_v61  ;;  %v481_v16 = vrot.slane %v3578_v6, 4  ;;  %v3583_v17 = vrot.slane %v3578_v6, 6  ;;  %v455_v0 = vmax.f32 %v372_v56, 0.0 }
  0xe6   :  { %909 = vst [vmem:[#allocation1 + $0x3] ss:$4 sm:$0xff] %v3578_v6  ;;  %v403_v21 = vpop.f32.mrf.mxu0  ;;  %v374_v7 = vpop.f32.mrf.mxu3  ;;  %v274_v18 = vmax.f32 %v266_v1, %v267_v62  ;;  %v268_v33 = vmax.f32 %v186_v14, 0.0  ;;  %v1273_v62 = vld [vmem:[%s5789_s3 + $0x1c0] sm:$0xff]  ;;  %v1267_v1 = vld [vmem:[%s5789_s3 + $0x190] sm:$0xff] }
  0xe7   :  { %5918 = vst [vmem:[#allocation5_spill] sm:$0xff] %v3583_v17  ;;  %v452_v24 = vmax.f32 %v436_v15, 0.0  ;;  %v404_v13 = vadd.f32 %v403_v21, %v3524_v60 }
  0xe8   :  { %911 = vst [vmem:[#allocation1 + $0x20] ss:$4 sm:$0xff] %v481_v16  ;;  %v339_v27 = vpop.f32.mrf.mxu1  ;;  %v275_v34 = vmax.f32 %v268_v33, %v269_v25 }
  0xe9   :  { %913 = vst [vmem:[#allocation1 + $0x21] ss:$4 sm:$0xff] %v3583_v17  ;;  %v461_v30 = vmax.f32 %v451_v12, %v452_v24  ;;  %v340_v31 = vadd.f32 %v339_v27, %v3530_v63 }
  0xeb   :  { %v3594_v36 = vmax.f32 %v272_v29, %v461_v30  ;;  %v375_v15 = vadd.f32 %v374_v7, %v340_v31 }
  0xec   :  { %v438_v38 = vpop.f32.mrf.mxu2 }
  0xed   :  { %5919 = vst [vmem:[#allocation6_spill] sm:$0xff] %v3594_v36  ;;  %v3596_v39 = vld.sshfl [vmem:[#allocation1] sm:$0xff pattern:$0x73625140]  ;;  %v483_v22 = vrot.slane %v3594_v36, 2  ;;  %v3600_v41 = vrot.slane %v3594_v36, 4  ;;  %v439_v43 = vadd.f32 %v438_v38, %v404_v13 }
  0xee   :  { %1399 = vmatmul.f32.vlgmr.msra.gmra.mxu1 %v3596_v39  ;;  %v406_v23 = vpop.f32.mrf.mxu0  ;;  %v3615_v9 = vpop.f32.mrf.mxu3  ;;  %v457_v27 = vmax.f32 %v375_v15, 0.0 }
  0xef   :  { %5920 = vst [vmem:[#allocation7_spill] sm:$0xff] %v3600_v41  ;;  %v454_v48 = vmax.f32 %v439_v43, 0.0  ;;  %v407_v54 = vadd.f32 %v406_v23, %v3524_v60 }
  0xf0   :  { %915 = vst [vmem:[#allocation1 + $0x22] ss:$4 sm:$0xff] %v483_v22  ;;  %v3611_v11 = vpop.f32.mrf.mxu1 }
  0xf1   :  { %917 = vst [vmem:[#allocation1 + $0x23] ss:$4 sm:$0xff] %v3600_v41  ;;  %v462_v53 = vmax.f32 %v453_v5, %v454_v48 }
  0xf3   :  { %v3617_v57 = vmax.f32 %v273_v51, %v462_v53 }
  0xf4   :  { %v441_v58 = vpop.f32.mrf.mxu2 }
  0xf5   :  { %v3623_v59 = vrot.slane %v3617_v57, 2  ;;  %v488_v61 = vrot.slane %v3617_v57, 6  ;;  %920 = vst [vmem:[#allocation1] ss:$4 sm:$0xff] %v3617_v57  ;;  %v442_v2 = vadd.f32 %v441_v58, %v407_v54  ;;  %v1279_v54 = vld [vmem:[%s5789_s3 + $0x1f0] sm:$0xff] }
  0xf6   :  { %v409_v3 = vpop.f32.mrf.mxu0  ;;  %v3640_v21 = vpop.f32.mrf.mxu3  ;;  %1412 = vmatpush.msra.mxu3 %v1279_v54  ;;  %v1275_v58 = vld [vmem:[%s5789_s3 + $0x1d0] sm:$0xff] }
  0xf7   :  { %921 = vst [vmem:[#allocation1 + $0x1] ss:$4 sm:$0xff] %v3623_v59  ;;  %v456_v26 = vmax.f32 %v442_v2, 0.0  ;;  %v410_v12 = vadd.f32 %v409_v3, %v3524_v60  ;;  %v1271_v2 = vld [vmem:[%s5789_s3 + $0x1b0] sm:$0xff] }
  0xf8   :  { %v3630_v4 = vld.sshfl [vmem:[#allocation1 + $0x20] sm:$0xff pattern:$0x73625140]  ;;  %922 = vst [vmem:[#allocation1 + $0x2] ss:$4 sm:$0xff] %v488_v61  ;;  %v3636_v8 = vpop.f32.mrf.mxu1  ;;  %1413 = vmatpush.msra.mxu3 %v1277_v32  ;;  %v544_v32 = vadd.f32 %v3611_v11, %v3530_v63 }
  0xf9   :  { %1402 = vmatmul.f32.gmra.mxu1 %v3630_v4  ;;  %v463_v55 = vmax.f32 %v455_v0, %v456_v26 }
  0xfa   :  { %1414 = vmatpush.msra.mxu3 %v1275_v58 }
  0xfb   :  { %v3643_v42 = vmax.f32 %v274_v18, %v463_v55  ;;  %v1263_v18 = vld [vmem:[%s5789_s3 + $0x170] sm:$0xff]  ;;  %v1261_v55 = vld [vmem:[%s5789_s3 + $0x160] sm:$0xff] }
  0xfc   :  { %v444_v24 = vpop.f32.mrf.mxu2  ;;  %1415 = vmatpush.msra.mxu3 %v1273_v62 }
  0xfd   :  { %v445_v29 = vadd.f32 %v444_v24, %v410_v12  ;;  %v5800_v30 = vrot.slane %v3643_v42, 4  ;;  %v3647_v13 = vrot.slane %v3643_v42, 6  ;;  %923 = vst [vmem:[#allocation1 + $0x3] ss:$4 sm:$0xff] %v3643_v42  ;;  %v1265_v12 = vld [vmem:[%s5789_s3 + $0x180] sm:$0xff]  ;;  %v1259_v24 = vld [vmem:[%s5789_s3 + $0x150] sm:$0xff] }
  0xfe   :  { %v3650_v40 = vpop.f32.mrf.mxu0  ;;  %v3657_v38 = vpop.f32.mrf.mxu3  ;;  %1416 = vmatpush.msra.mxu3 %v1271_v2 }
  0xff   :  { %5921 = vst [vmem:[#allocation8_spill] sm:$0xff] %v3647_v13  ;;  %v458_v7 = vmax.f32 %v445_v29, 0.0  ;;  %v614_v58 = vadd.f32 %v3650_v40, %v3524_v60 }
 0x100   :  { %924 = vst [vmem:[#allocation1 + $0x20] ss:$4 sm:$0xff] %v5800_v30  ;;  %v3654_v37 = vpop.f32.mrf.mxu1  ;;  %1417 = vmatpush.msra.mxu3 %v1269_v28  ;;  %v1249_v28 = vld [vmem:[%s5789_s3 + $0x100] sm:$0xff] }
 0x101   :  { %925 = vst [vmem:[#allocation1 + $0x21] ss:$4 sm:$0xff] %v3647_v13  ;;  %v464_v35 = vmax.f32 %v457_v27, %v458_v7  ;;  %v1257_v27 = vld [vmem:[%s5789_s3 + $0x140] sm:$0xff]  ;;  %v1255_v7 = vld [vmem:[%s5789_s3 + $0x130] sm:$0xff] }
 0x102   :  { %1418 = vmatpush.msra.mxu3 %v1267_v1 }
 0x103   :  { %v3659_v5 = vmax.f32 %v275_v34, %v464_v35  ;;  %v1253_v34 = vld [vmem:[%s5789_s3 + $0x120] sm:$0xff]  ;;  %v1251_v35 = vld [vmem:[%s5789_s3 + $0x110] sm:$0xff] }
 0x104   :  { %v3661_v43 = vpop.f32.mrf.mxu2  ;;  %v3663_v44 = vld.sshfl [vmem:[#allocation1] sm:$0xff pattern:$0x73625140]  ;;  %1419 = vmatpush.msra.mxu3 %v1265_v12  ;;  %v1311_v12 = vld [vmem:[%s5789_s3 + $0x2f0] sm:$0xff] }
 0x105   :  { %5922 = vst [vmem:[#allocation9_spill] sm:$0xff] %v3659_v5  ;;  %v5799_v20 = vrot.slane %v3659_v5, 2  ;;  %v3667_v23 = vrot.slane %v3659_v5, 4  ;;  %1405 = vmatmul.f32.gmra.mxu1 %v3663_v44  ;;  %1441 = vmatpush.msra.mxu0 %v1311_v12  ;;  %v649_v11 = vadd.f32 %v3661_v43, %v614_v58  ;;  %v547_v43 = vadd.f32 %v3636_v8, %v3530_v63 }
 0x106   :  { %v3670_v47 = vpop.f32.mrf.mxu0  ;;  %v3677_v19 = vpop.f32.mrf.mxu3  ;;  %1420 = vmatpush.msra.mxu3 %v1263_v18  ;;  %v579_v18 = vadd.f32 %v3615_v9, %v544_v32 }
 0x107   :  { %926 = vst [vmem:[#allocation1 + $0x22] ss:$4 sm:$0xff] %v5799_v20  ;;  %v582_v20 = vadd.f32 %v3640_v21, %v547_v43 }
 0x108   :  { %927 = vst [vmem:[#allocation1 + $0x23] ss:$4 sm:$0xff] %v3667_v23  ;;  %v3675_v48 = vpop.f32.mrf.mxu1  ;;  %1421 = vmatpush.msra.mxu3 %v1261_v55 }
 0x10a   :  { %1422 = vmatpush.msra.mxu3 %v1259_v24  ;;  %v1309_v24 = vld [vmem:[%s5789_s3 + $0x2e0] sm:$0xff] }
 0x10b   :  { %1442 = vmatpush.msra.mxu0 %v1309_v24 }
 0x10c   :  { %v3679_v51 = vpop.f32.mrf.mxu2  ;;  %1423 = vmatpush.msra.mxu3 %v1257_v27  ;;  %v1307_v27 = vld [vmem:[%s5789_s3 + $0x2d0] sm:$0xff] }
 0x10d   :  { %1443 = vmatpush.msra.mxu0 %v1307_v27  ;;  %v550_v27 = vadd.f32 %v3654_v37, %v3530_v63 }
 0x10e   :  { %v3681_v53 = vpop.f32.mrf.mxu0  ;;  %v3697_v45 = vpop.f32.mrf.mxu3  ;;  %1424 = vmatpush.msra.mxu3 %v1255_v7 }
 0x10f   :  { %v3683_v52 = vld.sshfl [vmem:[#allocation1 + $0x20] sm:$0xff pattern:$0x73625140] }
 0x110   :  { %1408 = vmatmul.f32.gmra.mxu1 %v3683_v52  ;;  %v3689_v56 = vpop.f32.mrf.mxu1  ;;  %1425 = vmatpush.msra.mxu3 %v1253_v34  ;;  %v666_v34 = vmax.f32 %v579_v18, 0.0 }
 0x112   :  { %1426 = vmatpush.msra.mxu3 %v1251_v35  ;;  %v667_v35 = vmax.f32 %v649_v11, 0.0 }
 0x114   :  { %v3699_v31 = vpop.f32.mrf.mxu2  ;;  %1427 = vmatpush.msra.mxu3 %v1249_v28  ;;  %v678_v12 = vmax.f32 %v666_v34, %v667_v35  ;;  %v668_v35 = vmax.f32 %v582_v20, 0.0 }
 0x116   :  { %v3704_v0 = vpop.f32.mrf.mxu0  ;;  %v3719_v10 = vpop.f32.mrf.mxu3 }
 0x118   :  { %v3709_v3 = vpop.f32.mrf.mxu1 }
 0x11c   :  { %v3717_v26 = vpop.f32.mrf.mxu2 }
 0x11e   :  { %v3724_v15 = vpop.f32.mrf.mxu0  ;;  %v767_v33 = vpop.f32.mrf.mxu3 }
 0x120   :  { %v732_v14 = vpop.f32.mrf.mxu1 }
 0x121   :  { %v733_v62 = vadd.f32 %v732_v14, %v3530_v63 }
 0x123   :  { %v768_v55 = vadd.f32 %v767_v33, %v733_v62  ;;  %v617_v33 = vadd.f32 %v3670_v47, %v3524_v60  ;;  %v1343_v47 = vld [vmem:[%s5789_s3 + $0x3f0] sm:$0xff] }
 0x124   :  { %v3735_v25 = vpop.f32.mrf.mxu2  ;;  %1470 = vmatpush.msra.mxu2 %v1343_v47 }
 0x125   :  { %v855_v9 = vmax.f32 %v768_v55, 0.0  ;;  %v652_v18 = vadd.f32 %v3679_v51, %v617_v33  ;;  %v620_v51 = vadd.f32 %v3681_v53, %v3524_v60  ;;  %v585_v53 = vadd.f32 %v3657_v38, %v550_v27 }
 0x126   :  { %v3740_v29 = vpop.f32.mrf.mxu0  ;;  %v770_v14 = vpop.f32.mrf.mxu3 }
 0x128   :  { %v735_v2 = vpop.f32.mrf.mxu1 }
 0x129   :  { %v736_v58 = vadd.f32 %v735_v2, %v3530_v63  ;;  %v1341_v2 = vld [vmem:[%s5789_s3 + $0x3e0] sm:$0xff] }
 0x12a   :  { %1471 = vmatpush.msra.mxu2 %v1341_v2 }
 0x12c   :  { %v3751_v54 = vpop.f32.mrf.mxu2 }
 0x12e   :  { %v802_v1 = vpop.f32.mrf.mxu0  ;;  %v773_v8 = vpop.f32.mrf.mxu3 }
 0x12f   :  { %v803_v40 = vadd.f32 %v802_v1, %v3524_v60 }
 0x130   :  { %v738_v1 = vpop.f32.mrf.mxu1 }
 0x131   :  { %v739_v34 = vadd.f32 %v738_v1, %v3530_v63 }
 0x134   :  { %v837_v7 = vpop.f32.mrf.mxu2 }
 0x135   :  { %v838_v32 = vadd.f32 %v837_v7, %v803_v40  ;;  %v771_v40 = vadd.f32 %v770_v14, %v736_v58  ;;  %v655_v58 = vadd.f32 %v3699_v31, %v620_v51 }
 0x136   :  { %v805_v62 = vpop.f32.mrf.mxu0 }
 0x137   :  { %v856_v28 = vmax.f32 %v838_v32, 0.0  ;;  %v806_v11 = vadd.f32 %v805_v62, %v3524_v60  ;;  %v857_v32 = vmax.f32 %v771_v40, 0.0  ;;  %v671_v47 = vmax.f32 %v655_v58, 0.0 }
 0x139   :  { %v867_v24 = vmax.f32 %v855_v9, %v856_v28  ;;  %v669_v9 = vmax.f32 %v652_v18, 0.0  ;;  %v774_v28 = vadd.f32 %v773_v8, %v739_v34  ;;  %v553_v18 = vadd.f32 %v3675_v48, %v3530_v63 }
 0x13b   :  { %v3781_v55 = vmax.f32 %v678_v12, %v867_v24  ;;  %v741_v12 = vpop.f32.mrf.mxu1  ;;  %v679_v1 = vmax.f32 %v668_v35, %v669_v9  ;;  %v670_v24 = vmax.f32 %v585_v53, 0.0  ;;  %v859_v2 = vmax.f32 %v774_v28, 0.0 }
 0x13c   :  { %v840_v21 = vpop.f32.mrf.mxu2  ;;  %v742_v31 = vadd.f32 %v741_v12, %v3530_v63 }
 0x13d   :  { %v3794_v14 = vrot.slane %v3781_v55, 2  ;;  %v3797_v7 = vrot.slane %v3781_v55, 6  ;;  %938 = vst [vmem:[#allocation1] ss:$4 sm:$0xff] %v3781_v55  ;;  %v841_v43 = vadd.f32 %v840_v21, %v806_v11  ;;  %v623_v11 = vadd.f32 %v3704_v0, %v3524_v60  ;;  %v776_v21 = vpop.f32.mrf.mxu3 }
 0x13e   :  { %v808_v37 = vpop.f32.mrf.mxu0  ;;  %v588_v0 = vadd.f32 %v3677_v19, %v553_v18  ;;  %v680_v9 = vmax.f32 %v670_v24, %v671_v47  ;;  %v556_v24 = vadd.f32 %v3689_v56, %v3530_v63  ;;  %v626_v18 = vadd.f32 %v3724_v15, %v3524_v60 }
 0x13f   :  { %940 = vst [vmem:[#allocation1 + $0x1] ss:$4 sm:$0xff] %v3794_v14  ;;  %v858_v33 = vmax.f32 %v841_v43, 0.0  ;;  %v809_v62 = vadd.f32 %v808_v37, %v3524_v60  ;;  %v658_v35 = vadd.f32 %v3717_v26, %v623_v11  ;;  %v777_v37 = vadd.f32 %v776_v21, %v742_v31 }
 0x140   :  { %942 = vst [vmem:[#allocation1 + $0x2] ss:$4 sm:$0xff] %v3797_v7  ;;  %v672_v58 = vmax.f32 %v588_v0, 0.0  ;;  %v591_v21 = vadd.f32 %v3697_v45, %v556_v24  ;;  %v661_v56 = vadd.f32 %v3735_v25, %v626_v18  ;;  %v629_v24 = vadd.f32 %v3740_v29, %v3524_v60  ;;  %v1303_v18 = vld [vmem:[%s5789_s3 + $0x2b0] sm:$0xff] }
 0x141   :  { %v868_v20 = vmax.f32 %v857_v32, %v858_v33  ;;  %v3887_v29 = vrot.slane %v3557_v46, 4 }
 0x143   :  { %v3810_v40 = vmax.f32 %v679_v1, %v868_v20  ;;  %v744_v33 = vpop.f32.mrf.mxu1  ;;  %v861_v1 = vmax.f32 %v777_v37, 0.0  ;;  %5927 = vst [vmem:[#allocation12_spill] sm:$0xff] %v3887_v29 }
 0x144   :  { %v843_v38 = vpop.f32.mrf.mxu2  ;;  %v745_v11 = vadd.f32 %v744_v33, %v3530_v63 }
 0x145   :  { %v844_v27 = vadd.f32 %v843_v38, %v809_v62  ;;  %v3814_v8 = vrot.slane %v3810_v40, 4  ;;  %v3817_v51 = vrot.slane %v3810_v40, 6  ;;  %944 = vst [vmem:[#allocation1 + $0x3] ss:$4 sm:$0xff] %v3810_v40  ;;  %v673_v62 = vmax.f32 %v658_v35, 0.0 }
 0x146   :  { %v811_v48 = vpop.f32.mrf.mxu0 }
 0x147   :  { %v860_v34 = vmax.f32 %v844_v27, 0.0  ;;  %946 = vst [vmem:[#allocation1 + $0x20] ss:$4 sm:$0xff] %v3814_v8  ;;  %v812_v43 = vadd.f32 %v811_v48, %v3524_v60  ;;  %v681_v27 = vmax.f32 %v672_v58, %v673_v62 }
 0x148   :  { %948 = vst [vmem:[#allocation1 + $0x21] ss:$4 sm:$0xff] %v3817_v51 }
 0x149   :  { %v869_v32 = vmax.f32 %v859_v2, %v860_v34  ;;  %v779_v2 = vpop.f32.mrf.mxu3 }
 0x14a   :  { %v780_v15 = vadd.f32 %v779_v2, %v745_v11  ;;  %v1301_v2 = vld [vmem:[%s5789_s3 + $0x2a0] sm:$0xff] }
 0x14b   :  { %v3825_v53 = vmax.f32 %v680_v9, %v869_v32  ;;  %v674_v32 = vmax.f32 %v591_v21, 0.0  ;;  %v989_v21 = vrot.slane %v3578_v6, 7 }
 0x14c   :  { %v846_v28 = vpop.f32.mrf.mxu2  ;;  %v3827_v12 = vld.sshfl [vmem:[#allocation1] sm:$0xff pattern:$0x73625140]  ;;  %v863_v37 = vmax.f32 %v780_v15, 0.0  ;;  %v664_v15 = vadd.f32 %v3751_v54, %v629_v24 }
 0x14d   :  { %5923 = vst [vmem:[#allocation10_spill] sm:$0xff] %v3825_v53  ;;  %v3830_v19 = vrot.slane %v3825_v53, 2  ;;  %v3833_v26 = vrot.slane %v3825_v53, 4  ;;  %v847_v20 = vadd.f32 %v846_v28, %v812_v43  ;;  %1428 = vmatmul.f32.vlgmr.msra.gmra.mxu3 %v3827_v12  ;;  %v675_v43 = vmax.f32 %v661_v56, 0.0  ;;  %v1305_v28 = vld [vmem:[%s5789_s3 + $0x2c0] sm:$0xff]  ;;  %v4610_v56 = vld [vmem:[%s5789_s3 + $0x128] sm:$0xff] }
 0x14e   :  { %v814_v47 = vpop.f32.mrf.mxu0  ;;  %1444 = vmatpush.msra.mxu0 %v1305_v28  ;;  %v2762_v28 = vrot.slane %v479_v50, 9  ;;  %6018 = vst [vmem:[#allocation93_spill] sm:$0xff] %v4610_v56 }
 0x14f   :  { %5924 = vst [vmem:[#allocation11_spill] sm:$0xff] %v3833_v26  ;;  %v862_v38 = vmax.f32 %v847_v20, 0.0  ;;  %v815_v48 = vadd.f32 %v814_v47, %v3524_v60  ;;  %v682_v58 = vmax.f32 %v674_v32, %v675_v43  ;;  %v559_v20 = vadd.f32 %v3709_v3, %v3530_v63  ;;  %v1246_v32 = vld [vmem:[%s5789_s3 + $0xe8] sm:$0xff] }
 0x150   :  { %950 = vst [vmem:[#allocation1 + $0x22] ss:$4 sm:$0xff] %v3830_v19  ;;  %1445 = vmatpush.msra.mxu0 %v1303_v18  ;;  %v2761_v43 = vrot.slane %v3557_v46, 9  ;;  %v3937_v46 = vsel %vm3903_vm8, %v2762_v28, %v989_v21  ;;  %v1297_v28 = vld [vmem:[%s5789_s3 + $0x280] sm:$0xff] }
 0x151   :  { %952 = vst [vmem:[#allocation1 + $0x23] ss:$4 sm:$0xff] %v3833_v26  ;;  %v870_v31 = vmax.f32 %v861_v1, %v862_v38  ;;  %v982_v38 = vrot.slane %v3563_v49, 7  ;;  %v782_v18 = vpop.f32.mrf.mxu3 }
 0x152   :  { %1446 = vmatpush.msra.mxu0 %v1301_v2  ;;  %5933 = vst [vmem:[#allocation16_spill] sm:$0xff] %v3937_v46 }
 0x153   :  { %v3846_v34 = vmax.f32 %v681_v27, %v870_v31  ;;  %v1248_v27 = vld [vmem:[%s5789_s3 + $0xf8] sm:$0xff]  ;;  %v3896_v31 = vrot.slane %v3578_v6, 2 }
 0x154   :  { %v849_v0 = vpop.f32.mrf.mxu2  ;;  %1528 = vmatpush.msrb.mxu3 %v1248_v27  ;;  %v677_v27 = vmax.f32 %v664_v15, 0.0  ;;  %v1010_v15 = vrot.slane %v3623_v59, 7 }
 0x155   :  { %v3849_v35 = vrot.slane %v3846_v34, 2  ;;  %v3852_v9 = vrot.slane %v3846_v34, 6  ;;  %955 = vst [vmem:[#allocation1] ss:$4 sm:$0xff] %v3846_v34  ;;  %v850_v45 = vadd.f32 %v849_v0, %v815_v48  ;;  %v594_v48 = vadd.f32 %v3719_v10, %v559_v20  ;;  %v1299_v0 = vld [vmem:[%s5789_s3 + $0x290] sm:$0xff] }
 0x156   :  { %5928 = vst [vmem:[#allocation13_spill] sm:$0xff] %v3896_v31  ;;  %1447 = vmatpush.msra.mxu0 %v1299_v0  ;;  %1529 = vmatpush.msrb.mxu3 %v1246_v32  ;;  %v985_v10 = vrot.slane %v3887_v29, 7  ;;  %v991_v20 = vrot.slane %v989_v21, 2  ;;  %v992_v24 = vrot.slane %v3896_v31, 7  ;;  %v3950_v21 = vld [vmem:[%s5789_s3 + $0x3d0] sm:$0xff] }
 0x157   :  { %956 = vst [vmem:[#allocation1 + $0x1] ss:$4 sm:$0xff] %v3849_v35  ;;  %v864_v25 = vmax.f32 %v850_v45, 0.0  ;;  %v747_v45 = vpop.f32.mrf.mxu1  ;;  %v676_v2 = vmax.f32 %v594_v48, 0.0  ;;  %1472 = vmatpush.msra.mxu2 %v3950_v21 }
 0x158   :  { %v3855_v33 = vld.sshfl [vmem:[#allocation1 + $0x20] sm:$0xff pattern:$0x73625140]  ;;  %957 = vst [vmem:[#allocation1 + $0x2] ss:$4 sm:$0xff] %v3852_v9  ;;  %v748_v54 = vadd.f32 %v747_v45, %v3530_v63  ;;  %v3942_v48 = vsel %vm3903_vm8, %v991_v20, %v992_v24  ;;  %v3953_v45 = vrot.slane %v3617_v57, 4  ;;  %1448 = vmatpush.msra.mxu0 %v1297_v28 }
 0x159   :  { %1431 = vmatmul.f32.gmra.mxu3 %v3855_v33  ;;  %v871_v62 = vmax.f32 %v863_v37, %v864_v25  ;;  %v984_v37 = vrot.slane %v982_v38, 2  ;;  %v817_v25 = vpop.f32.mrf.mxu0  ;;  %5934 = vst [vmem:[#allocation17_spill] sm:$0xff] %v3942_v48  ;;  %v1244_v20 = vld [vmem:[%s5789_s3 + $0xd8] sm:$0xff]  ;;  %v1012_v24 = vrot.slane %v1010_v15, 2  ;;  %v1293_v28 = vld [vmem:[%s5789_s3 + $0x260] sm:$0xff] }
 0x15a   :  { %v783_v32 = vadd.f32 %v782_v18, %v748_v54  ;;  %5935 = vst [vmem:[#allocation18_spill] sm:$0xff] %v3950_v21  ;;  %v3963_v54 = vld [vmem:[%s5789_s3 + $0x3c0] sm:$0xff]  ;;  %v3977_v18 = vld [vmem:[%s5789_s3 + $0x3b0] sm:$0xff]  ;;  %1530 = vmatpush.msrb.mxu3 %v1244_v20 }
 0x15b   :  { %v3864_v1 = vmax.f32 %v682_v58, %v871_v62  ;;  %v818_v58 = vadd.f32 %v817_v25, %v3524_v60  ;;  %v3922_v62 = vsel %vm3903_vm8, %v2761_v43, %v982_v38  ;;  %v3931_v60 = vsel %vm3903_vm8, %v984_v37, %v985_v10  ;;  %5936 = vst [vmem:[#allocation19_spill] sm:$0xff] %v3963_v54 }
 0x15c   :  { %5931 = vst [vmem:[#allocation14_spill] sm:$0xff] %v3922_v62  ;;  %v852_v11 = vpop.f32.mrf.mxu2  ;;  %v865_v50 = vmax.f32 %v783_v32, 0.0  ;;  %v683_v43 = vmax.f32 %v676_v2, %v677_v27  ;;  %v3957_v25 = vrot.slane %v3643_v42, 2  ;;  %v1017_v10 = vrot.slane %v3643_v42, 7  ;;  %1473 = vmatpush.msra.mxu2 %v3963_v54  ;;  %v1295_v27 = vld [vmem:[%s5789_s3 + $0x270] sm:$0xff] }
 0x15d   :  { %v3880_v47 = vrot.slane %v3864_v1, 4  ;;  %v3883_v3 = vrot.slane %v3864_v1, 6  ;;  %958 = vst [vmem:[#allocation1 + $0x3] ss:$4 sm:$0xff] %v3864_v1  ;;  %v853_v63 = vadd.f32 %v852_v11, %v818_v58  ;;  %v2765_v32 = vrot.slane %v3617_v57, 9  ;;  %1449 = vmatpush.msra.mxu0 %v1295_v27  ;;  %v1240_v57 = vld [vmem:[%s5789_s3 + $0xb8] sm:$0xff] }
 0x15e   :  { %5932 = vst [vmem:[#allocation15_spill] sm:$0xff] %v3931_v60  ;;  %1474 = vmatpush.msra.mxu2 %v3977_v18 }
 0x15f   :  { %959 = vst [vmem:[#allocation1 + $0x20] ss:$4 sm:$0xff] %v3880_v47  ;;  %v866_v38 = vmax.f32 %v853_v63, 0.0  ;;  %v1013_v63 = vrot.slane %v3953_v45, 7  ;;  %v4003_v20 = vsel %vm3903_vm8, %v2765_v32, %v1010_v15  ;;  %1450 = vmatpush.msra.mxu0 %v1293_v28  ;;  %v1291_v15 = vld [vmem:[%s5789_s3 + $0x250] sm:$0xff]  ;;  %v1238_v32 = vld [vmem:[%s5789_s3 + $0xa8] sm:$0xff] }
 0x160   :  { %960 = vst [vmem:[#allocation1 + $0x21] ss:$4 sm:$0xff] %v3883_v3  ;;  %v996_v28 = vrot.slane %v3583_v17, 7 }
 0x161   :  { %v872_v37 = vmax.f32 %v865_v50, %v866_v38  ;;  %5938 = vst [vmem:[#allocation21_spill] sm:$0xff] %v3977_v18  ;;  %v1242_v50 = vld [vmem:[%s5789_s3 + $0xc8] sm:$0xff]  ;;  %v2766_v38 = vrot.slane %v488_v61, 9  ;;  %v1003_v61 = vrot.slane %v3600_v41, 7  ;;  %1451 = vmatpush.msra.mxu0 %v1291_v15  ;;  %v1073_v15 = vrot.slane %v3794_v14, 7 }
 0x162   :  { %1531 = vmatpush.msrb.mxu3 %v1242_v50  ;;  %5940 = vst [vmem:[#allocation23_spill] sm:$0xff] %v4003_v20  ;;  %v4014_v50 = vsel %vm3903_vm8, %v1012_v24, %v1013_v63  ;;  %v2763_v24 = vrot.slane %v481_v16, 9  ;;  %v4032_v63 = vrot.slane %v3594_v36, 6  ;;  %v999_v16 = vrot.slane %v3594_v36, 7  ;;  %v1234_v18 = vld [vmem:[%s5789_s3 + $0x88] sm:$0xff] }
 0x163   :  { %v3965_v58 = vmax.f32 %v683_v43, %v872_v37  ;;  %v1019_v43 = vrot.slane %v1017_v10, 2  ;;  %v1020_v37 = vrot.slane %v3957_v25, 7  ;;  %5941 = vst [vmem:[#allocation24_spill] sm:$0xff] %v4014_v50  ;;  %v4026_v30 = vsel %vm3903_vm8, %v2766_v38, %v1017_v10  ;;  %v1289_v10 = vld [vmem:[%s5789_s3 + $0x240] sm:$0xff]  ;;  %v1236_v38 = vld [vmem:[%s5789_s3 + $0x98] sm:$0xff] }
 0x164   :  { %v3927_v0 = vld.sshfl [vmem:[#allocation1] sm:$0xff pattern:$0x73625140]  ;;  %1532 = vmatpush.msrb.mxu3 %v1240_v57  ;;  %5942 = vst [vmem:[#allocation25_spill] sm:$0xff] %v4026_v30  ;;  %1452 = vmatpush.msra.mxu0 %v1289_v10  ;;  %v998_v54 = vrot.slane %v996_v28, 2  ;;  %v1080_v10 = vrot.slane %v3810_v40, 7 }
 0x165   :  { %1036 = vst [vmem:[#allocation1] ss:$4 sm:$0xff] %v3922_v62  ;;  %1434 = vmatmul.f32.gmra.mxu3 %v3927_v0  ;;  %v3980_v11 = vrot.slane %v3965_v58, 2  ;;  %v3983_v2 = vrot.slane %v3965_v58, 4  ;;  %v4036_v57 = vsel %vm3903_vm8, %v1019_v43, %v1020_v37  ;;  %v2764_v43 = vrot.slane %v483_v22, 9  ;;  %v4259_v62 = vld [vmem:[%s5789_s3 + $0x1d8] sm:$0xff] }
 0x166   :  { %1038 = vst [vmem:[#allocation1 + $0x1] ss:$4 sm:$0xff] %v3931_v60  ;;  %1533 = vmatpush.msrb.mxu3 %v1238_v32  ;;  %v1005_v37 = vrot.slane %v1003_v61, 2  ;;  %v1287_v32 = vld [vmem:[%s5789_s3 + $0x230] sm:$0xff]  ;;  %v4061_v22 = vsel %vm3903_vm8, %v2763_v24, %v996_v28  ;;  %v1075_v28 = vrot.slane %v1073_v15, 2  ;;  %v1232_v24 = vld [vmem:[%s5789_s3 + $0x78] sm:$0xff] }
 0x167   :  { %1040 = vst [vmem:[#allocation1 + $0x2] ss:$4 sm:$0xff] %v3937_v46  ;;  %1453 = vmatpush.msra.mxu0 %v1287_v32  ;;  %v4076_v32 = vsel %vm3903_vm8, %v998_v54, %v999_v16  ;;  %v2769_v54 = vrot.slane %v3781_v55, 9  ;;  %v1283_v16 = vld [vmem:[%s5789_s3 + $0x210] sm:$0xff]  ;;  %v2773_v46 = vrot.slane %v3846_v34, 9 }
 0x168   :  { %1042 = vst [vmem:[#allocation1 + $0x3] ss:$4 sm:$0xff] %v3942_v48  ;;  %1534 = vmatpush.msrb.mxu3 %v1236_v38  ;;  %v1006_v38 = vrot.slane %v4032_v63, 7  ;;  %v4199_v48 = vld [vmem:[%s5789_s3 + $0x350] sm:$0xff] }
 0x169   :  { %5937 = vst [vmem:[#allocation20_spill] sm:$0xff] %v3965_v58 }
 0x16a   :  { %5939 = vst [vmem:[#allocation22_spill] sm:$0xff] %v3983_v2  ;;  %1535 = vmatpush.msrb.mxu3 %v1234_v18  ;;  %v4085_v18 = vsel %vm3903_vm8, %v2764_v43, %v1003_v61  ;;  %v1230_v61 = vld [vmem:[%s5789_s3 + $0x68] sm:$0xff]  ;;  %v5951_v43 = vrot.slane %v3781_v55, 4 }
 0x16b   :  { %961 = vst [vmem:[#allocation1 + $0x22] ss:$4 sm:$0xff] %v3980_v11 }
 0x16c   :  { %962 = vst [vmem:[#allocation1 + $0x23] ss:$4 sm:$0xff] %v3983_v2  ;;  %1536 = vmatpush.msrb.mxu3 %v1232_v24  ;;  %v4113_v24 = vsel %vm3903_vm8, %v2769_v54, %v1073_v15  ;;  %v1281_v15 = vld [vmem:[%s5789_s3 + $0x200] sm:$0xff]  ;;  %v1228_v54 = vld [vmem:[%s5789_s3 + $0x58] sm:$0xff] }
 0x16d   :  { %5943 = vst [vmem:[#allocation26_spill] sm:$0xff] %v4036_v57 }
 0x16e   :  { %5944 = vst [vmem:[#allocation27_spill] sm:$0xff] %v4061_v22  ;;  %1537 = vmatpush.msrb.mxu3 %v1230_v61  ;;  %v4146_v61 = vld [vmem:[%s5789_s3 + $0x370] sm:$0xff] }
 0x16f   :  { %v4005_v27 = vld.sshfl [vmem:[#allocation1] sm:$0xff pattern:$0x73625140]  ;;  %5947 = vst [vmem:[#allocation30_spill] sm:$0xff] %v4076_v32 }
 0x170   :  { %1053 = vst [vmem:[#allocation1] ss:$4 sm:$0xff] %v4003_v20  ;;  %v4069_v20 = vld [vmem:[%s5789_s3 + $0x3a0] sm:$0xff]  ;;  %1538 = vmatpush.msrb.mxu3 %v1228_v54  ;;  %v1101_v54 = vrot.slane %v3849_v35, 7 }
 0x171   :  { %1054 = vst [vmem:[#allocation1 + $0x1] ss:$4 sm:$0xff] %v4014_v50  ;;  %v1285_v50 = vld [vmem:[%s5789_s3 + $0x220] sm:$0xff]  ;;  %1475 = vmatpush.msra.mxu2 %v4069_v20 }
 0x172   :  { %1055 = vst [vmem:[#allocation1 + $0x2] ss:$4 sm:$0xff] %v4026_v30  ;;  %1454 = vmatpush.msra.mxu0 %v1285_v50  ;;  %v4089_v30 = vsel %vm3903_vm8, %v1005_v37, %v1006_v38  ;;  %v4096_v50 = vld [vmem:[%s5789_s3 + $0x390] sm:$0xff]  ;;  %v1076_v37 = vrot.slane %v5951_v43, 7  ;;  %v2770_v38 = vrot.slane %v3797_v7, 9  ;;  %v4121_v43 = vld [vmem:[%s5789_s3 + $0x380] sm:$0xff] }
 0x173   :  { %1056 = vst [vmem:[#allocation1 + $0x3] ss:$4 sm:$0xff] %v4036_v57  ;;  %v4064_v57 = vld.sshfl [vmem:[#allocation1 + $0x20] sm:$0xff pattern:$0x73625140]  ;;  %1476 = vmatpush.msra.mxu2 %v4096_v50 }
 0x174   :  { %5945 = vst [vmem:[#allocation28_spill] sm:$0xff] %v4064_v57  ;;  %1455 = vmatpush.msra.mxu0 %v1283_v16  ;;  %1437 = vmatmul.f32.gmra.mxu3 %v4064_v57  ;;  %v1031_v16 = vrot.slane %v3667_v23, 7 }
 0x175   :  { %5946 = vst [vmem:[#allocation29_spill] sm:$0xff] %v4069_v20  ;;  %v1082_v20 = vrot.slane %v1080_v10, 2  ;;  %1477 = vmatpush.msra.mxu2 %v4121_v43 }
 0x176   :  { %1044 = vst [vmem:[#allocation1 + $0x20] ss:$4 sm:$0xff] %v4061_v22  ;;  %1456 = vmatpush.msra.mxu0 %v1281_v15 }
 0x177   :  { %5948 = vst [vmem:[#allocation31_spill] sm:$0xff] %v4085_v18  ;;  %1478 = vmatpush.msra.mxu2 %v4146_v61  ;;  %1457 = vmatmul.f32.vlgmr.msra.gmra.mxu0 %v4005_v27 }
 0x178   :  { %5949 = vst [vmem:[#allocation32_spill] sm:$0xff] %v4089_v30 }
 0x179   :  { %1046 = vst [vmem:[#allocation1 + $0x21] ss:$4 sm:$0xff] %v4076_v32  ;;  %v5952_v32 = vrot.slane %v3810_v40, 2 }
 0x17a   :  { %5950 = vst [vmem:[#allocation33_spill] sm:$0xff] %v4096_v50  ;;  %v4115_v21 = vld.sshfl [vmem:[#allocation1] sm:$0xff pattern:$0x73625140]  ;;  %v4126_v50 = vsel %vm3903_vm8, %v1075_v28, %v1076_v37  ;;  %v4140_v28 = vsel %vm3903_vm8, %v2770_v38, %v1080_v10  ;;  %v4151_v37 = vld [vmem:[%s5789_s3 + $0x4f0] sm:$0xff]  ;;  %v5959_v10 = vrot.slane %v3643_v42, 4 }
 0x17b   :  { %v1083_v22 = vrot.slane %v5952_v32, 7  ;;  %1048 = vst [vmem:[#allocation1 + $0x22] ss:$4 sm:$0xff] %v4085_v18  ;;  %v1024_v32 = vrot.slane %v3647_v13, 7  ;;  %1499 = vmatpush.msrb.mxu1 %v4151_v37 }
 0x17c   :  { %5953 = vst [vmem:[#allocation34_spill] sm:$0xff] %v4113_v24  ;;  %v2767_v38 = vrot.slane %v5959_v10, 9  ;;  %v4174_v10 = vld [vmem:[%s5789_s3 + $0x360] sm:$0xff] }
 0x17d   :  { %1050 = vst [vmem:[#allocation1 + $0x23] ss:$4 sm:$0xff] %v4089_v30  ;;  %v4164_v15 = vsel %vm3903_vm8, %v1082_v20, %v1083_v22  ;;  %v4180_v20 = vld [vmem:[%s5789_s3 + $0x4e0] sm:$0xff]  ;;  %v1224_v22 = vld [vmem:[%s5789_s3 + $0x38] sm:$0xff]  ;;  %v1108_v30 = vrot.slane %v3864_v1, 7  ;;  %1479 = vmatpush.msra.mxu2 %v4174_v10  ;;  %v1026_v18 = vrot.slane %v1024_v32, 2 }
 0x17e   :  { %5954 = vst [vmem:[#allocation35_spill] sm:$0xff] %v4121_v43  ;;  %v1226_v43 = vld [vmem:[%s5789_s3 + $0x48] sm:$0xff]  ;;  %1500 = vmatpush.msrb.mxu1 %v4180_v20  ;;  %v4212_v57 = vsel %vm3903_vm8, %v2767_v38, %v1024_v32  ;;  %v1103_v32 = vrot.slane %v1101_v54, 2  ;;  %v4233_v38 = vld [vmem:[%s5789_s3 + $0x340] sm:$0xff] }
 0x17f   :  { %5955 = vst [vmem:[#allocation36_spill] sm:$0xff] %v4126_v50  ;;  %1539 = vmatpush.msrb.mxu3 %v1226_v43  ;;  %v4193_v43 = vld [vmem:[%s5789_s3 + $0x1f8] sm:$0xff]  ;;  %1480 = vmatpush.msra.mxu2 %v4199_v48 }
 0x180   :  { %1127 = vst [vmem:[#allocation1] ss:$4 sm:$0xff] %v4113_v24  ;;  %v1027_v24 = vrot.slane %v3659_v5, 7  ;;  %1557 = vmatpush.msrb.mxu0 %v4193_v43 }
 0x181   :  { %5956 = vst [vmem:[#allocation37_spill] sm:$0xff] %v4140_v28  ;;  %1540 = vmatpush.msrb.mxu3 %v1224_v22  ;;  %v4223_v22 = vld [vmem:[%s5789_s3 + $0x1e8] sm:$0xff]  ;;  %1481 = vmatpush.msra.mxu2 %v4233_v38 }
 0x182   :  { %1129 = vst [vmem:[#allocation1 + $0x1] ss:$4 sm:$0xff] %v4126_v50  ;;  %v4159_v50 = vrot.slane %v3659_v5, 6  ;;  %1558 = vmatpush.msrb.mxu0 %v4223_v22 }
 0x183   :  { %5957 = vst [vmem:[#allocation38_spill] sm:$0xff] %v4146_v61  ;;  %v5964_v61 = vrot.slane %v3659_v5, 2 }
 0x184   :  { %5958 = vst [vmem:[#allocation39_spill] sm:$0xff] %v4151_v37  ;;  %v1033_v37 = vrot.slane %v1031_v16, 2  ;;  %v4216_v60 = vld.sshfl [vmem:[#allocation1 + $0x20] sm:$0xff pattern:$0x73625140]  ;;  %1559 = vmatpush.msrb.mxu0 %v4259_v62 }
 0x185   :  { %5960 = vst [vmem:[#allocation40_spill] sm:$0xff] %v4159_v50  ;;  %1460 = vmatmul.f32.gmra.mxu0 %v4216_v60 }
 0x186   :  { %5961 = vst [vmem:[#allocation41_spill] sm:$0xff] %v4164_v15 }
 0x187   :  { %1131 = vst [vmem:[#allocation1 + $0x2] ss:$4 sm:$0xff] %v4140_v28  ;;  %v1222_v28 = vld [vmem:[%s5789_s3 + $0x28] sm:$0xff] }
 0x188   :  { %1133 = vst [vmem:[#allocation1 + $0x3] ss:$4 sm:$0xff] %v4164_v15  ;;  %v2768_v15 = vrot.slane %v5964_v61, 9  ;;  %v4205_v61 = vld [vmem:[%s5789_s3 + $0x4d0] sm:$0xff]  ;;  %1541 = vmatpush.msrb.mxu3 %v1222_v28  ;;  %v1110_v28 = vrot.slane %v1108_v30, 2 }
 0x189   :  { %5962 = vst [vmem:[#allocation42_spill] sm:$0xff] %v4174_v10  ;;  %v1034_v10 = vrot.slane %v4159_v50, 7  ;;  %1501 = vmatpush.msrb.mxu1 %v4205_v61 }
 0x18a   :  { %5963 = vst [vmem:[#allocation43_spill] sm:$0xff] %v4180_v20  ;;  %v4227_v20 = vsel %vm3903_vm8, %v1026_v18, %v1027_v24  ;;  %v4244_v18 = vld [vmem:[%s5789_s3 + $0x18] sm:$0xff]  ;;  %v4248_v24 = vsel %vm3903_vm8, %v2768_v15, %v1031_v16 }
 0x18b   :  { %5965 = vst [vmem:[#allocation44_spill] sm:$0xff] %v4193_v43  ;;  %v4239_v43 = vld [vmem:[%s5789_s3 + $0x4c0] sm:$0xff]  ;;  %v4263_v16 = vsel %vm3903_vm8, %v1033_v37, %v1034_v10  ;;  %1542 = vmatpush.msrb.mxu3 %v4244_v18  ;;  %v4283_v37 = vld [vmem:[%s5789_s3 + $0x8] sm:$0xff]  ;;  %v4287_v10 = vsel %vm3903_vm8, %v2773_v46, %v1101_v54 }
 0x18c   :  { %5966 = vst [vmem:[#allocation45_spill] sm:$0xff] %v4199_v48  ;;  %v5974_v48 = vrot.slane %v3846_v34, 4  ;;  %1502 = vmatpush.msrb.mxu1 %v4239_v43  ;;  %v4307_v46 = vld [vmem:[%s5789_s3 + $0x320] sm:$0xff] }
 0x18d   :  { %5967 = vst [vmem:[#allocation46_spill] sm:$0xff] %v4205_v61  ;;  %v2774_v61 = vrot.slane %v3852_v9, 9  ;;  %1543 = vmatpush.msrb.mxu3 %v4283_v37  ;;  %v4314_v54 = vld [vmem:[%s5789_s3 + $0x4a0] sm:$0xff]  ;;  %1463 = vmatmul.f32.gmra.mxu0 %v4115_v21 }
 0x18e   :  { %5968 = vst [vmem:[#allocation47_spill] sm:$0xff] %v4212_v57  ;;  %1544 = vmatmul.f32.vlgmr.msrb.gmra.mxu3 %v3596_v39  ;;  %v4366_v39 = vld [vmem:[%s5789_s3 + $0x4e8] sm:$0xff] }
 0x18f   :  { %5969 = vst [vmem:[#allocation48_spill] sm:$0xff] %v4223_v22  ;;  %v4278_v22 = vld [vmem:[%s5789_s3 + $0x4b0] sm:$0xff] }
 0x190   :  { %5970 = vst [vmem:[#allocation49_spill] sm:$0xff] %v4227_v20  ;;  %1503 = vmatpush.msrb.mxu1 %v4278_v22 }
 0x191   :  { %1057 = vst [vmem:[#allocation1 + $0x20] ss:$4 sm:$0xff] %v4212_v57  ;;  %v1104_v57 = vrot.slane %v5974_v48, 7  ;;  %v5977_v48 = vrot.slane %v3864_v1, 2 }
 0x192   :  { %5971 = vst [vmem:[#allocation50_spill] sm:$0xff] %v4233_v38  ;;  %v4271_v38 = vld [vmem:[%s5789_s3 + $0x330] sm:$0xff]  ;;  %1504 = vmatpush.msrb.mxu1 %v4314_v54 }
 0x193   :  { %5972 = vst [vmem:[#allocation51_spill] sm:$0xff] %v4244_v18  ;;  %v1111_v15 = vrot.slane %v5977_v48, 7  ;;  %v4289_v48 = vld.sshfl [vmem:[#allocation1] sm:$0xff pattern:$0x73625140]  ;;  %1482 = vmatpush.msra.mxu2 %v4271_v38  ;;  %v4297_v18 = vld [vmem:[%s5789_s3 + $0x1c8] sm:$0xff] }
 0x194   :  { %5973 = vst [vmem:[#allocation52_spill] sm:$0xff] %v4248_v24  ;;  %1560 = vmatpush.msrb.mxu0 %v4297_v18 }
 0x195   :  { %1058 = vst [vmem:[#allocation1 + $0x21] ss:$4 sm:$0xff] %v4227_v20  ;;  %1483 = vmatpush.msra.mxu2 %v4307_v46 }
 0x196   :  { %5975 = vst [vmem:[#allocation53_spill] sm:$0xff] %v4259_v62  ;;  %v1094_v62 = vrot.slane %v3833_v26, 7  ;;  %1547 = vmatmul.f32.gmra.mxu3 %v3630_v4  ;;  %v4490_v4 = vld [vmem:[%s5789_s3 + $0x4a8] sm:$0xff] }
 0x197   :  { %5976 = vst [vmem:[#allocation54_spill] sm:$0xff] %v4263_v16 }
 0x198   :  { %1059 = vst [vmem:[#allocation1 + $0x22] ss:$4 sm:$0xff] %v4248_v24  ;;  %v4301_v24 = vsel %vm3903_vm8, %v1103_v32, %v1104_v57  ;;  %v4319_v57 = vld [vmem:[%s5789_s3 + $0x1b8] sm:$0xff]  ;;  %v1087_v32 = vrot.slane %v3817_v51, 7 }
 0x199   :  { %5978 = vst [vmem:[#allocation55_spill] sm:$0xff] %v4271_v38  ;;  %v4325_v38 = vsel %vm3903_vm8, %v2774_v61, %v1108_v30  ;;  %v4346_v30 = vld [vmem:[%s5789_s3 + $0x310] sm:$0xff]  ;;  %1561 = vmatpush.msrb.mxu0 %v4319_v57 }
 0x19a   :  { %5979 = vst [vmem:[#allocation56_spill] sm:$0xff] %v4283_v37  ;;  %v4333_v37 = vld [vmem:[%s5789_s3 + $0x4f8] sm:$0xff]  ;;  %v4351_v61 = vld [vmem:[%s5789_s3 + $0x490] sm:$0xff]  ;;  %1484 = vmatpush.msra.mxu2 %v4346_v30 }
 0x19b   :  { %5980 = vst [vmem:[#allocation57_spill] sm:$0xff] %v4287_v10  ;;  %1644 = vmatpush.msra.mxu3 %v4333_v37  ;;  %1505 = vmatpush.msrb.mxu1 %v4351_v61 }
 0x19c   :  { %1060 = vst [vmem:[#allocation1 + $0x23] ss:$4 sm:$0xff] %v4263_v16  ;;  %v4338_v16 = vsel %vm3903_vm8, %v1110_v28, %v1111_v15  ;;  %v4356_v28 = vld [vmem:[%s5789_s3 + $0x1a8] sm:$0xff]  ;;  %v4374_v15 = vld [vmem:[%s5789_s3 + $0x300] sm:$0xff] }
 0x19d   :  { %5981 = vst [vmem:[#allocation58_spill] sm:$0xff] %v4297_v18  ;;  %v1090_v18 = vrot.slane %v3825_v53, 7  ;;  %1562 = vmatpush.msrb.mxu0 %v4356_v28  ;;  %1645 = vmatpush.msra.mxu3 %v4366_v39 }
 0x19e   :  { %5982 = vst [vmem:[#allocation59_spill] sm:$0xff] %v4301_v24  ;;  %1485 = vmatpush.msra.mxu2 %v4374_v15  ;;  %1550 = vmatmul.f32.gmra.mxu3 %v3663_v44  ;;  %v4620_v44 = vld [vmem:[%s5789_s3 + $0x468] sm:$0xff] }
 0x19f   :  { %1144 = vst [vmem:[#allocation1] ss:$4 sm:$0xff] %v4287_v10  ;;  %v2771_v10 = vrot.slane %v3814_v8, 9  ;;  %1486 = vmatmul.f32.vlgmr.msra.gmra.mxu2 %v4289_v48 }
 0x1a0   :  { %5983 = vst [vmem:[#allocation60_spill] sm:$0xff] %v4307_v46  ;;  %v2772_v46 = vrot.slane %v3830_v19, 9 }
 0x1a1   :  { %5984 = vst [vmem:[#allocation61_spill] sm:$0xff] %v4314_v54 }
 0x1a2   :  { %5985 = vst [vmem:[#allocation62_spill] sm:$0xff] %v4319_v57  ;;  %v4379_v57 = vld [vmem:[%s5789_s3 + $0x480] sm:$0xff] }
 0x1a3   :  { %5986 = vst [vmem:[#allocation63_spill] sm:$0xff] %v4325_v38  ;;  %v4397_v20 = vld.sshfl [vmem:[#allocation1 + $0x20] sm:$0xff pattern:$0x73625140]  ;;  %1506 = vmatpush.msrb.mxu1 %v4379_v57 }
 0x1a4   :  { %1145 = vst [vmem:[#allocation1 + $0x1] ss:$4 sm:$0xff] %v4301_v24  ;;  %v1096_v24 = vrot.slane %v1094_v62, 2  ;;  %1466 = vmatmul.f32.gmra.mxu0 %v4397_v20 }
 0x1a5   :  { %5987 = vst [vmem:[#allocation64_spill] sm:$0xff] %v4333_v37  ;;  %v4391_v37 = vld [vmem:[%s5789_s3 + $0x4d8] sm:$0xff] }
 0x1a6   :  { %5988 = vst [vmem:[#allocation65_spill] sm:$0xff] %v4338_v16  ;;  %1646 = vmatpush.msra.mxu3 %v4391_v37 }
 0x1a7   :  { %1146 = vst [vmem:[#allocation1 + $0x2] ss:$4 sm:$0xff] %v4325_v38  ;;  %v1089_v38 = vrot.slane %v1087_v32, 2  ;;  %1553 = vmatmul.f32.gmra.mxu3 %v3683_v52  ;;  %v4714_v52 = vld [vmem:[%s5789_s3 + $0x428] sm:$0xff] }
 0x1a8   :  { %5989 = vst [vmem:[#allocation66_spill] sm:$0xff] %v4346_v30  ;;  %v4395_v30 = vsel %vm3903_vm8, %v2771_v10, %v1087_v32  ;;  %v5997_v32 = vrot.slane %v3825_v53, 6  ;;  %v4475_v53 = vld [vmem:[%s5789_s3 + $0x450] sm:$0xff] }
 0x1a9   :  { %5990 = vst [vmem:[#allocation67_spill] sm:$0xff] %v4351_v61  ;;  %v4404_v61 = vld [vmem:[%s5789_s3 + $0x470] sm:$0xff]  ;;  %v4413_v10 = vsel %vm3903_vm8, %v1089_v38, %v1090_v18  ;;  %v4435_v38 = vld [vmem:[%s5789_s3 + $0x2f8] sm:$0xff] }
 0x1aa   :  { %5991 = vst [vmem:[#allocation68_spill] sm:$0xff] %v4356_v28  ;;  %v4409_v28 = vld [vmem:[%s5789_s3 + $0x188] sm:$0xff]  ;;  %v1097_v54 = vrot.slane %v5997_v32, 7  ;;  %1507 = vmatpush.msrb.mxu1 %v4404_v61  ;;  %1586 = vmatpush.msrb.mxu2 %v4435_v38 }
 0x1ab   :  { %1147 = vst [vmem:[#allocation1 + $0x3] ss:$4 sm:$0xff] %v4338_v16  ;;  %v4384_v16 = vld [vmem:[%s5789_s3 + $0x198] sm:$0xff]  ;;  %v4467_v32 = vld [vmem:[%s5789_s3 + $0x2e8] sm:$0xff] }
 0x1ac   :  { %5992 = vst [vmem:[#allocation69_spill] sm:$0xff] %v4366_v39  ;;  %1563 = vmatpush.msrb.mxu0 %v4384_v16  ;;  %v4423_v39 = vld [vmem:[%s5789_s3 + $0x4c8] sm:$0xff]  ;;  %v4439_v18 = vsel %vm3903_vm8, %v1096_v24, %v1097_v54  ;;  %v4457_v24 = vld [vmem:[%s5789_s3 + $0x4b8] sm:$0xff]  ;;  %1587 = vmatpush.msrb.mxu2 %v4467_v32 }
 0x1ad   :  { %5993 = vst [vmem:[#allocation70_spill] sm:$0xff] %v4374_v15  ;;  %v4427_v15 = vsel %vm3903_vm8, %v2772_v46, %v1094_v62  ;;  %v4447_v62 = vld [vmem:[%s5789_s3 + $0x460] sm:$0xff]  ;;  %v4452_v46 = vld [vmem:[%s5789_s3 + $0x178] sm:$0xff]  ;;  %1647 = vmatpush.msra.mxu3 %v4423_v39 }
 0x1ae   :  { %5994 = vst [vmem:[#allocation71_spill] sm:$0xff] %v4384_v16  ;;  %1564 = vmatpush.msrb.mxu0 %v4409_v28  ;;  %1508 = vmatpush.msrb.mxu1 %v4447_v62  ;;  %v4495_v16 = vld [vmem:[%s5789_s3 + $0x2d8] sm:$0xff] }
 0x1af   :  { %5995 = vst [vmem:[#allocation72_spill] sm:$0xff] %v4391_v37  ;;  %v1115_v37 = vrot.slane %v3883_v3, 7  ;;  %1648 = vmatpush.msra.mxu3 %v4457_v24  ;;  %1588 = vmatpush.msrb.mxu2 %v4495_v16 }
 0x1b0   :  { %5996 = vst [vmem:[#allocation73_spill] sm:$0xff] %v4409_v28  ;;  %v1122_v28 = vrot.slane %v3983_v2, 7  ;;  %1565 = vmatpush.msrb.mxu0 %v4452_v46  ;;  %1509 = vmatpush.msrb.mxu1 %v4475_v53 }
 0x1b1   :  { %1135 = vst [vmem:[#allocation1 + $0x20] ss:$4 sm:$0xff] %v4395_v30  ;;  %1649 = vmatpush.msra.mxu3 %v4490_v4 }
 0x1b2   :  { %5998 = vst [vmem:[#allocation74_spill] sm:$0xff] %v4423_v39  ;;  %v4459_v54 = vld.sshfl [vmem:[#allocation1] sm:$0xff pattern:$0x73625140]  ;;  %v4480_v39 = vld [vmem:[%s5789_s3 + $0x168] sm:$0xff] }
 0x1b3   :  { %5999 = vst [vmem:[#allocation75_spill] sm:$0xff] %v4427_v15  ;;  %1566 = vmatpush.msrb.mxu0 %v4480_v39 }
 0x1b4   :  { %1137 = vst [vmem:[#allocation1 + $0x21] ss:$4 sm:$0xff] %v4413_v10 }
 0x1b5   :  { %6000 = vst [vmem:[#allocation76_spill] sm:$0xff] %v4435_v38  ;;  %v2775_v38 = vrot.slane %v3880_v47, 9 }
 0x1b6   :  { %6001 = vst [vmem:[#allocation77_spill] sm:$0xff] %v4439_v18 }
 0x1b7   :  { %1139 = vst [vmem:[#allocation1 + $0x22] ss:$4 sm:$0xff] %v4427_v15 }
 0x1b8   :  { %6002 = vst [vmem:[#allocation78_spill] sm:$0xff] %v4447_v62 }
 0x1b9   :  { %6003 = vst [vmem:[#allocation79_spill] sm:$0xff] %v4452_v46  ;;  %v4504_v46 = vld [vmem:[%s5789_s3 + $0x440] sm:$0xff] }
 0x1ba   :  { %6004 = vst [vmem:[#allocation80_spill] sm:$0xff] %v4457_v24  ;;  %v4519_v24 = vld [vmem:[%s5789_s3 + $0x498] sm:$0xff]  ;;  %1510 = vmatpush.msrb.mxu1 %v4504_v46 }
 0x1bb   :  { %1141 = vst [vmem:[#allocation1 + $0x23] ss:$4 sm:$0xff] %v4439_v18  ;;  %v1124_v18 = vrot.slane %v1122_v28, 2  ;;  %1650 = vmatpush.msra.mxu3 %v4519_v24 }
 0x1bc   :  { %6005 = vst [vmem:[#allocation81_spill] sm:$0xff] %v4467_v32  ;;  %v4524_v32 = vld [vmem:[%s5789_s3 + $0x2c8] sm:$0xff] }
 0x1bd   :  { %1162 = vst [vmem:[#allocation1] ss:$4 sm:$0xff] %v3563_v49  ;;  %v4532_v49 = vld [vmem:[%s5789_s3 + $0x430] sm:$0xff]  ;;  %1589 = vmatpush.msrb.mxu2 %v4524_v32 }
 0x1be   :  { %6006 = vst [vmem:[#allocation82_spill] sm:$0xff] %v4475_v53  ;;  %v1117_v53 = vrot.slane %v1115_v37, 2  ;;  %1511 = vmatpush.msrb.mxu1 %v4532_v49 }
 0x1bf   :  { %6007 = vst [vmem:[#allocation83_spill] sm:$0xff] %v4480_v39  ;;  %v4537_v39 = vld [vmem:[%s5789_s3 + $0x148] sm:$0xff] }
 0x1c0   :  { %1164 = vst [vmem:[#allocation1 + $0x1] ss:$4 sm:$0xff] %v3887_v29  ;;  %v4509_v29 = vld [vmem:[%s5789_s3 + $0x158] sm:$0xff] }
 0x1c1   :  { %6008 = vst [vmem:[#allocation84_spill] sm:$0xff] %v4490_v4  ;;  %1567 = vmatpush.msrb.mxu0 %v4509_v29  ;;  %v4544_v4 = vld [vmem:[%s5789_s3 + $0x488] sm:$0xff] }
 0x1c2   :  { %6009 = vst [vmem:[#allocation85_spill] sm:$0xff] %v4495_v16  ;;  %v4548_v16 = vsel %vm3903_vm8, %v2775_v38, %v1115_v37  ;;  %v4550_v15 = vld.sshfl [vmem:[#allocation1 + $0x20] sm:$0xff pattern:$0x73625140]  ;;  %v4566_v37 = vld [vmem:[%s5789_s3 + $0x2b8] sm:$0xff]  ;;  %1651 = vmatpush.msra.mxu3 %v4544_v4 }
 0x1c3   :  { %1166 = vst [vmem:[#allocation1 + $0x2] ss:$4 sm:$0xff] %v3578_v6  ;;  %v1118_v6 = vrot.slane %v3965_v58, 7  ;;  %1568 = vmatpush.msrb.mxu0 %v4537_v39  ;;  %v4571_v38 = vld [vmem:[%s5789_s3 + $0x420] sm:$0xff]  ;;  %1489 = vmatmul.f32.gmra.mxu2 %v4550_v15 }
 0x1c4   :  { %6010 = vst [vmem:[#allocation86_spill] sm:$0xff] %v4504_v46  ;;  %1590 = vmatpush.msrb.mxu2 %v4566_v37  ;;  %1512 = vmatpush.msrb.mxu1 %v4571_v38 }
 0x1c5   :  { %6011 = vst [vmem:[#allocation87_spill] sm:$0xff] %v4509_v29  ;;  %v4556_v46 = vsel %vm3903_vm8, %v1117_v53, %v1118_v6  ;;  %v6015_v29 = vrot.slane %v3965_v58, 6  ;;  %v4583_v53 = vld [vmem:[%s5789_s3 + $0x138] sm:$0xff]  ;;  %v4605_v58 = vld [vmem:[%s5789_s3 + $0x410] sm:$0xff] }
 0x1c6   :  { %1168 = vst [vmem:[#allocation1 + $0x3] ss:$4 sm:$0xff] %v3896_v31  ;;  %v2776_v31 = vrot.slane %v3980_v11, 9  ;;  %1569 = vmatpush.msrb.mxu0 %v4583_v53  ;;  %1513 = vmatpush.msrb.mxu1 %v4605_v58 }
 0x1c7   :  { %6012 = vst [vmem:[#allocation88_spill] sm:$0xff] %v4519_v24  ;;  %v1125_v62 = vrot.slane %v6015_v29, 7  ;;  %v4588_v29 = vld [vmem:[%s5789_s3 + $0x478] sm:$0xff] }
 0x1c8   :  { %6013 = vst [vmem:[#allocation89_spill] sm:$0xff] %v4537_v39  ;;  %v4575_v6 = vsel %vm3903_vm8, %v2776_v31, %v1122_v28  ;;  %v4600_v28 = vld [vmem:[%s5789_s3 + $0x2a8] sm:$0xff]  ;;  %1652 = vmatpush.msra.mxu3 %v4588_v29  ;;  %v4646_v24 = vld [vmem:[%s5789_s3 + $0x458] sm:$0xff]  ;;  %1570 = vmatpush.msrb.mxu0 %v4610_v56 }
 0x1c9   :  { %6014 = vst [vmem:[#allocation90_spill] sm:$0xff] %v4544_v4  ;;  %v4592_v31 = vsel %vm3903_vm8, %v1124_v18, %v1125_v62  ;;  %v4628_v62 = vld [vmem:[%s5789_s3 + $0x298] sm:$0xff]  ;;  %v4633_v4 = vld [vmem:[%s5789_s3 + $0x400] sm:$0xff]  ;;  %1591 = vmatpush.msrb.mxu2 %v4600_v28  ;;  %v4662_v39 = vld [vmem:[%s5789_s3 + $0x108] sm:$0xff] }
 0x1ca   :  { %1148 = vst [vmem:[#allocation1 + $0x20] ss:$4 sm:$0xff] %v4548_v16  ;;  %1653 = vmatpush.msra.mxu3 %v4620_v44  ;;  %1514 = vmatpush.msrb.mxu1 %v4633_v4  ;;  %v4676_v56 = vld [vmem:[%s5789_s3 + $0x278] sm:$0xff] }
 0x1cb   :  { %1149 = vst [vmem:[#allocation1 + $0x21] ss:$4 sm:$0xff] %v4556_v46  ;;  %1592 = vmatpush.msrb.mxu2 %v4628_v62 }
 0x1cc   :  { %6016 = vst [vmem:[#allocation91_spill] sm:$0xff] %v4583_v53  ;;  %v4654_v53 = vld [vmem:[%s5789_s3 + $0x288] sm:$0xff]  ;;  %1654 = vmatpush.msra.mxu3 %v4646_v24  ;;  %1492 = vmatmul.f32.gmra.mxu2 %v4459_v54 }
 0x1cd   :  { %6017 = vst [vmem:[#allocation92_spill] sm:$0xff] %v4588_v29  ;;  %v4612_v18 = vld.sshfl [vmem:[#allocation1] sm:$0xff pattern:$0x73625140]  ;;  %v4641_v29 = vld [vmem:[%s5789_s3 + $0x118] sm:$0xff]  ;;  %1593 = vmatpush.msrb.mxu2 %v4654_v53 }
 0x1ce   :  { %1150 = vst [vmem:[#allocation1 + $0x22] ss:$4 sm:$0xff] %v4575_v6  ;;  %1571 = vmatpush.msrb.mxu0 %v4641_v29  ;;  %1515 = vmatmul.f32.vlgmr.msrb.gmra.mxu1 %v4612_v18 }
 0x1cf   :  { %1151 = vst [vmem:[#allocation1 + $0x23] ss:$4 sm:$0xff] %v4592_v31  ;;  %1594 = vmatpush.msrb.mxu2 %v4676_v56 }
 0x1d0   :  { %6019 = vst [vmem:[#allocation94_spill] sm:$0xff] %v4620_v44  ;;  %v4667_v44 = vld [vmem:[%s5789_s3 + $0x448] sm:$0xff]  ;;  %1572 = vmatpush.msrb.mxu0 %v4662_v39 }
 0x1d1   :  { %1179 = vst [vmem:[#allocation1] ss:$4 sm:$0xff] %v3623_v59  ;;  %1655 = vmatpush.msra.mxu3 %v4667_v44  ;;  %1573 = vmatmul.f32.vlgmr.msrb.gmra.mxu0 %v3827_v12  ;;  %v1908_v12 = vld [vmem:[%s5789_s3 + $0xe0] sm:$0xff] }
 0x1d2   :  { %6020 = vst [vmem:[#allocation95_spill] sm:$0xff] %v4628_v62 }
 0x1d3   :  { %1180 = vst [vmem:[#allocation1 + $0x1] ss:$4 sm:$0xff] %v3953_v45 }
 0x1d4   :  { %6021 = vst [vmem:[#allocation96_spill] sm:$0xff] %v4641_v29  ;;  %v4685_v29 = vld [vmem:[%s5789_s3 + $0x3f8] sm:$0xff] }
 0x1d5   :  { %6022 = vst [vmem:[#allocation97_spill] sm:$0xff] %v4646_v24  ;;  %v4690_v24 = vld [vmem:[%s5789_s3 + $0x438] sm:$0xff]  ;;  %1615 = vmatpush.msra.mxu1 %v4685_v29 }
 0x1d6   :  { %1181 = vst [vmem:[#allocation1 + $0x2] ss:$4 sm:$0xff] %v3643_v42  ;;  %v4678_v62 = vld.sshfl [vmem:[#allocation1 + $0x20] sm:$0xff pattern:$0x73625140]  ;;  %1656 = vmatpush.msra.mxu3 %v4690_v24 }
 0x1d7   :  { %6023 = vst [vmem:[#allocation98_spill] sm:$0xff] %v4654_v53  ;;  %v4709_v53 = vld [vmem:[%s5789_s3 + $0x3e8] sm:$0xff]  ;;  %1495 = vmatmul.f32.gmra.mxu2 %v4678_v62 }
 0x1d8   :  { %1182 = vst [vmem:[#allocation1 + $0x3] ss:$4 sm:$0xff] %v3957_v25  ;;  %1616 = vmatpush.msra.mxu1 %v4709_v53  ;;  %1657 = vmatpush.msra.mxu3 %v4714_v52 }
 0x1d9   :  { %6024 = vst [vmem:[#allocation99_spill] sm:$0xff] %v4662_v39  ;;  %v4701_v39 = vld [vmem:[%s5789_s3 + $0x268] sm:$0xff]  ;;  %1576 = vmatmul.f32.gmra.mxu0 %v3855_v33  ;;  %v1900_v33 = vld [vmem:[%s5789_s3 + $0xa0] sm:$0xff] }
 0x1da   :  { %6025 = vst [vmem:[#allocation100_spill] sm:$0xff] %v4667_v44  ;;  %v1910_v44 = vld [vmem:[%s5789_s3 + $0xf0] sm:$0xff]  ;;  %1595 = vmatpush.msrb.mxu2 %v4701_v39 }
 0x1db   :  { %6026 = vst [vmem:[#allocation101_spill] sm:$0xff] %v4676_v56  ;;  %v4725_v56 = vld [vmem:[%s5789_s3 + $0x258] sm:$0xff]  ;;  %2046 = vmatpush.msra.mxu0 %v1910_v44  ;;  %v4750_v44 = vld [vmem:[%s5789_s3 + $0x248] sm:$0xff] }
 0x1dc   :  { %6027 = vst [vmem:[#allocation102_spill] sm:$0xff] %v4690_v24  ;;  %v4739_v24 = vld [vmem:[%s5789_s3 + $0x418] sm:$0xff]  ;;  %1596 = vmatpush.msrb.mxu2 %v4725_v56 }
 0x1dd   :  { %1170 = vst [vmem:[#allocation1 + $0x20] ss:$4 sm:$0xff] %v3583_v17  ;;  %2047 = vmatpush.msra.mxu0 %v1908_v12  ;;  %1658 = vmatpush.msra.mxu3 %v4739_v24  ;;  %v1904_v12 = vld [vmem:[%s5789_s3 + $0xc0] sm:$0xff] }
 0x1de   :  { %6028 = vst [vmem:[#allocation103_spill] sm:$0xff] %v4701_v39  ;;  %v4757_v39 = vld [vmem:[%s5789_s3 + $0x3c8] sm:$0xff]  ;;  %1597 = vmatpush.msrb.mxu2 %v4750_v44 }
 0x1df   :  { %1172 = vst [vmem:[#allocation1 + $0x21] ss:$4 sm:$0xff] %v3594_v36  ;;  %v4730_v36 = vld [vmem:[%s5789_s3 + $0x3d8] sm:$0xff]  ;;  %v4732_v17 = vld.sshfl [vmem:[#allocation1] sm:$0xff pattern:$0x73625140] }
 0x1e0   :  { %6029 = vst [vmem:[#allocation104_spill] sm:$0xff] %v4714_v52  ;;  %v4762_v52 = vld [vmem:[%s5789_s3 + $0x408] sm:$0xff]  ;;  %1617 = vmatpush.msra.mxu1 %v4730_v36 }
 0x1e1   :  { %1174 = vst [vmem:[#allocation1 + $0x22] ss:$4 sm:$0xff] %v3600_v41  ;;  %v1906_v41 = vld [vmem:[%s5789_s3 + $0xd0] sm:$0xff]  ;;  %1659 = vmatpush.msra.mxu3 %v4762_v52  ;;  %1579 = vmatmul.f32.gmra.mxu0 %v3927_v0  ;;  %v1892_v0 = vld [vmem:[%s5789_s3 + $0x60] sm:$0xff] }
 0x1e2   :  { %6030 = vst [vmem:[#allocation105_spill] sm:$0xff] %v4725_v56  ;;  %2048 = vmatpush.msra.mxu0 %v1906_v41  ;;  %v4775_v56 = vld [vmem:[%s5789_s3 + $0x238] sm:$0xff]  ;;  %1618 = vmatpush.msra.mxu1 %v4757_v39  ;;  %v1902_v41 = vld [vmem:[%s5789_s3 + $0xb0] sm:$0xff] }
 0x1e3   :  { %1176 = vst [vmem:[#allocation1 + $0x23] ss:$4 sm:$0xff] %v4032_v63  ;;  %1598 = vmatpush.msrb.mxu2 %v4775_v56  ;;  %1660 = vmatmul.f32.vlgmr.msra.gmra.mxu3 %v4612_v18  ;;  %v4817_v18 = vld [vmem:[%s5789_s3 + $0x398] sm:$0xff] }
 0x1e4   :  { %6031 = vst [vmem:[#allocation106_spill] sm:$0xff] %v4739_v24  ;;  %2049 = vmatpush.msra.mxu0 %v1904_v12  ;;  %v4793_v12 = vld [vmem:[%s5789_s3 + $0x228] sm:$0xff] }
 0x1e5   :  { %1685 = vst [vmem:[#allocation1] ss:$4 sm:$0xff] %v3781_v55  ;;  %1599 = vmatpush.msrb.mxu2 %v4793_v12 }
 0x1e6   :  { %1687 = vst [vmem:[#allocation1 + $0x1] ss:$4 sm:$0xff] %v3794_v14  ;;  %2050 = vmatpush.msra.mxu0 %v1902_v41  ;;  %v4829_v41 = vld [vmem:[%s5789_s3 + $0x208] sm:$0xff] }
 0x1e7   :  { %6032 = vst [vmem:[#allocation107_spill] sm:$0xff] %v4762_v52  ;;  %v4800_v52 = vld [vmem:[%s5789_s3 + $0x3a8] sm:$0xff] }
 0x1e8   :  { %1689 = vst [vmem:[#allocation1 + $0x2] ss:$4 sm:$0xff] %v3797_v7  ;;  %v4783_v7 = vld [vmem:[%s5789_s3 + $0x3b8] sm:$0xff]  ;;  %2051 = vmatpush.msra.mxu0 %v1900_v33  ;;  %v1942_v33 = vld [vmem:[%s5789_s3 + $0x1f0] sm:$0xff] }
 0x1e9   :  { %1691 = vst [vmem:[#allocation1 + $0x3] ss:$4 sm:$0xff] %v3810_v40  ;;  %1619 = vmatpush.msra.mxu1 %v4783_v7 }
 0x1ea   :  { %6033 = vst [vmem:[#allocation108_spill] sm:$0xff] %v4775_v56  ;;  %v1178_v24 = vld.sshfl [vmem:[#allocation1 + $0x20] sm:$0xff pattern:$0x73625140]  ;;  %v4810_v56 = vld [vmem:[%s5789_s3 + $0x218] sm:$0xff] }
 0x1eb   :  { %6034 = vst [vmem:[#allocation109_spill] sm:$0xff] %v4793_v12  ;;  %1518 = vmatmul.f32.gmra.mxu1 %v1178_v24  ;;  %1600 = vmatpush.msrb.mxu2 %v4810_v56  ;;  %v4836_v12 = vld [vmem:[%s5789_s3 + $0x388] sm:$0xff] }
 0x1ec   :  { %1183 = vst [vmem:[#allocation1 + $0x20] ss:$4 sm:$0xff] %v3647_v13  ;;  %1620 = vmatpush.msra.mxu1 %v4800_v52  ;;  %1663 = vmatmul.f32.gmra.mxu3 %v1178_v24  ;;  %v4882_v24 = vld [vmem:[%s5789_s3 + $0x358] sm:$0xff] }
 0x1ed   :  { %1184 = vst [vmem:[#allocation1 + $0x21] ss:$4 sm:$0xff] %v3659_v5  ;;  %v1898_v5 = vld [vmem:[%s5789_s3 + $0x90] sm:$0xff]  ;;  %1601 = vmatpush.msrb.mxu2 %v4829_v41 }
 0x1ee   :  { %6035 = vst [vmem:[#allocation110_spill] sm:$0xff] %v4810_v56  ;;  %1621 = vmatpush.msra.mxu1 %v4817_v18  ;;  %2052 = vmatpush.msra.mxu0 %v1898_v5  ;;  %v4853_v56 = vld [vmem:[%s5789_s3 + $0x378] sm:$0xff]  ;;  %v1894_v5 = vld [vmem:[%s5789_s3 + $0x70] sm:$0xff] }
 0x1ef   :  { %1185 = vst [vmem:[#allocation1 + $0x22] ss:$4 sm:$0xff] %v3667_v23  ;;  %1602 = vmatmul.f32.vlgmr.msrb.gmra.mxu2 %v4005_v27  ;;  %v1938_v27 = vld [vmem:[%s5789_s3 + $0x1d0] sm:$0xff] }
 0x1f0   :  { %v4822_v13 = vld.sshfl [vmem:[#allocation1] sm:$0xff pattern:$0x73625140]  ;;  %1186 = vst [vmem:[#allocation1 + $0x23] ss:$4 sm:$0xff] %v4159_v50  ;;  %1622 = vmatpush.msra.mxu1 %v4836_v12  ;;  %2075 = vmatpush.msra.mxu2 %v1942_v33  ;;  %v1890_v33 = vld [vmem:[%s5789_s3 + $0x50] sm:$0xff] }
 0x1f1   :  { %1702 = vst [vmem:[#allocation1] ss:$4 sm:$0xff] %v3846_v34  ;;  %v1896_v50 = vld [vmem:[%s5789_s3 + $0x80] sm:$0xff] }
 0x1f2   :  { %6036 = vst [vmem:[#allocation111_spill] sm:$0xff] %v4836_v12  ;;  %2053 = vmatpush.msra.mxu0 %v1896_v50  ;;  %v4867_v50 = vld [vmem:[%s5789_s3 + $0x368] sm:$0xff]  ;;  %1623 = vmatpush.msra.mxu1 %v4853_v56 }
 0x1f3   :  { %1703 = vst [vmem:[#allocation1 + $0x1] ss:$4 sm:$0xff] %v3849_v35  ;;  %1521 = vmatmul.f32.gmra.mxu1 %v4732_v17 }
 0x1f4   :  { %1704 = vst [vmem:[#allocation1 + $0x2] ss:$4 sm:$0xff] %v3852_v9  ;;  %v1940_v9 = vld [vmem:[%s5789_s3 + $0x1e0] sm:$0xff]  ;;  %2054 = vmatpush.msra.mxu0 %v1894_v5  ;;  %1624 = vmatpush.msra.mxu1 %v4867_v50  ;;  %v4896_v5 = vld [vmem:[%s5789_s3 + $0x348] sm:$0xff] }
 0x1f5   :  { %1705 = vst [vmem:[#allocation1 + $0x3] ss:$4 sm:$0xff] %v3864_v1  ;;  %2076 = vmatpush.msra.mxu2 %v1940_v9  ;;  %v6039_v9 = vld [vmem:[#allocation14_spill] sm:$0xff]  ;;  %1666 = vmatmul.f32.gmra.mxu3 %v4732_v17 }
 0x1f6   :  { %6037 = vst [vmem:[#allocation112_spill] sm:$0xff] %v4853_v56  ;;  %2055 = vmatpush.msra.mxu0 %v1892_v0  ;;  %1625 = vmatpush.msra.mxu1 %v4882_v24  ;;  %v6040_v0 = vld [vmem:[#allocation15_spill] sm:$0xff]  ;;  %v2004_v17 = vld [vmem:[%s5789_s3 + $0x3e0] sm:$0xff] }
 0x1f7   :  { %6038 = vst [vmem:[#allocation113_spill] sm:$0xff] %v4867_v50  ;;  %v4869_v12 = vld.sshfl [vmem:[#allocation1 + $0x20] sm:$0xff pattern:$0x73625140]  ;;  %2077 = vmatpush.msra.mxu2 %v1938_v27  ;;  %v1934_v50 = vld [vmem:[%s5789_s3 + $0x1b0] sm:$0xff]  ;;  %v4916_v27 = vld [vmem:[%s5789_s3 + $0x338] sm:$0xff] }
 0x1f8   :  { %1693 = vst [vmem:[#allocation1 + $0x20] ss:$4 sm:$0xff] %v3814_v8  ;;  %v1936_v8 = vld [vmem:[%s5789_s3 + $0x1c0] sm:$0xff]  ;;  %2056 = vmatpush.msra.mxu0 %v1890_v33  ;;  %1626 = vmatpush.msra.mxu1 %v4896_v5  ;;  %v1886_v33 = vld [vmem:[%s5789_s3 + $0x30] sm:$0xff] }
 0x1f9   :  { %1695 = vst [vmem:[#allocation1 + $0x21] ss:$4 sm:$0xff] %v3817_v51  ;;  %2078 = vmatpush.msra.mxu2 %v1936_v8  ;;  %v6043_v8 = vld [vmem:[#allocation17_spill] sm:$0xff] }
 0x1fa   :  { %1697 = vst [vmem:[#allocation1 + $0x22] ss:$4 sm:$0xff] %v3830_v19  ;;  %v1888_v19 = vld [vmem:[%s5789_s3 + $0x40] sm:$0xff]  ;;  %1605 = vmatmul.f32.gmra.mxu2 %v4216_v60  ;;  %1627 = vmatpush.msra.mxu1 %v4916_v27 }
 0x1fb   :  { %1699 = vst [vmem:[#allocation1 + $0x23] ss:$4 sm:$0xff] %v3833_v26  ;;  %v6041_v26 = vld [vmem:[#allocation16_spill] sm:$0xff]  ;;  %2057 = vmatpush.msra.mxu0 %v1888_v19  ;;  %1524 = vmatmul.f32.gmra.mxu1 %v4869_v12  ;;  %v1884_v60 = vld [vmem:[%s5789_s3 + $0x20] sm:$0xff] }
 0x1fc   :  { %v4898_v56 = vld.sshfl [vmem:[#allocation1] sm:$0xff pattern:$0x73625140]  ;;  %6042 = vst [vmem:[#allocation14_spill] sm:$0xff] %v4916_v27  ;;  %v2006_v19 = vld [vmem:[%s5789_s3 + $0x3f0] sm:$0xff]  ;;  %2079 = vmatpush.msra.mxu2 %v1934_v50 }
 0x1fd   :  { %1720 = vst [vmem:[#allocation1] ss:$4 sm:$0xff] %v6039_v9  ;;  %v6044_v9 = vld [vmem:[#allocation28_spill] sm:$0xff]  ;;  %2058 = vmatpush.msra.mxu0 %v1886_v33  ;;  %2133 = vmatpush.msrb.mxu3 %v2006_v19  ;;  %v1928_v27 = vld [vmem:[%s5789_s3 + $0x180] sm:$0xff] }
 0x1fe   :  { %1722 = vst [vmem:[#allocation1 + $0x1] ss:$4 sm:$0xff] %v6040_v0  ;;  %1582 = vmatmul.f32.gmra.mxu0 %v6044_v9  ;;  %v4934_v0 = vld [vmem:[%s5789_s3 + $0x328] sm:$0xff]  ;;  %v4951_v9 = vld [vmem:[%s5789_s3 + $0x318] sm:$0xff]  ;;  %v1882_v33 = vld [vmem:[%s5789_s3 + $0x10] sm:$0xff]  ;;  %1669 = vmatmul.f32.gmra.mxu3 %v4869_v12 }
 0x1ff   :  { %1724 = vst [vmem:[#allocation1 + $0x2] ss:$4 sm:$0xff] %v6041_v26  ;;  %v1932_v26 = vld [vmem:[%s5789_s3 + $0x1a0] sm:$0xff]  ;;  %1628 = vmatpush.msra.mxu1 %v4934_v0  ;;  %2059 = vmatpush.msra.mxu0 %v1884_v60  ;;  %v6051_v12 = vld [vmem:[#allocation19_spill] sm:$0xff] }
 0x200   :  { %1726 = vst [vmem:[#allocation1 + $0x3] ss:$4 sm:$0xff] %v6043_v8  ;;  %v1930_v8 = vld [vmem:[%s5789_s3 + $0x190] sm:$0xff]  ;;  %2080 = vmatpush.msra.mxu2 %v1932_v26  ;;  %v4965_v26 = vld [vmem:[%s5789_s3 + $0x308] sm:$0xff]  ;;  %v1880_v19 = vld [vmem:[%s5789_s3] sm:$0xff]  ;;  %2134 = vmatpush.msrb.mxu3 %v2004_v17 }
 0x201   :  { %6045 = vst [vmem:[#allocation15_spill] sm:$0xff] %v4965_v26  ;;  %1629 = vmatpush.msra.mxu1 %v4951_v9  ;;  %2060 = vmatpush.msra.mxu0 %v1882_v33  ;;  %v6046_v60 = vld [vmem:[#allocation18_spill] sm:$0xff]  ;;  %v1926_v17 = vld [vmem:[%s5789_s3 + $0x170] sm:$0xff] }
 0x202   :  { %v4946_v50 = vld.sshfl [vmem:[#allocation1 + $0x20] sm:$0xff pattern:$0x73625140]  ;;  %2081 = vmatpush.msra.mxu2 %v1930_v8  ;;  %2135 = vmatpush.msrb.mxu3 %v6046_v60  ;;  %v6047_v8 = vld [vmem:[#allocation23_spill] sm:$0xff]  ;;  %v6048_v33 = vld [vmem:[#allocation24_spill] sm:$0xff] }
 0x203   :  { %1706 = vst [vmem:[#allocation1 + $0x20] ss:$4 sm:$0xff] %v3880_v47  ;;  %1630 = vmatpush.msra.mxu1 %v4965_v26  ;;  %2061 = vmatpush.msra.mxu0 %v1880_v19  ;;  %v1924_v19 = vld [vmem:[%s5789_s3 + $0x160] sm:$0xff]  ;;  %v6055_v26 = vld [vmem:[#allocation27_spill] sm:$0xff] }
 0x204   :  { %1707 = vst [vmem:[#allocation1 + $0x21] ss:$4 sm:$0xff] %v3883_v3  ;;  %2082 = vmatpush.msra.mxu2 %v1928_v27  ;;  %1631 = vmatmul.f32.vlgmr.msra.gmra.mxu1 %v4289_v48  ;;  %v6049_v27 = vld [vmem:[#allocation25_spill] sm:$0xff]  ;;  %v1972_v60 = vld [vmem:[%s5789_s3 + $0x2e0] sm:$0xff]  ;;  %v1970_v48 = vld [vmem:[%s5789_s3 + $0x2d0] sm:$0xff] }
 0x205   :  { %1708 = vst [vmem:[#allocation1 + $0x22] ss:$4 sm:$0xff] %v3980_v11  ;;  %v1974_v11 = vld [vmem:[%s5789_s3 + $0x2f0] sm:$0xff]  ;;  %1608 = vmatmul.f32.gmra.mxu2 %v4115_v21  ;;  %2136 = vmatpush.msrb.mxu3 %v6051_v12  ;;  %v6058_v12 = vld [vmem:[#allocation46_spill] sm:$0xff] }
 0x206   :  { %1709 = vst [vmem:[#allocation1 + $0x23] ss:$4 sm:$0xff] %v3983_v2  ;;  %2062 = vmatmul.f32.vlgmr.msra.gmra.mxu0 %v4822_v13  ;;  %2083 = vmatpush.msra.mxu2 %v1926_v17  ;;  %v1922_v21 = vld [vmem:[%s5789_s3 + $0x150] sm:$0xff]  ;;  %v1920_v17 = vld [vmem:[%s5789_s3 + $0x140] sm:$0xff] }
 0x207   :  { %v4972_v47 = vld.sshfl [vmem:[#allocation1] sm:$0xff pattern:$0x73625140]  ;;  %2104 = vmatpush.msrb.mxu1 %v1974_v11  ;;  %v6053_v11 = vld [vmem:[#allocation21_spill] sm:$0xff] }
 0x208   :  { %1737 = vst [vmem:[#allocation1] ss:$4 sm:$0xff] %v6047_v8  ;;  %v6050_v8 = vld [vmem:[#allocation26_spill] sm:$0xff]  ;;  %2084 = vmatpush.msra.mxu2 %v1924_v19  ;;  %2137 = vmatpush.msrb.mxu3 %v6053_v11  ;;  %v1918_v19 = vld [vmem:[%s5789_s3 + $0x130] sm:$0xff] }
 0x209   :  { %1738 = vst [vmem:[#allocation1 + $0x1] ss:$4 sm:$0xff] %v6048_v33  ;;  %v6052_v33 = vld [vmem:[#allocation39_spill] sm:$0xff]  ;;  %2105 = vmatpush.msrb.mxu1 %v1972_v60  ;;  %v6056_v2 = vld [vmem:[#allocation30_spill] sm:$0xff]  ;;  %v6057_v60 = vld [vmem:[#allocation29_spill] sm:$0xff] }
 0x20a   :  { %1739 = vst [vmem:[#allocation1 + $0x2] ss:$4 sm:$0xff] %v6049_v27  ;;  %2162 = vmatpush.msrb.mxu0 %v6052_v33  ;;  %2085 = vmatpush.msra.mxu2 %v1922_v21  ;;  %v6059_v33 = vld [vmem:[#allocation31_spill] sm:$0xff]  ;;  %v2828_v11 = vld [vmem:[%s5789_s3 + $0x2c0] sm:$0xff]  ;;  %v6060_v21 = vld [vmem:[#allocation32_spill] sm:$0xff] }
 0x20b   :  { %1740 = vst [vmem:[#allocation1 + $0x3] ss:$4 sm:$0xff] %v6050_v8  ;;  %v6054_v8 = vld [vmem:[#allocation43_spill] sm:$0xff]  ;;  %2106 = vmatpush.msrb.mxu1 %v1970_v48  ;;  %2138 = vmatpush.msrb.mxu3 %v6057_v60  ;;  %v6061_v48 = vld [vmem:[#allocation34_spill] sm:$0xff]  ;;  %v6063_v60 = vld [vmem:[#allocation33_spill] sm:$0xff] }
 0x20c   :  { %2163 = vmatpush.msrb.mxu0 %v6054_v8  ;;  %2086 = vmatpush.msra.mxu2 %v1920_v17  ;;  %v6062_v17 = vld [vmem:[#allocation36_spill] sm:$0xff] }
 0x20d   :  { %v5005_v27 = vld.sshfl [vmem:[#allocation1 + $0x20] sm:$0xff pattern:$0x73625140]  ;;  %2107 = vmatpush.msrb.mxu1 %v2828_v11  ;;  %1611 = vmatmul.f32.gmra.mxu2 %v4397_v20  ;;  %v2829_v8 = vld [vmem:[%s5789_s3 + $0x2b0] sm:$0xff]  ;;  %v6066_v11 = vld [vmem:[#allocation35_spill] sm:$0xff] }
 0x20e   :  { %1728 = vst [vmem:[#allocation1 + $0x20] ss:$4 sm:$0xff] %v6055_v26  ;;  %2164 = vmatpush.msrb.mxu0 %v6058_v12  ;;  %1634 = vmatmul.f32.gmra.mxu1 %v4550_v15  ;;  %v1914_v20 = vld [vmem:[%s5789_s3 + $0x110] sm:$0xff]  ;;  %v6064_v15 = vld [vmem:[#allocation37_spill] sm:$0xff] }
 0x20f   :  { %1730 = vst [vmem:[#allocation1 + $0x21] ss:$4 sm:$0xff] %v6056_v2  ;;  %v1916_v2 = vld [vmem:[%s5789_s3 + $0x120] sm:$0xff]  ;;  %2065 = vmatmul.f32.gmra.mxu0 %v4946_v50  ;;  %2087 = vmatpush.msra.mxu2 %v1918_v19  ;;  %v6065_v12 = vld [vmem:[#allocation41_spill] sm:$0xff] }
 0x210   :  { %1732 = vst [vmem:[#allocation1 + $0x22] ss:$4 sm:$0xff] %v6059_v33  ;;  %2108 = vmatpush.msrb.mxu1 %v2829_v8  ;;  %2139 = vmatpush.msrb.mxu3 %v6063_v60  ;;  %v5047_v19 = vld [vmem:[%s5791_s4] sm:$0x3]  ;;  %v6068_v8 = vld [vmem:[#allocation61_spill] sm:$0xff]  ;;  %v6069_v60 = vld [vmem:[#allocation47_spill] sm:$0xff] }
 0x211   :  { %1734 = vst [vmem:[#allocation1 + $0x23] ss:$4 sm:$0xff] %v6060_v21  ;;  %2088 = vmatpush.msra.mxu2 %v1916_v2  ;;  %2165 = vmatpush.msrb.mxu0 %v4239_v43  ;;  %v2830_v33 = vld [vmem:[%s5789_s3 + $0x2a0] sm:$0xff]  ;;  %v2831_v43 = vld [vmem:[%s5789_s3 + $0x290] sm:$0xff] }
 0x212   :  { %v5023_v26 = vld.sshfl [vmem:[#allocation1] sm:$0xff pattern:$0x73625140]  ;;  %2109 = vmatpush.msrb.mxu1 %v2830_v33  ;;  %2140 = vmatpush.msrb.mxu3 %v6066_v11  ;;  %v2833_v33 = vld [vmem:[%s5789_s3 + $0xf8] sm:$0xff]  ;;  %v2834_v11 = vld [vmem:[%s5789_s3 + $0x270] sm:$0xff] }
 0x213   :  { %1755 = vst [vmem:[#allocation1] ss:$4 sm:$0xff] %v6061_v48  ;;  %v1912_v21 = vld [vmem:[%s5789_s3 + $0x100] sm:$0xff]  ;;  %2089 = vmatpush.msra.mxu2 %v1914_v20  ;;  %2166 = vmatpush.msrb.mxu0 %v4278_v22  ;;  %v1400_v20 = vpop.f32.mrf.mxu1 }
 0x214   :  { %1757 = vst [vmem:[#allocation1 + $0x1] ss:$4 sm:$0xff] %v6062_v17  ;;  %2110 = vmatpush.msrb.mxu1 %v2831_v43  ;;  %v6067_v2 = vld [vmem:[#allocation38_spill] sm:$0xff]  ;;  %v5064_v17 = vperm.slane %v5047_v19, 0 }
 0x215   :  { %1759 = vst [vmem:[#allocation1 + $0x2] ss:$4 sm:$0xff] %v6064_v15  ;;  %2141 = vmatpush.msrb.mxu3 %v6067_v2  ;;  %2090 = vmatpush.msra.mxu2 %v1912_v21  ;;  %v2832_v22 = vld [vmem:[%s5789_s3 + $0x280] sm:$0xff]  ;;  %v6070_v15 = vld [vmem:[#allocation49_spill] sm:$0xff] }
 0x216   :  { %1761 = vst [vmem:[#allocation1 + $0x3] ss:$4 sm:$0xff] %v6065_v12  ;;  %2167 = vmatpush.msrb.mxu0 %v6068_v8  ;;  %2111 = vmatpush.msrb.mxu1 %v2832_v22  ;;  %v6071_v12 = vld [vmem:[#allocation52_spill] sm:$0xff]  ;;  %v6072_v43 = vld [vmem:[#allocation54_spill] sm:$0xff]  ;;  %v6074_v8 = vld [vmem:[#allocation67_spill] sm:$0xff] }
 0x217   :  { %2091 = vmatmul.f32.vlgmr.msra.gmra.mxu2 %v4972_v47  ;;  %1637 = vmatmul.f32.gmra.mxu1 %v4459_v54  ;;  %v1401_v54 = vadd.f32 %v1400_v20, %v5064_v17  ;;  %v6073_v2 = vld [vmem:[#allocation42_spill] sm:$0xff]  ;;  %v2835_v22 = vld [vmem:[%s5789_s3 + $0xe8] sm:$0xff]  ;;  %v6077_v20 = vld [vmem:[#allocation45_spill] sm:$0xff] }
 0x218   :  { %v5061_v48 = vld.sshfl [vmem:[#allocation1 + $0x20] sm:$0xff pattern:$0x73625140]  ;;  %2068 = vmatmul.f32.gmra.mxu0 %v4898_v56  ;;  %2191 = vmatpush.msrb.mxu2 %v2833_v33  ;;  %v6076_v33 = vld [vmem:[#allocation59_spill] sm:$0xff] }
 0x219   :  { %1741 = vst [vmem:[#allocation1 + $0x20] ss:$4 sm:$0xff] %v6069_v60  ;;  %2112 = vmatpush.msrb.mxu1 %v2834_v11  ;;  %2142 = vmatpush.msrb.mxu3 %v6073_v2  ;;  %v6075_v60 = vld [vmem:[#allocation57_spill] sm:$0xff] }
 0x21a   :  { %1742 = vst [vmem:[#allocation1 + $0x21] ss:$4 sm:$0xff] %v6070_v15  ;;  %2168 = vmatpush.msrb.mxu0 %v6074_v8  ;;  %2192 = vmatpush.msrb.mxu2 %v2835_v22  ;;  %v2836_v15 = vld [vmem:[%s5789_s3 + $0x260] sm:$0xff]  ;;  %v2837_v2 = vld [vmem:[%s5789_s3 + $0xd8] sm:$0xff]  ;;  %v2838_v8 = vld [vmem:[%s5789_s3 + $0x250] sm:$0xff] }
 0x21b   :  { %1743 = vst [vmem:[#allocation1 + $0x22] ss:$4 sm:$0xff] %v6071_v12  ;;  %2113 = vmatpush.msrb.mxu1 %v2836_v15  ;;  %v1429_v12 = vpop.f32.mrf.mxu3  ;;  %2143 = vmatpush.msrb.mxu3 %v6077_v20  ;;  %v6080_v22 = vld [vmem:[#allocation50_spill] sm:$0xff]  ;;  %v6081_v15 = vld [vmem:[#allocation55_spill] sm:$0xff]  ;;  %v2842_v20 = vld [vmem:[%s5789_s3 + $0x230] sm:$0xff] }
 0x21c   :  { %1744 = vst [vmem:[#allocation1 + $0x23] ss:$4 sm:$0xff] %v6072_v43  ;;  %2169 = vmatpush.msrb.mxu0 %v4379_v57  ;;  %v5098_v11 = vadd.f32 %v1429_v12, %v1401_v54  ;;  %v6078_v43 = vld [vmem:[#allocation63_spill] sm:$0xff]  ;;  %2193 = vmatpush.msrb.mxu2 %v2837_v2  ;;  %v2840_v54 = vld [vmem:[%s5789_s3 + $0x240] sm:$0xff] }
 0x21d   :  { %v5082_v21 = vld.sshfl [vmem:[#allocation1] sm:$0xff pattern:$0x73625140]  ;;  %2114 = vmatpush.msrb.mxu1 %v2838_v8  ;;  %2144 = vmatpush.msrb.mxu3 %v6080_v22  ;;  %v2839_v57 = vld [vmem:[%s5789_s3 + $0xc8] sm:$0xff]  ;;  %v6085_v22 = vld [vmem:[#allocation77_spill] sm:$0xff] }
 0x21e   :  { %1772 = vst [vmem:[#allocation1] ss:$4 sm:$0xff] %v6075_v60  ;;  %v6079_v60 = vld [vmem:[#allocation65_spill] sm:$0xff]  ;;  %2170 = vmatpush.msrb.mxu0 %v4404_v61  ;;  %2194 = vmatpush.msrb.mxu2 %v2839_v57  ;;  %v1403_v61 = vpop.f32.mrf.mxu1  ;;  %v6084_v2 = vld [vmem:[#allocation75_spill] sm:$0xff]  ;;  %v2844_v8 = vld [vmem:[%s5789_s3 + $0x220] sm:$0xff] }
 0x21f   :  { %1773 = vst [vmem:[#allocation1 + $0x1] ss:$4 sm:$0xff] %v6076_v33  ;;  %2115 = vmatpush.msrb.mxu1 %v2840_v54  ;;  %2145 = vmatpush.msrb.mxu3 %v6081_v15  ;;  %v2841_v33 = vld [vmem:[%s5789_s3 + $0xb8] sm:$0xff]  ;;  %v6086_v57 = vld [vmem:[#allocation66_spill] sm:$0xff]  ;;  %v6088_v15 = vld [vmem:[#allocation3_spill] sm:$0xff] }
 0x220   :  { %1774 = vst [vmem:[#allocation1 + $0x2] ss:$4 sm:$0xff] %v6078_v43  ;;  %1640 = vmatmul.f32.gmra.mxu1 %v4678_v62  ;;  %2071 = vmatmul.f32.gmra.mxu0 %v5005_v27  ;;  %v6082_v62 = vld [vmem:[#allocation60_spill] sm:$0xff]  ;;  %v6083_v43 = vld [vmem:[#allocation78_spill] sm:$0xff] }
 0x221   :  { %1775 = vst [vmem:[#allocation1 + $0x3] ss:$4 sm:$0xff] %v6079_v60  ;;  %2094 = vmatmul.f32.gmra.mxu2 %v5061_v48  ;;  %2116 = vmatpush.msrb.mxu1 %v2842_v20  ;;  %v6087_v54 = vld [vmem:[#allocation82_spill] sm:$0xff]  ;;  %v2846_v20 = vld [vmem:[%s5789_s3 + $0x210] sm:$0xff] }
 0x222   :  { %2195 = vmatpush.msrb.mxu2 %v2841_v33  ;;  %2146 = vmatpush.msrb.mxu3 %v6082_v62  ;;  %v2845_v33 = vld [vmem:[%s5789_s3 + $0x98] sm:$0xff] }
 0x223   :  { %v5118_v12 = vld.sshfl [vmem:[#allocation1 + $0x20] sm:$0xff pattern:$0x73625140]  ;;  %2171 = vmatpush.msrb.mxu0 %v6083_v43  ;;  %2117 = vmatpush.msrb.mxu1 %v2844_v8  ;;  %v1432_v62 = vpop.f32.mrf.mxu3  ;;  %v6089_v43 = vld [vmem:[#allocation12_spill] sm:$0xff] }
 0x224   :  { %1763 = vst [vmem:[#allocation1 + $0x20] ss:$4 sm:$0xff] %v4395_v30  ;;  %v2843_v30 = vld [vmem:[%s5789_s3 + $0xa8] sm:$0xff]  ;;  %2147 = vmatpush.msrb.mxu3 %v6086_v57  ;;  %v6092_v8 = vld [vmem:[#allocation4_spill] sm:$0xff]  ;;  %v2848_v57 = vld [vmem:[%s5789_s3 + $0x200] sm:$0xff] }
 0x225   :  { %1765 = vst [vmem:[#allocation1 + $0x21] ss:$4 sm:$0xff] %v4413_v10  ;;  %2196 = vmatpush.msrb.mxu2 %v2843_v30  ;;  %v1404_v10 = vadd.f32 %v1403_v61, %v5064_v17  ;;  %2172 = vmatpush.msrb.mxu0 %v6087_v54  ;;  %v6090_v61 = vld [vmem:[#allocation70_spill] sm:$0xff]  ;;  %v6093_v54 = vld [vmem:[#allocation13_spill] sm:$0xff] }
 0x226   :  { %1767 = vst [vmem:[#allocation1 + $0x22] ss:$4 sm:$0xff] %v6084_v2  ;;  %2118 = vmatpush.msrb.mxu1 %v2846_v20  ;;  %2148 = vmatpush.msrb.mxu3 %v6090_v61  ;;  %v6091_v2 = vld [vmem:[#allocation86_spill] sm:$0xff]  ;;  %v6097_v61 = vld [vmem:[#allocation81_spill] sm:$0xff] }
 0x227   :  { %1769 = vst [vmem:[#allocation1 + $0x23] ss:$4 sm:$0xff] %v6085_v22  ;;  %2197 = vmatpush.msrb.mxu2 %v2845_v33  ;;  %2173 = vmatpush.msrb.mxu0 %v6091_v2  ;;  %v5155_v30 = vadd.f32 %v1432_v62, %v1404_v10  ;;  %v2847_v22 = vld [vmem:[%s5789_s3 + $0x88] sm:$0xff]  ;;  %v2849_v10 = vld [vmem:[%s5789_s3 + $0x78] sm:$0xff]  ;;  %v6095_v33 = vld [vmem:[#allocation76_spill] sm:$0xff] }
 0x228   :  { %v5139_v60 = vld.sshfl [vmem:[#allocation1] sm:$0xff pattern:$0x73625140]  ;;  %2119 = vmatpush.msrb.mxu1 %v2848_v57  ;;  %2249 = vmatpush.msra.mxu3 %v6095_v33  ;;  %v2850_v62 = vld [vmem:[%s5789_s3 + $0x68] sm:$0xff]  ;;  %v6098_v2 = vld [vmem:[#allocation53_spill] sm:$0xff] }
 0x229   :  { %1790 = vst [vmem:[#allocation1] ss:$4 sm:$0xff] %v6088_v15  ;;  %2198 = vmatpush.msrb.mxu2 %v2847_v22  ;;  %2120 = vmatmul.f32.vlgmr.msrb.gmra.mxu1 %v5082_v21  ;;  %v6094_v15 = vld [vmem:[#allocation44_spill] sm:$0xff]  ;;  %v6107_v22 = vld [vmem:[#allocation6_spill] sm:$0xff] }
 0x22a   :  { %1792 = vst [vmem:[#allocation1 + $0x1] ss:$4 sm:$0xff] %v6089_v43  ;;  %2097 = vmatmul.f32.gmra.mxu2 %v5023_v26  ;;  %2220 = vmatpush.msra.mxu1 %v6094_v15  ;;  %v6096_v43 = vld [vmem:[#allocation48_spill] sm:$0xff] }
 0x22b   :  { %1794 = vst [vmem:[#allocation1 + $0x2] ss:$4 sm:$0xff] %v6092_v8  ;;  %2199 = vmatpush.msrb.mxu2 %v2849_v10  ;;  %2174 = vmatpush.msrb.mxu0 %v4532_v49  ;;  %v2851_v49 = vld [vmem:[%s5789_s3 + $0x58] sm:$0xff]  ;;  %v6108_v57 = vld [vmem:[#allocation56_spill] sm:$0xff] }
 0x22c   :  { %1796 = vst [vmem:[#allocation1 + $0x3] ss:$4 sm:$0xff] %v6093_v54  ;;  %2221 = vmatpush.msra.mxu1 %v6096_v43  ;;  %2250 = vmatpush.msra.mxu3 %v6097_v61  ;;  %v6099_v8 = vld [vmem:[#allocation85_spill] sm:$0xff]  ;;  %v6111_v54 = vld [vmem:[#allocation98_spill] sm:$0xff]  ;;  %v6113_v33 = vld [vmem:[#allocation64_spill] sm:$0xff]  ;;  %v1435_v43 = vpop.f32.mrf.mxu3  ;;  %v1458_v61 = vpop.f32.mrf.mxu0 }
 0x22d   :  { %2200 = vmatpush.msrb.mxu2 %v2850_v62  ;;  %2175 = vmatpush.msrb.mxu0 %v4571_v38  ;;  %v6100_v38 = vld [vmem:[#allocation58_spill] sm:$0xff]  ;;  %v6114_v62 = vld [vmem:[#allocation101_spill] sm:$0xff] }
 0x22e   :  { %v5173_v20 = vld.sshfl [vmem:[#allocation1 + $0x20] sm:$0xff pattern:$0x73625140]  ;;  %2222 = vmatpush.msra.mxu1 %v6098_v2  ;;  %2251 = vmatpush.msra.mxu3 %v6099_v8  ;;  %v6118_v8 = vld [vmem:[#allocation103_spill] sm:$0xff] }
 0x22f   :  { %1776 = vst [vmem:[#allocation1 + $0x20] ss:$4 sm:$0xff] %v4548_v16  ;;  %2201 = vmatpush.msrb.mxu2 %v2851_v49  ;;  %2176 = vmatpush.msrb.mxu0 %v4605_v58  ;;  %v2853_v58 = vld [vmem:[%s5789_s3 + $0x38] sm:$0xff]  ;;  %v6115_v49 = vrot.slane %v3781_v55, 4  ;;  %v6121_v55 = vld [vmem:[#allocation72_spill] sm:$0xff] }
 0x230   :  { %1777 = vst [vmem:[#allocation1 + $0x21] ss:$4 sm:$0xff] %v4556_v46  ;;  %v2852_v46 = vld [vmem:[%s5789_s3 + $0x48] sm:$0xff]  ;;  %2223 = vmatpush.msra.mxu1 %v6100_v38  ;;  %2252 = vmatpush.msra.mxu3 %v4524_v32 }
 0x231   :  { %1778 = vst [vmem:[#allocation1 + $0x22] ss:$4 sm:$0xff] %v4575_v6  ;;  %2202 = vmatpush.msrb.mxu2 %v2852_v46  ;;  %2123 = vmatmul.f32.gmra.mxu1 %v5173_v20  ;;  %v6101_v6 = vld [vmem:[#allocation62_spill] sm:$0xff]  ;;  %v6103_v32 = vld [vmem:[#allocation51_spill] sm:$0xff]  ;;  %v6119_v46 = vrot.slane %v3810_v40, 2 }
 0x232   :  { %1779 = vst [vmem:[#allocation1 + $0x23] ss:$4 sm:$0xff] %v4592_v31  ;;  %2100 = vmatmul.f32.gmra.mxu2 %v5118_v12  ;;  %2224 = vmatpush.msra.mxu1 %v6101_v6  ;;  %v6106_v31 = vld [vmem:[#allocation95_spill] sm:$0xff]  ;;  %v6124_v6 = vld [vmem:[#allocation74_spill] sm:$0xff] }
 0x233   :  { %v5191_v16 = vld.sshfl [vmem:[#allocation1] sm:$0xff pattern:$0x73625140]  ;;  %2203 = vmatpush.msrb.mxu2 %v2853_v58  ;;  %2253 = vmatpush.msra.mxu3 %v4566_v37  ;;  %v6105_v37 = vld [vmem:[#allocation5_spill] sm:$0xff]  ;;  %v6120_v38 = vld [vmem:[#allocation87_spill] sm:$0xff] }
 0x234   :  { %1807 = vst [vmem:[#allocation1] ss:$4 sm:$0xff] %v3623_v59  ;;  %2149 = vmatmul.f32.vlgmr.msrb.gmra.mxu3 %v5191_v16  ;;  %2177 = vmatpush.msrb.mxu0 %v4633_v4  ;;  %v2854_v59 = vld [vmem:[%s5789_s3 + $0x28] sm:$0xff]  ;;  %v1406_v4 = vpop.f32.mrf.mxu1  ;;  %v6123_v58 = vld [vmem:[#allocation89_spill] sm:$0xff] }
 0x235   :  { %1808 = vst [vmem:[#allocation1 + $0x1] ss:$4 sm:$0xff] %v3953_v45  ;;  %2204 = vmatpush.msrb.mxu2 %v2854_v59  ;;  %v6102_v45 = vld [vmem:[#allocation68_spill] sm:$0xff]  ;;  %2254 = vmatpush.msra.mxu3 %v4600_v28  ;;  %v6109_v28 = vld [vmem:[#allocation73_spill] sm:$0xff]  ;;  %v1407_v10 = vadd.f32 %v1406_v4, %v5064_v17  ;;  %v6127_v59 = vld [vmem:[#allocation91_spill] sm:$0xff] }
 0x236   :  { %1809 = vst [vmem:[#allocation1 + $0x2] ss:$4 sm:$0xff] %v3643_v42  ;;  %2225 = vmatpush.msra.mxu1 %v6102_v45  ;;  %2278 = vmatpush.msra.mxu0 %v4685_v29  ;;  %v6110_v29 = vld [vmem:[#allocation7_spill] sm:$0xff]  ;;  %v1461_v45 = vpop.f32.mrf.mxu0  ;;  %v6131_v4 = vld [vmem:[#allocation93_spill] sm:$0xff] }
 0x237   :  { %1810 = vst [vmem:[#allocation1 + $0x3] ss:$4 sm:$0xff] %v3957_v25  ;;  %2205 = vmatpush.msrb.mxu2 %v6103_v32  ;;  %v6104_v25 = vld [vmem:[#allocation71_spill] sm:$0xff]  ;;  %2255 = vmatpush.msra.mxu3 %v6106_v31  ;;  %v1436_v2 = vadd.f32 %v1435_v43, %v1407_v10  ;;  %v6129_v32 = vld [vmem:[#allocation108_spill] sm:$0xff]  ;;  %v6134_v31 = vld [vmem:[#allocation109_spill] sm:$0xff] }
 0x238   :  { %2226 = vmatpush.msra.mxu1 %v6104_v25  ;;  %2279 = vmatpush.msra.mxu0 %v4709_v53  ;;  %v6112_v53 = vld [vmem:[#allocation79_spill] sm:$0xff]  ;;  %v6130_v25 = vld [vmem:[#allocation40_spill] sm:$0xff]  ;;  %v6146_v43 = vld [vmem:[#allocation94_spill] sm:$0xff] }
 0x239   :  { %v5217_v42 = vld.sshfl [vmem:[#allocation1 + $0x20] sm:$0xff pattern:$0x73625140]  ;;  %2206 = vmatpush.msrb.mxu2 %v6108_v57  ;;  %2256 = vmatpush.msra.mxu3 %v6111_v54  ;;  %v6142_v10 = vld [vmem:[#allocation92_spill] sm:$0xff] }
 0x23a   :  { %1798 = vst [vmem:[#allocation1 + $0x20] ss:$4 sm:$0xff] %v6105_v37  ;;  %2227 = vmatpush.msra.mxu1 %v6109_v28  ;;  %2207 = vmatmul.f32.vlgmr.msrb.gmra.mxu2 %v4822_v13  ;;  %v5244_v13 = vadd.f32 %v1458_v61, %v5098_v11  ;;  %v6138_v57 = vld [vmem:[#allocation110_spill] sm:$0xff]  ;;  %v6141_v28 = vld [vmem:[#allocation111_spill] sm:$0xff]  ;;  %v6147_v61 = vld [vmem:[#allocation113_spill] sm:$0xff] }
 0x23b   :  { %1800 = vst [vmem:[#allocation1 + $0x21] ss:$4 sm:$0xff] %v6107_v22  ;;  %2126 = vmatmul.f32.gmra.mxu1 %v5139_v60  ;;  %2307 = vmatpush.msra.mxu2 %v6113_v33  ;;  %v6136_v22 = vld [vmem:[#allocation88_spill] sm:$0xff]  ;;  %v1438_v33 = vpop.f32.mrf.mxu3 }
 0x23c   :  { %1802 = vst [vmem:[#allocation1 + $0x22] ss:$4 sm:$0xff] %v6110_v29  ;;  %2228 = vmatpush.msra.mxu1 %v6112_v53  ;;  %2257 = vmatpush.msra.mxu3 %v6114_v62  ;;  %v6143_v53 = vld [vmem:[#allocation112_spill] sm:$0xff]  ;;  %v6144_v62 = vld [vmem:[#allocation10_spill] sm:$0xff] }
 0x23d   :  { %1804 = vst [vmem:[#allocation1 + $0x23] ss:$4 sm:$0xff] %v4032_v63  ;;  %v6116_v63 = vld [vmem:[#allocation83_spill] sm:$0xff]  ;;  %2280 = vmatpush.msra.mxu0 %v4730_v36  ;;  %v6122_v36 = vld [vmem:[#allocation105_spill] sm:$0xff] }
 0x23e   :  { %v5232_v15 = vld.sshfl [vmem:[#allocation1] sm:$0xff pattern:$0x73625140]  ;;  %2229 = vmatpush.msra.mxu1 %v6116_v63  ;;  %2258 = vmatpush.msra.mxu3 %v6118_v8  ;;  %v1464_v29 = vpop.f32.mrf.mxu0 }
 0x23f   :  { %1825 = vst [vmem:[#allocation1] ss:$4 sm:$0xff] %v3794_v14  ;;  %v6117_v14 = vld [vmem:[#allocation69_spill] sm:$0xff]  ;;  %2281 = vmatpush.msra.mxu0 %v4757_v39 }
 0x240   :  { %1827 = vst [vmem:[#allocation1 + $0x1] ss:$4 sm:$0xff] %v6115_v49  ;;  %2308 = vmatpush.msra.mxu2 %v6117_v14  ;;  %2230 = vmatpush.msra.mxu1 %v6120_v38  ;;  %v6126_v39 = vld [vmem:[#allocation9_spill] sm:$0xff]  ;;  %v1487_v49 = vpop.f32.mrf.mxu2  ;;  %v6150_v14 = vld [vmem:[#allocation100_spill] sm:$0xff]  ;;  %v6152_v38 = vld [vmem:[#allocation14_spill] sm:$0xff] }
 0x241   :  { %1829 = vst [vmem:[#allocation1 + $0x2] ss:$4 sm:$0xff] %v3810_v40  ;;  %2259 = vmatpush.msra.mxu3 %v6122_v36  ;;  %2282 = vmatpush.msra.mxu0 %v4783_v7  ;;  %v6125_v40 = vld [vmem:[#allocation8_spill] sm:$0xff]  ;;  %v1488_v63 = vadd.f32 %v1487_v49, %v5244_v13 }
 0x242   :  { %1831 = vst [vmem:[#allocation1 + $0x3] ss:$4 sm:$0xff] %v6119_v46  ;;  %2309 = vmatpush.msra.mxu2 %v6121_v55  ;;  %2231 = vmatpush.msra.mxu1 %v6123_v58  ;;  %v6128_v7 = vld [vmem:[#allocation80_spill] sm:$0xff]  ;;  %v6151_v46 = vld [vmem:[#allocation102_spill] sm:$0xff] }
 0x243   :  { %2260 = vmatpush.msra.mxu3 %v4750_v44  ;;  %2129 = vmatmul.f32.gmra.mxu1 %v5217_v42  ;;  %v5271_v44 = vadd.f32 %v1461_v45, %v5155_v30  ;;  %v6135_v30 = vld [vmem:[#allocation96_spill] sm:$0xff]  ;;  %v1545_v13 = vpop.f32.mrf.mxu3  ;;  %v6156_v58 = vld [vmem:[#allocation22_spill] sm:$0xff] }
 0x244   :  { %v5257_v11 = vld.sshfl [vmem:[#allocation1 + $0x20] sm:$0xff pattern:$0x73625140]  ;;  %2310 = vmatpush.msra.mxu2 %v6124_v6  ;;  %2232 = vmatpush.msra.mxu1 %v6127_v59  ;;  %v6153_v55 = vld [vmem:[#allocation104_spill] sm:$0xff] }
 0x245   :  { %2152 = vmatmul.f32.gmra.mxu3 %v5257_v11  ;;  %1811 = vst [vmem:[#allocation1 + $0x20] ss:$4 sm:$0xff] %v6125_v40  ;;  %2210 = vmatmul.f32.gmra.mxu2 %v4946_v50  ;;  %v6133_v50 = vrot.slane %v3846_v34, 4  ;;  %v6140_v34 = vld [vmem:[#allocation90_spill] sm:$0xff]  ;;  %v6154_v36 = vld [vmem:[#allocation20_spill] sm:$0xff] }
 0x246   :  { %1812 = vst [vmem:[#allocation1 + $0x21] ss:$4 sm:$0xff] %v6126_v39  ;;  %2311 = vmatpush.msra.mxu2 %v6128_v7  ;;  %2261 = vmatpush.msra.mxu3 %v6129_v32  ;;  %v1467_v8 = vpop.f32.mrf.mxu0 }
 0x247   :  { %1813 = vst [vmem:[#allocation1 + $0x22] ss:$4 sm:$0xff] %v3667_v23  ;;  %2233 = vmatpush.msra.mxu1 %v6131_v4  ;;  %2283 = vmatpush.msra.mxu0 %v4800_v52  ;;  %v6132_v23 = vld [vmem:[#allocation84_spill] sm:$0xff]  ;;  %v6137_v52 = vrot.slane %v3864_v1, 2 }
 0x248   :  { %1814 = vst [vmem:[#allocation1 + $0x23] ss:$4 sm:$0xff] %v6130_v25  ;;  %2312 = vmatpush.msra.mxu2 %v6132_v23  ;;  %2262 = vmatpush.msra.mxu3 %v6134_v31 }
 0x249   :  { %v5274_v37 = vld.sshfl [vmem:[#allocation1] sm:$0xff pattern:$0x73625140]  ;;  %2234 = vmatpush.msra.mxu1 %v6135_v30  ;;  %2284 = vmatpush.msra.mxu0 %v4817_v18  ;;  %v1409_v18 = vpop.f32.mrf.mxu1 }
 0x24a   :  { %2178 = vmatmul.f32.vlgmr.msrb.gmra.mxu0 %v5274_v37  ;;  %1842 = vst [vmem:[#allocation1] ss:$4 sm:$0xff] %v3849_v35  ;;  %2313 = vmatpush.msra.mxu2 %v6136_v22  ;;  %v6139_v35 = vld [vmem:[#allocation99_spill] sm:$0xff] }
 0x24b   :  { %1843 = vst [vmem:[#allocation1 + $0x1] ss:$4 sm:$0xff] %v6133_v50  ;;  %2263 = vmatpush.msra.mxu3 %v6138_v57  ;;  %2235 = vmatpush.msra.mxu1 %v6139_v35 }
 0x24c   :  { %1844 = vst [vmem:[#allocation1 + $0x2] ss:$4 sm:$0xff] %v3864_v1  ;;  %2314 = vmatpush.msra.mxu2 %v6140_v34  ;;  %2285 = vmatpush.msra.mxu0 %v6141_v28  ;;  %v1465_v1 = vadd.f32 %v1464_v29, %v1436_v2 }
 0x24d   :  { %1845 = vst [vmem:[#allocation1 + $0x3] ss:$4 sm:$0xff] %v6137_v52  ;;  %2155 = vmatmul.f32.gmra.mxu3 %v5232_v15  ;;  %2213 = vmatmul.f32.gmra.mxu2 %v4898_v56  ;;  %v1410_v56 = vadd.f32 %v1409_v18, %v5064_v17 }
 0x24e   :  { %2264 = vmatpush.msra.mxu3 %v4829_v41  ;;  %2236 = vmatmul.f32.vlgmr.msra.gmra.mxu1 %v4972_v47  ;;  %v6145_v41 = vld [vmem:[#allocation11_spill] sm:$0xff]  ;;  %v6148_v47 = vrot.slane %v6144_v62, 6 }
 0x24f   :  { %v5296_v54 = vld.sshfl [vmem:[#allocation1 + $0x20] sm:$0xff pattern:$0x73625140]  ;;  %2315 = vmatpush.msra.mxu2 %v6142_v10  ;;  %2286 = vmatpush.msra.mxu0 %v6143_v53  ;;  %v1439_v2 = vadd.f32 %v1438_v33, %v1410_v56 }
 0x250   :  { %1833 = vst [vmem:[#allocation1 + $0x20] ss:$4 sm:$0xff] %v3817_v51  ;;  %v6149_v51 = vld [vmem:[#allocation97_spill] sm:$0xff] }
 0x251   :  { %1835 = vst [vmem:[#allocation1 + $0x21] ss:$4 sm:$0xff] %v6144_v62  ;;  %2316 = vmatpush.msra.mxu2 %v6146_v43  ;;  %2287 = vmatpush.msra.mxu0 %v6147_v61  ;;  %v1468_v17 = vadd.f32 %v1467_v8, %v1439_v2  ;;  %v1516_v40 = vpop.f32.mrf.mxu1 }
 0x252   :  { %1837 = vst [vmem:[#allocation1 + $0x22] ss:$4 sm:$0xff] %v6145_v41  ;;  %v1517_v39 = vadd.f32 %v1516_v40, %v1488_v63 }
 0x253   :  { %1839 = vst [vmem:[#allocation1 + $0x23] ss:$4 sm:$0xff] %v6148_v47  ;;  %2317 = vmatpush.msra.mxu2 %v6149_v51  ;;  %2288 = vmatpush.msra.mxu0 %v4882_v24 }
 0x254   :  { %v1850_v7 = vld.sshfl [vmem:[#allocation1] sm:$0xff pattern:$0x73625140] }
 0x255   :  { %2158 = vmatmul.f32.gmra.mxu3 %v5296_v54  ;;  %2318 = vmatpush.msra.mxu2 %v6150_v14 }
 0x256   :  { %2289 = vmatpush.msra.mxu0 %v4896_v5  ;;  %2216 = vmatmul.f32.gmra.mxu2 %v5005_v27  ;;  %v1380_v5 = vperm.slane %v5047_v19, 1  ;;  %v6155_v27 = vld [vmem:[#allocation106_spill] sm:$0xff]  ;;  %v6159_v19 = vld [vmem:[#allocation15_spill] sm:$0xff] }
 0x257   :  { %2239 = vmatmul.f32.gmra.mxu1 %v5061_v48  ;;  %2319 = vmatpush.msra.mxu2 %v6151_v46  ;;  %v1490_v48 = vpop.f32.mrf.mxu2 }
 0x258   :  { %2290 = vmatpush.msra.mxu0 %v6152_v38  ;;  %v1491_v6 = vadd.f32 %v1490_v48, %v5271_v44  ;;  %v1546_v59 = vadd.f32 %v1545_v13, %v1380_v5 }
 0x259   :  { %2320 = vmatpush.msra.mxu2 %v6153_v55 }
 0x25a   :  { %v1841_v24 = vld.sshfl [vmem:[#allocation1 + $0x20] sm:$0xff pattern:$0x73625140]  ;;  %2291 = vmatpush.msra.mxu0 %v4934_v0  ;;  %v6157_v0 = vrot.slane %v6154_v36, 6 }
 0x25b   :  { %2181 = vmatmul.f32.gmra.mxu0 %v1841_v24  ;;  %1846 = vst [vmem:[#allocation1 + $0x20] ss:$4 sm:$0xff] %v3883_v3  ;;  %2321 = vmatpush.msra.mxu2 %v6155_v27  ;;  %v6158_v3 = vld [vmem:[#allocation107_spill] sm:$0xff] }
 0x25c   :  { %1847 = vst [vmem:[#allocation1 + $0x21] ss:$4 sm:$0xff] %v6154_v36  ;;  %2292 = vmatpush.msra.mxu0 %v4951_v9  ;;  %v1574_v9 = vpop.f32.mrf.mxu0 }
 0x25d   :  { %1848 = vst [vmem:[#allocation1 + $0x22] ss:$4 sm:$0xff] %v6156_v58  ;;  %2265 = vmatmul.f32.vlgmr.msra.gmra.mxu3 %v5082_v21  ;;  %2322 = vmatpush.msra.mxu2 %v6158_v3  ;;  %v1575_v45 = vadd.f32 %v1574_v9, %v1546_v59  ;;  %v1548_v21 = vpop.f32.mrf.mxu3 }
 0x25e   :  { %1849 = vst [vmem:[#allocation1 + $0x23] ss:$4 sm:$0xff] %v6157_v0  ;;  %2293 = vmatpush.msra.mxu0 %v6159_v19  ;;  %2323 = vmatmul.f32.vlgmr.msra.gmra.mxu2 %v5274_v37  ;;  %v1549_v25 = vadd.f32 %v1548_v21, %v1380_v5 }
 0x25f   :  { %2242 = vmatmul.f32.gmra.mxu1 %v5023_v26  ;;  %v1493_v32 = vpop.f32.mrf.mxu2 }
 0x260   :  { %v1494_v44 = vadd.f32 %v1493_v32, %v1465_v1 }
 0x263   :  { %2184 = vmatmul.f32.gmra.mxu0 %v1850_v7 }
 0x264   :  { %v1577_v4 = vpop.f32.mrf.mxu0 }
 0x265   :  { %2268 = vmatmul.f32.gmra.mxu3 %v5173_v20  ;;  %v1851_v23 = vld.sshfl [vmem:[#allocation1 + $0x20] sm:$0xff pattern:$0x73625140]  ;;  %v1578_v31 = vadd.f32 %v1577_v4, %v1549_v25  ;;  %v1551_v37 = vpop.f32.mrf.mxu3 }
 0x266   :  { %2326 = vmatmul.f32.gmra.mxu2 %v1841_v24  ;;  %v1552_v52 = vadd.f32 %v1551_v37, %v1380_v5 }
 0x267   :  { %2245 = vmatmul.f32.gmra.mxu1 %v5118_v12  ;;  %v1496_v30 = vpop.f32.mrf.mxu2 }
 0x268   :  { %v1519_v50 = vpop.f32.mrf.mxu1  ;;  %v1497_v22 = vadd.f32 %v1496_v30, %v1468_v17 }
 0x269   :  { %v1520_v26 = vadd.f32 %v1519_v50, %v1491_v6 }
 0x26b   :  { %2187 = vmatmul.f32.gmra.mxu0 %v1851_v23  ;;  %v1675_v8 = vmax.f32 %v1520_v26, 0.0 }
 0x26c   :  { %v1580_v57 = vpop.f32.mrf.mxu0 }
 0x26d   :  { %2271 = vmatmul.f32.gmra.mxu3 %v5139_v60  ;;  %v1581_v35 = vadd.f32 %v1580_v57, %v1552_v52  ;;  %v1554_v34 = vpop.f32.mrf.mxu3 }
 0x26e   :  { %2329 = vmatmul.f32.gmra.mxu2 %v1850_v7  ;;  %v1555_v60 = vadd.f32 %v1554_v34, %v1380_v5 }
 0x270   :  { %v1522_v20 = vpop.f32.mrf.mxu1 }
 0x271   :  { %v1523_v12 = vadd.f32 %v1522_v20, %v1494_v44 }
 0x272   :  { %v1603_v28 = vpop.f32.mrf.mxu2 }
 0x273   :  { %2294 = vmatmul.f32.vlgmr.msra.gmra.mxu0 %v5191_v16  ;;  %v1604_v29 = vadd.f32 %v1603_v28, %v1575_v45  ;;  %v1677_v58 = vmax.f32 %v1523_v12, 0.0 }
 0x275   :  { %2274 = vmatmul.f32.gmra.mxu3 %v5217_v42  ;;  %v1661_v62 = vpop.f32.mrf.mxu3  ;;  %v1673_v42 = vmax.f32 %v1517_v39, 0.0 }
 0x276   :  { %2332 = vmatmul.f32.gmra.mxu2 %v1851_v23 }
 0x278   :  { %v1525_v1 = vpop.f32.mrf.mxu1 }
 0x279   :  { %v1526_v18 = vadd.f32 %v1525_v1, %v1497_v22 }
 0x27b   :  { %2297 = vmatmul.f32.gmra.mxu0 %v5257_v11  ;;  %v1583_v10 = vpop.f32.mrf.mxu0  ;;  %v1679_v7 = vmax.f32 %v1526_v18, 0.0 }
 0x27c   :  { %v1584_v53 = vadd.f32 %v1583_v10, %v1555_v60 }
 0x27d   :  { %v1606_v33 = vpop.f32.mrf.mxu2  ;;  %v1664_v51 = vpop.f32.mrf.mxu3 }
 0x27e   :  { %v1607_v16 = vadd.f32 %v1606_v33, %v1578_v31  ;;  %v2792_v33 = vld [vmem:[%s5792_s5 + $0xf8] sm:$0xff] }
 0x27f   :  { %2413 = vmatpush.msrb.mxu1 %v2792_v33  ;;  %v2817_v33 = vld [vmem:[%s5792_s5 + $0x1c0] sm:$0xff] }
 0x281   :  { %v1632_v41 = vpop.f32.mrf.mxu1 }
 0x282   :  { %v1633_v43 = vadd.f32 %v1632_v41, %v1604_v29 }
 0x283   :  { %2300 = vmatmul.f32.gmra.mxu0 %v5232_v15  ;;  %v5349_v15 = vld [vmem:[%s5791_s4] sm:$0x3] }
 0x284   :  { %v1662_v61 = vadd.f32 %v1661_v62, %v1633_v43  ;;  %v5354_v13 = vperm.slane %v5349_v15, 0  ;;  %v2808_v62 = vld [vmem:[%s5792_s5 + $0x178] sm:$0xff] }
 0x285   :  { %v1667_v55 = vpop.f32.mrf.mxu3  ;;  %2502 = vmatpush.msrb.mxu0 %v2808_v62  ;;  %v2367_v62 = vld [vmem:[%s5792_s5 + $0x38] sm:$0xff] }
 0x286   :  { %v1674_v56 = vmax.f32 %v1662_v61, 0.0 }
 0x288   :  { %v1609_v47 = vpop.f32.mrf.mxu2  ;;  %v5344_v49 = vmax.f32 %v1673_v42, %v1674_v56  ;;  %v2374_v56 = vld [vmem:[%s5792_s5 + $0x70] sm:$0xff] }
 0x289   :  { %v1610_v11 = vadd.f32 %v1609_v47, %v1581_v35  ;;  %v2791_v47 = vld [vmem:[%s5792_s5 + $0xf0] sm:$0xff] }
 0x28a   :  { %2414 = vmatpush.msrb.mxu1 %v2791_v47 }
 0x28b   :  { %2303 = vmatmul.f32.gmra.mxu0 %v5296_v54  ;;  %v1635_v63 = vpop.f32.mrf.mxu1  ;;  %v2063_v54 = vpop.f32.mrf.mxu0 }
 0x28c   :  { %v1636_v2 = vadd.f32 %v1635_v63, %v1607_v16  ;;  %v2064_v48 = vadd.f32 %v2063_v54, %v5354_v13  ;;  %v2824_v16 = vld [vmem:[%s5792_s5 + $0x1f8] sm:$0xff]  ;;  %v2373_v63 = vld [vmem:[%s5792_s5 + $0x68] sm:$0xff]  ;;  %v2821_v54 = vld [vmem:[%s5792_s5 + $0x1e0] sm:$0xff] }
 0x28d   :  { %v1670_v9 = vpop.f32.mrf.mxu3  ;;  %2556 = vmatpush.msrb.mxu2 %v2824_v16  ;;  %v2816_v16 = vld [vmem:[%s5792_s5 + $0x1b8] sm:$0xff] }
 0x28e   :  { %v1665_v14 = vadd.f32 %v1664_v51, %v1636_v2  ;;  %v2823_v51 = vld [vmem:[%s5792_s5 + $0x1f0] sm:$0xff]  ;;  %v2790_v2 = vld [vmem:[%s5792_s5 + $0xe8] sm:$0xff] }
 0x28f   :  { %2557 = vmatpush.msrb.mxu2 %v2823_v51  ;;  %2415 = vmatpush.msrb.mxu1 %v2790_v2 }
 0x290   :  { %v1676_v17 = vmax.f32 %v1665_v14, 0.0  ;;  %v1612_v46 = vpop.f32.mrf.mxu2  ;;  %v2806_v14 = vld [vmem:[%s5792_s5 + $0x168] sm:$0xff] }
 0x291   :  { %v1613_v24 = vadd.f32 %v1612_v46, %v1584_v53  ;;  %v2375_v53 = vld [vmem:[%s5792_s5 + $0x78] sm:$0xff]  ;;  %v2789_v46 = vld [vmem:[%s5792_s5 + $0xe0] sm:$0xff] }
 0x292   :  { %v5351_v38 = vmax.f32 %v1675_v8, %v1676_v17  ;;  %2449 = vmatpush.msrb.mxu3 %v2375_v53  ;;  %v2822_v8 = vld [vmem:[%s5792_s5 + $0x1e8] sm:$0xff]  ;;  %v2372_v17 = vld [vmem:[%s5792_s5 + $0x60] sm:$0xff]  ;;  %2416 = vmatpush.msrb.mxu1 %v2789_v46 }
 0x293   :  { %v2066_v39 = vpop.f32.mrf.mxu0  ;;  %2558 = vmatpush.msrb.mxu2 %v2822_v8  ;;  %v2801_v53 = vld [vmem:[%s5792_s5 + $0x140] sm:$0xff]  ;;  %v2365_v8 = vld [vmem:[%s5792_s5 + $0x28] sm:$0xff] }
 0x294   :  { %v1638_v5 = vpop.f32.mrf.mxu1  ;;  %v2067_v32 = vadd.f32 %v2066_v39, %v5354_v13  ;;  %2450 = vmatpush.msrb.mxu3 %v2374_v56  ;;  %v2798_v46 = vld [vmem:[%s5792_s5 + $0x128] sm:$0xff] }
 0x295   :  { %v1639_v36 = vadd.f32 %v1638_v5, %v1610_v11  ;;  %v2807_v11 = vld [vmem:[%s5792_s5 + $0x170] sm:$0xff]  ;;  %v2788_v5 = vld [vmem:[%s5792_s5 + $0xd8] sm:$0xff]  ;;  %2559 = vmatpush.msrb.mxu2 %v2821_v54 }
 0x296   :  { %2503 = vmatpush.msrb.mxu0 %v2807_v11  ;;  %2451 = vmatpush.msrb.mxu3 %v2373_v63  ;;  %v2366_v63 = vld [vmem:[%s5792_s5 + $0x30] sm:$0xff] }
 0x297   :  { %v1668_v27 = vadd.f32 %v1667_v55, %v1639_v36  ;;  %v2371_v55 = vld [vmem:[%s5792_s5 + $0x58] sm:$0xff]  ;;  %v5460_v36 = vperm.slane %v5349_v15, 1  ;;  %2417 = vmatpush.msrb.mxu1 %v2788_v5  ;;  %v2370_v15 = vld [vmem:[%s5792_s5 + $0x50] sm:$0xff]  ;;  %v2364_v5 = vld [vmem:[%s5792_s5 + $0x20] sm:$0xff] }
 0x298   :  { %2504 = vmatpush.msrb.mxu0 %v2806_v14  ;;  %2452 = vmatpush.msrb.mxu3 %v2372_v17  ;;  %v2782_v17 = vld [vmem:[%s5792_s5 + $0xa8] sm:$0xff] }
 0x299   :  { %v1678_v6 = vmax.f32 %v1668_v27, 0.0  ;;  %v2804_v27 = vld [vmem:[%s5792_s5 + $0x158] sm:$0xff] }
 0x29a   :  { %v2092_v40 = vpop.f32.mrf.mxu2  ;;  %2453 = vmatpush.msrb.mxu3 %v2371_v55  ;;  %v2814_v55 = vld [vmem:[%s5792_s5 + $0x1a8] sm:$0xff] }
 0x29b   :  { %v5357_v0 = vadd.f32 %v2092_v40, %v2064_v48  ;;  %v5359_v3 = vmax.f32 %v1677_v58, %v1678_v6  ;;  %v2069_v23 = vpop.f32.mrf.mxu0  ;;  %v2820_v48 = vld [vmem:[%s5792_s5 + $0x1d8] sm:$0xff]  ;;  %v2787_v40 = vld [vmem:[%s5792_s5 + $0xd0] sm:$0xff] }
 0x29c   :  { %v2070_v50 = vadd.f32 %v2069_v23, %v5354_v13  ;;  %2560 = vmatpush.msrb.mxu2 %v2820_v48  ;;  %2454 = vmatpush.msrb.mxu3 %v2370_v15  ;;  %v2368_v23 = vld [vmem:[%s5792_s5 + $0x40] sm:$0xff] }
 0x29d   :  { %v1641_v19 = vpop.f32.mrf.mxu1  ;;  %2418 = vmatpush.msrb.mxu1 %v2787_v40 }
 0x29e   :  { %v1642_v59 = vadd.f32 %v1641_v19, %v1613_v24  ;;  %v2805_v24 = vld [vmem:[%s5792_s5 + $0x160] sm:$0xff]  ;;  %v2803_v19 = vld [vmem:[%s5792_s5 + $0x150] sm:$0xff] }
 0x29f   :  { %2505 = vmatpush.msrb.mxu0 %v2805_v24 }
 0x2a0   :  { %v1671_v45 = vadd.f32 %v1670_v9, %v1642_v59  ;;  %v2819_v59 = vld [vmem:[%s5792_s5 + $0x1d0] sm:$0xff] }
 0x2a1   :  { %2506 = vmatpush.msrb.mxu0 %v2804_v27  ;;  %2561 = vmatpush.msrb.mxu2 %v2819_v59  ;;  %v2781_v27 = vld [vmem:[%s5792_s5 + $0xa0] sm:$0xff] }
 0x2a2   :  { %v1680_v21 = vmax.f32 %v1671_v45, 0.0 }
 0x2a3   :  { %v5379_v57 = vpop.f32.mrf.mxu0  ;;  %2507 = vmatpush.msrb.mxu0 %v2803_v19  ;;  %v2813_v19 = vld [vmem:[%s5792_s5 + $0x1a0] sm:$0xff] }
 0x2a4   :  { %v5362_v44 = vmax.f32 %v1679_v7, %v1680_v21  ;;  %v2095_v25 = vpop.f32.mrf.mxu2  ;;  %v2369_v7 = vld [vmem:[%s5792_s5 + $0x48] sm:$0xff] }
 0x2a5   :  { %v5364_v4 = vadd.f32 %v2095_v25, %v2067_v32  ;;  %v2786_v21 = vld [vmem:[%s5792_s5 + $0xc8] sm:$0xff]  ;;  %2455 = vmatpush.msrb.mxu3 %v2369_v7  ;;  %v2780_v7 = vld [vmem:[%s5792_s5 + $0x98] sm:$0xff] }
 0x2a6   :  { %v5369_v37 = vpop.f32.mrf.mxu1  ;;  %v2802_v32 = vld [vmem:[%s5792_s5 + $0x148] sm:$0xff]  ;;  %2419 = vmatpush.msrb.mxu1 %v2786_v21  ;;  %v2796_v21 = vld [vmem:[%s5792_s5 + $0x118] sm:$0xff] }
 0x2a7   :  { %v2818_v25 = vld [vmem:[%s5792_s5 + $0x1c8] sm:$0xff]  ;;  %2508 = vmatpush.msrb.mxu0 %v2802_v32  ;;  %2456 = vmatpush.msrb.mxu3 %v2368_v23  ;;  %v2812_v32 = vld [vmem:[%s5792_s5 + $0x198] sm:$0xff]  ;;  %v2073_v23 = vadd.f32 %v5379_v57, %v5354_v13 }
 0x2a8   :  { %2562 = vmatpush.msrb.mxu2 %v2818_v25  ;;  %v2361_v13 = vld [vmem:[%s5792_s5 + $0x8] sm:$0xff] }
 0x2a9   :  { %2509 = vmatpush.msrb.mxu0 %v2801_v53  ;;  %2457 = vmatpush.msrb.mxu3 %v2367_v62  ;;  %v2778_v57 = vld [vmem:[%s5792_s5 + $0x88] sm:$0xff] }
 0x2aa   :  { %2563 = vmatpush.msrb.mxu2 %v2817_v33 }
 0x2ab   :  { %2458 = vmatpush.msrb.mxu3 %v2366_v63 }
 0x2ac   :  { %2564 = vmatpush.msrb.mxu2 %v2816_v16  ;;  %v2777_v16 = vld [vmem:[%s5792_s5 + $0x80] sm:$0xff] }
 0x2ad   :  { %v2098_v31 = vpop.f32.mrf.mxu2  ;;  %2459 = vmatpush.msrb.mxu3 %v2365_v8 }
 0x2ae   :  { %v5367_v26 = vadd.f32 %v2098_v31, %v2070_v50  ;;  %v5375_v52 = vpop.f32.mrf.mxu1  ;;  %v2785_v50 = vld [vmem:[%s5792_s5 + $0xc0] sm:$0xff]  ;;  %v2122_v31 = vadd.f32 %v5369_v37, %v5357_v0  ;;  %v2784_v0 = vld [vmem:[%s5792_s5 + $0xb8] sm:$0xff] }
 0x2af   :  { %2420 = vmatpush.msrb.mxu1 %v2785_v50  ;;  %v2800_v37 = vld [vmem:[%s5792_s5 + $0x138] sm:$0xff]  ;;  %v2125_v59 = vadd.f32 %v5375_v52, %v5364_v4  ;;  %2460 = vmatpush.msrb.mxu3 %v2364_v5  ;;  %v2362_v52 = vld [vmem:[%s5792_s5 + $0x10] sm:$0xff] }
 0x2b0   :  { %2510 = vmatpush.msrb.mxu0 %v2800_v37 }
 0x2b1   :  { %2421 = vmatpush.msrb.mxu1 %v2784_v0 }
 0x2b5   :  { %v5371_v30 = vpop.f32.mrf.mxu2 }
 0x2b7   :  { %v5373_v22 = vpop.f32.mrf.mxu3 }
 0x2b8   :  { %v5383_v35 = vpop.f32.mrf.mxu1 }
 0x2b9   :  { %v2128_v25 = vadd.f32 %v5383_v35, %v5367_v26  ;;  %v2795_v26 = vld [vmem:[%s5792_s5 + $0x110] sm:$0xff] }
 0x2ba   :  { %v2811_v35 = vld [vmem:[%s5792_s5 + $0x190] sm:$0xff] }
 0x2bd   :  { %v5377_v20 = vpop.f32.mrf.mxu2 }
 0x2be   :  { %v2209_v9 = vadd.f32 %v5377_v20, %v5460_v36 }
 0x2c0   :  { %v5391_v60 = vpop.f32.mrf.mxu1 }
 0x2c7   :  { %v5387_v28 = vpop.f32.mrf.mxu0 }
 0x2c8   :  { %v5381_v12 = vpop.f32.mrf.mxu3  ;;  %v5385_v34 = vpop.f32.mrf.mxu2 }
 0x2c9   :  { %v2212_v24 = vadd.f32 %v5385_v34, %v5460_v36  ;;  %v2797_v34 = vld [vmem:[%s5792_s5 + $0x120] sm:$0xff]  ;;  %v2154_v50 = vadd.f32 %v5381_v12, %v2125_v59  ;;  %v2102_v12 = vadd.f32 %v5371_v30, %v2073_v23 }
 0x2cb   :  { %v2237_v41 = vpop.f32.mrf.mxu1 }
 0x2cc   :  { %v2238_v20 = vadd.f32 %v2237_v41, %v2209_v9  ;;  %v2151_v41 = vadd.f32 %v5373_v22, %v2122_v31  ;;  %v2783_v22 = vld [vmem:[%s5792_s5 + $0xb0] sm:$0xff] }
 0x2cd   :  { %2422 = vmatpush.msrb.mxu1 %v2783_v22 }
 0x2ce   :  { %v2180_v11 = vadd.f32 %v5387_v28, %v2151_v41  ;;  %v2815_v28 = vld [vmem:[%s5792_s5 + $0x1b0] sm:$0xff]  ;;  %v2131_v41 = vadd.f32 %v5391_v60, %v2102_v12  ;;  %v2598_v60 = vld [vmem:[%s5793_s7 + $0x78] sm:$0xff] }
 0x2cf   :  { %2565 = vmatpush.msrb.mxu2 %v2815_v28  ;;  %2423 = vmatpush.msrb.mxu1 %v2782_v17 }
 0x2d0   :  { %v5389_v29 = vpop.f32.mrf.mxu3  ;;  %v5393_v1 = vpop.f32.mrf.mxu2  ;;  %v2336_v48 = vmax.f32 %v2180_v11, 0.0 }
 0x2d1   :  { %2566 = vmatpush.msrb.mxu2 %v2814_v55  ;;  %2424 = vmatpush.msrb.mxu1 %v2781_v27  ;;  %v2157_v53 = vadd.f32 %v5389_v29, %v2128_v25  ;;  %v2810_v29 = vld [vmem:[%s5792_s5 + $0x188] sm:$0xff]  ;;  %v2215_v37 = vadd.f32 %v5393_v1, %v5460_v36  ;;  %v2793_v1 = vld [vmem:[%s5792_s5 + $0x100] sm:$0xff] }
 0x2d3   :  { %2567 = vmatpush.msrb.mxu2 %v2813_v19  ;;  %2425 = vmatpush.msrb.mxu1 %v2780_v7 }
 0x2d4   :  { %v5470_v6 = vpop.f32.mrf.mxu1 }
 0x2d5   :  { %v2241_v9 = vadd.f32 %v5470_v6, %v2212_v24  ;;  %v2779_v6 = vld [vmem:[%s5792_s5 + $0x90] sm:$0xff]  ;;  %2568 = vmatpush.msrb.mxu2 %v2812_v32 }
 0x2d6   :  { %2426 = vmatpush.msrb.mxu1 %v2779_v6 }
 0x2d7   :  { %2569 = vmatpush.msrb.mxu2 %v2811_v35 }
 0x2d8   :  { %v5395_v18 = vpop.f32.mrf.mxu0  ;;  %v5397_v10 = vpop.f32.mrf.mxu3  ;;  %2427 = vmatpush.msrb.mxu1 %v2778_v57 }
 0x2d9   :  { %v5413_v61 = vpop.f32.mrf.mxu2  ;;  %2570 = vmatpush.msrb.mxu2 %v2810_v29  ;;  %v2160_v63 = vadd.f32 %v5397_v10, %v2131_v41  ;;  %v2597_v10 = vld [vmem:[%s5793_s7 + $0x70] sm:$0xff] }
 0x2da   :  { %v2218_v22 = vadd.f32 %v5413_v61, %v5460_v36  ;;  %2428 = vmatpush.msrb.mxu1 %v2777_v16 }
 0x2dc   :  { %v5541_v2 = vpop.f32.mrf.mxu1  ;;  %2603 = vmatpush.msra.mxu1 %v2598_v60 }
 0x2de   :  { %2604 = vmatpush.msra.mxu1 %v2597_v10 }
 0x2e0   :  { %v5411_v43 = vpop.f32.mrf.mxu0  ;;  %v5415_v42 = vpop.f32.mrf.mxu3 }
 0x2e1   :  { %v2324_v39 = vpop.f32.mrf.mxu2  ;;  %v2267_v56 = vadd.f32 %v5415_v42, %v2238_v20  ;;  %v2799_v42 = vld [vmem:[%s5792_s5 + $0x130] sm:$0xff]  ;;  %v5623_v0 = vadd.f32 %v5411_v43, %v2157_v53  ;;  %v2809_v43 = vld [vmem:[%s5792_s5 + $0x180] sm:$0xff] }
 0x2e2   :  { %2511 = vmatpush.msrb.mxu0 %v2799_v42  ;;  %2571 = vmatpush.msrb.mxu2 %v2809_v43 }
 0x2e4   :  { %2512 = vmatpush.msrb.mxu0 %v2798_v46  ;;  %v2246_v11 = vpop.f32.mrf.mxu1 }
 0x2e5   :  { %v2247_v61 = vadd.f32 %v2246_v11, %v2218_v22 }
 0x2e6   :  { %2513 = vmatpush.msrb.mxu0 %v2797_v34 }
 0x2e8   :  { %v5468_v58 = vpop.f32.mrf.mxu0  ;;  %v5486_v45 = vpop.f32.mrf.mxu3  ;;  %2514 = vmatpush.msrb.mxu0 %v2796_v21  ;;  %v2595_v21 = vld [vmem:[%s5793_s7 + $0x60] sm:$0xff] }
 0x2e9   :  { %v2327_v54 = vpop.f32.mrf.mxu2  ;;  %v2270_v31 = vadd.f32 %v5486_v45, %v2241_v9  ;;  %v2183_v45 = vadd.f32 %v5395_v18, %v2154_v50  ;;  %v2360_v18 = vld [vmem:[%s5792_s5] sm:$0xff] }
 0x2ea   :  { %2515 = vmatpush.msrb.mxu0 %v2795_v26 }
 0x2f0   :  { %v2295_v47 = vpop.f32.mrf.mxu0  ;;  %v5563_v15 = vpop.f32.mrf.mxu3 }
 0x2f1   :  { %v2296_v51 = vadd.f32 %v2295_v47, %v2267_v56  ;;  %v2244_v47 = vadd.f32 %v5541_v2, %v2215_v37  ;;  %v2330_v28 = vpop.f32.mrf.mxu2 }
 0x2f3   :  { %v2325_v14 = vadd.f32 %v2324_v39, %v2296_v51  ;;  %v2363_v39 = vld [vmem:[%s5792_s5 + $0x18] sm:$0xff]  ;;  %v2338_v51 = vmax.f32 %v2183_v45, 0.0  ;;  %v2273_v2 = vadd.f32 %v5563_v15, %v2244_v47  ;;  %v2596_v15 = vld [vmem:[%s5793_s7 + $0x68] sm:$0xff]  ;;  %v2593_v45 = vld [vmem:[%s5793_s7 + $0x50] sm:$0xff] }
 0x2f4   :  { %2461 = vmatpush.msrb.mxu3 %v2363_v39  ;;  %2605 = vmatpush.msra.mxu1 %v2596_v15 }
 0x2f5   :  { %v2337_v40 = vmax.f32 %v2325_v14, 0.0  ;;  %v2340_v14 = vmax.f32 %v5623_v0, 0.0 }
 0x2f6   :  { %2462 = vmatpush.msrb.mxu3 %v2362_v52  ;;  %2606 = vmatpush.msra.mxu1 %v2595_v21 }
 0x2f7   :  { %v2344_v4 = vmax.f32 %v2336_v48, %v2337_v40 }
 0x2f8   :  { %v2298_v20 = vpop.f32.mrf.mxu0  ;;  %2463 = vmatpush.msrb.mxu3 %v2361_v13  ;;  %v2275_v8 = vpop.f32.mrf.mxu3 }
 0x2f9   :  { %v5606_v33 = vmax.f32 %v5344_v49, %v2344_v4  ;;  %v2299_v62 = vadd.f32 %v2298_v20, %v2270_v31  ;;  %v2794_v49 = vld [vmem:[%s5792_s5 + $0x108] sm:$0xff]  ;;  %v2276_v34 = vadd.f32 %v2275_v8, %v2247_v61  ;;  %v2594_v31 = vld [vmem:[%s5793_s7 + $0x58] sm:$0xff]  ;;  %v2333_v29 = vpop.f32.mrf.mxu2 }
 0x2fa   :  { %2516 = vmatpush.msrb.mxu0 %v2794_v49  ;;  %2464 = vmatpush.msrb.mxu3 %v2360_v18 }
 0x2fb   :  { %v2356_v30 = vrot.slane %v5606_v33, 4  ;;  %v2328_v56 = vadd.f32 %v2327_v54, %v2299_v62  ;;  %v2393_v24 = vperm.slane %v5606_v33, 1  ;;  %v2433_v55 = vperm.slane %v5606_v33, 0  ;;  %2607 = vmatpush.msra.mxu1 %v2594_v31  ;;  %v2587_v31 = vld [vmem:[%s5793_s7 + $0x20] sm:$0xff] }
 0x2fc   :  { %2517 = vmatpush.msrb.mxu0 %v2793_v1  ;;  %v2486_v40 = vperm.slane %v5606_v33, 2  ;;  %v2540_v39 = vperm.slane %v5606_v33, 3  ;;  %v2189_v62 = vadd.f32 %v5468_v58, %v2160_v63  ;;  %v2592_v58 = vld [vmem:[%s5793_s7 + $0x48] sm:$0xff] }
 0x2fd   :  { %v2339_v42 = vmax.f32 %v2328_v56, 0.0  ;;  %v2394_v17 = vperm.slane %v2356_v30, 1  ;;  %v2434_v46 = vperm.slane %v2356_v30, 0  ;;  %v2487_v27 = vperm.slane %v2356_v30, 2  ;;  %2608 = vmatpush.msra.mxu1 %v2593_v45  ;;  %v2635_v45 = vld [vmem:[%s5796_s9 + $0x58] sm:$0xff] }
 0x2fe   :  { %v2541_v48 = vperm.slane %v2356_v30, 3  ;;  %v2342_v60 = vmax.f32 %v2189_v62, 0.0  ;;  %v2634_v62 = vld [vmem:[%s5796_s9 + $0x50] sm:$0xff] }
 0x2ff   :  { %v2345_v36 = vmax.f32 %v2338_v51, %v2339_v42  ;;  %v2402_v9 = vsel %vm2401_vm9, %v2394_v17, %v2393_v24  ;;  %v2441_v7 = vsel %vm2401_vm9, %v2434_v46, %v2433_v55  ;;  %v2494_v23 = vsel %vm2401_vm9, %v2487_v27, %v2486_v40  ;;  %2609 = vmatpush.msra.mxu1 %v2592_v58  ;;  %v2627_v58 = vld [vmem:[%s5796_s9 + $0x18] sm:$0xff] }
 0x300   :  { %v2301_v54 = vpop.f32.mrf.mxu0  ;;  %v2548_v50 = vsel %vm2401_vm9, %v2541_v48, %v2540_v39 }
 0x301   :  { %v2302_v5 = vadd.f32 %v2301_v54, %v2273_v2  ;;  %v2349_v19 = vmax.f32 %v5351_v38, %v2345_v36 }
 0x303   :  { %v2331_v59 = vadd.f32 %v2330_v28, %v2302_v5  ;;  %v2357_v32 = vrot.slane %v2349_v19, 4  ;;  %v2395_v25 = vperm.slane %v2349_v19, 1  ;;  %v2435_v4 = vperm.slane %v2349_v19, 0 }
 0x304   :  { %v2488_v52 = vperm.slane %v2349_v19, 2  ;;  %v2542_v6 = vperm.slane %v2349_v19, 3 }
 0x305   :  { %v2341_v38 = vmax.f32 %v2331_v59, 0.0  ;;  %v2396_v20 = vperm.slane %v2357_v32, 1  ;;  %v2403_v26 = vsel %vm974_vm3, %v2395_v25, %v2402_v9  ;;  %v2436_v35 = vperm.slane %v2357_v32, 0 }
 0x306   :  { %v2442_v53 = vsel %vm974_vm3, %v2435_v4, %v2441_v7  ;;  %v2489_v13 = vperm.slane %v2357_v32, 2  ;;  %v2495_v57 = vsel %vm974_vm3, %v2488_v52, %v2494_v23  ;;  %v2543_v12 = vperm.slane %v2357_v32, 3  ;;  %v2589_v23 = vld [vmem:[%s5793_s7 + $0x30] sm:$0xff] }
 0x307   :  { %v2346_v33 = vmax.f32 %v2340_v14, %v2341_v38  ;;  %v2405_v0 = vsel %vm2404_vm10, %v2396_v20, %v2403_v26  ;;  %v2443_v37 = vsel %vm2404_vm10, %v2436_v35, %v2442_v53  ;;  %v2549_v30 = vsel %vm974_vm3, %v2542_v6, %v2548_v50  ;;  %v2591_v6 = vld [vmem:[%s5793_s7 + $0x40] sm:$0xff]  ;;  %v2590_v38 = vld [vmem:[%s5793_s7 + $0x38] sm:$0xff]  ;;  %v2588_v50 = vld [vmem:[%s5793_s7 + $0x28] sm:$0xff] }
 0x308   :  { %v2304_v49 = vpop.f32.mrf.mxu0  ;;  %v2496_v41 = vsel %vm2404_vm10, %v2489_v13, %v2495_v57  ;;  %v2550_v56 = vsel %vm2404_vm10, %v2543_v12, %v2549_v30  ;;  %2610 = vmatpush.msra.mxu1 %v2591_v6  ;;  %v2586_v20 = vld [vmem:[%s5793_s7 + $0x18] sm:$0xff]  ;;  %v2585_v26 = vld [vmem:[%s5793_s7 + $0x10] sm:$0xff]  ;;  %v2637_v13 = vld [vmem:[%s5796_s9 + $0x68] sm:$0xff] }
 0x309   :  { %v2350_v18 = vmax.f32 %v5359_v3, %v2346_v33  ;;  %v2305_v16 = vadd.f32 %v2304_v49, %v2276_v34  ;;  %v2639_v35 = vld [vmem:[%s5796_s9 + $0x78] sm:$0xff]  ;;  %v2638_v53 = vld [vmem:[%s5796_s9 + $0x70] sm:$0xff]  ;;  %v2584_v33 = vld [vmem:[%s5793_s7 + $0x8] sm:$0xff] }
 0x30a   :  { %2611 = vmatpush.msra.mxu1 %v2590_v38  ;;  %2644 = vmatpush.msra.mxu3 %v2639_v35  ;;  %v2583_v57 = vld [vmem:[%s5793_s7] sm:$0xff]  ;;  %v2633_v49 = vld [vmem:[%s5796_s9 + $0x48] sm:$0xff] }
 0x30b   :  { %v2358_v1 = vrot.slane %v2350_v18, 4  ;;  %v2334_v43 = vadd.f32 %v2333_v29, %v2305_v16  ;;  %v2397_v47 = vperm.slane %v2350_v18, 1  ;;  %v2437_v11 = vperm.slane %v2350_v18, 0  ;;  %v2636_v12 = vld [vmem:[%s5796_s9 + $0x60] sm:$0xff]  ;;  %v2629_v30 = vld [vmem:[%s5796_s9 + $0x28] sm:$0xff] }
 0x30c   :  { %v2490_v51 = vperm.slane %v2350_v18, 2  ;;  %v2544_v63 = vperm.slane %v2350_v18, 3  ;;  %2612 = vmatpush.msra.mxu1 %v2589_v23  ;;  %2645 = vmatpush.msra.mxu3 %v2638_v53  ;;  %v2632_v29 = vld [vmem:[%s5796_s9 + $0x40] sm:$0xff] }
 0x30d   :  { %v2343_v3 = vmax.f32 %v2334_v43, 0.0  ;;  %v2398_v22 = vperm.slane %v2358_v1, 1  ;;  %v2406_v42 = vsel %vm976_vm5, %v2397_v47, %v2405_v0  ;;  %v2438_v28 = vperm.slane %v2358_v1, 0  ;;  %v2631_v0 = vld [vmem:[%s5796_s9 + $0x38] sm:$0xff]  ;;  %v2628_v18 = vld [vmem:[%s5796_s9 + $0x20] sm:$0xff] }
 0x30e   :  { %v2444_v14 = vsel %vm976_vm5, %v2437_v11, %v2443_v37  ;;  %v2491_v2 = vperm.slane %v2358_v1, 2  ;;  %v2497_v8 = vsel %vm976_vm5, %v2490_v51, %v2496_v41  ;;  %v2545_v17 = vperm.slane %v2358_v1, 3  ;;  %2613 = vmatpush.msra.mxu1 %v2588_v50  ;;  %2646 = vmatpush.msra.mxu3 %v2637_v13  ;;  %v2630_v37 = vld [vmem:[%s5796_s9 + $0x30] sm:$0xff]  ;;  %v2825_v47 = vld [vmem:[%s5794_s6] ss:$0 sm:$0xff] }
 0x30f   :  { %v2347_v46 = vmax.f32 %v2342_v60, %v2343_v3  ;;  %v2408_v10 = vsel %vm2407_vm11, %v2398_v22, %v2406_v42  ;;  %v2445_v24 = vsel %vm2407_vm11, %v2438_v28, %v2444_v14  ;;  %v2551_v61 = vsel %vm976_vm5, %v2544_v63, %v2550_v56  ;;  %v2626_v3 = vld [vmem:[%s5796_s9 + $0x10] sm:$0xff]  ;;  %v2625_v22 = vld [vmem:[%s5796_s9 + $0x8] sm:$0xff]  ;;  %v2624_v42 = vld [vmem:[%s5796_s9] sm:$0xff] }
 0x310   :  { %v2498_v36 = vsel %vm2407_vm11, %v2491_v2, %v2497_v8  ;;  %v2552_v54 = vsel %vm2407_vm11, %v2545_v17, %v2551_v61  ;;  %2614 = vmatpush.msra.mxu1 %v2587_v31  ;;  %2647 = vmatpush.msra.mxu3 %v2636_v12  ;;  %v2826_v28 = vld [vmem:[%s5795_s8] ss:$0 sm:$0xff] }
 0x311   :  { %v2351_v55 = vmax.f32 %v5362_v44, %v2347_v46  ;;  %v2827_v17 = vld [vmem:[%s5797_s10] ss:$0 sm:$0xff] }
 0x312   :  { %2615 = vmatpush.msra.mxu1 %v2586_v20  ;;  %2648 = vmatpush.msra.mxu3 %v2635_v45 }
 0x313   :  { %v2359_v5 = vrot.slane %v2351_v55, 4  ;;  %v2399_v27 = vperm.slane %v2351_v55, 1  ;;  %v2439_v48 = vperm.slane %v2351_v55, 0  ;;  %v2492_v15 = vperm.slane %v2351_v55, 2 }
 0x314   :  { %v2546_v40 = vperm.slane %v2351_v55, 3  ;;  %2616 = vmatpush.msra.mxu1 %v2585_v26  ;;  %2649 = vmatpush.msra.mxu3 %v2634_v62 }
 0x315   :  { %v2400_v34 = vperm.slane %v2359_v5, 1  ;;  %v2409_v19 = vsel %vm978_vm7, %v2399_v27, %v2408_v10  ;;  %v2440_v39 = vperm.slane %v2359_v5, 0  ;;  %v2446_v59 = vsel %vm978_vm7, %v2439_v48, %v2445_v24 }
 0x316   :  { %v2493_v9 = vperm.slane %v2359_v5, 2  ;;  %v2499_v7 = vsel %vm978_vm7, %v2492_v15, %v2498_v36  ;;  %v2547_v21 = vperm.slane %v2359_v5, 3  ;;  %v2553_v32 = vsel %vm978_vm7, %v2546_v40, %v2552_v54  ;;  %2617 = vmatpush.msra.mxu1 %v2584_v33  ;;  %2650 = vmatpush.msra.mxu3 %v2633_v49 }
 0x317   :  { %v2411_v25 = vsel %vm2410_vm12, %v2400_v34, %v2409_v19  ;;  %v2447_v44 = vsel %vm2410_vm12, %v2440_v39, %v2446_v59 }
 0x318   :  { %2429 = vmatmul.f32.vlgmr.msrb.gmra.mxu1 %v2411_v25  ;;  %2465 = vmatmul.f32.vlgmr.msrb.gmra.mxu3 %v2447_v44  ;;  %v2500_v4 = vsel %vm2410_vm12, %v2493_v9, %v2499_v7  ;;  %v2554_v52 = vsel %vm2410_vm12, %v2547_v21, %v2553_v32 }
 0x319   :  { %2518 = vmatmul.f32.vlgmr.msrb.gmra.mxu0 %v2500_v4  ;;  %2572 = vmatmul.f32.vlgmr.msrb.gmra.mxu2 %v2554_v52 }
 0x31a   :  { %2618 = vmatpush.msra.mxu1 %v2583_v57  ;;  %2651 = vmatpush.msra.mxu3 %v2632_v29 }
 0x31c   :  { %2652 = vmatpush.msra.mxu3 %v2631_v0 }
 0x31e   :  { %2653 = vmatpush.msra.mxu3 %v2630_v37 }
 0x320   :  { %2654 = vmatpush.msra.mxu3 %v2629_v30 }
 0x322   :  { %2655 = vmatpush.msra.mxu3 %v2628_v18 }
 0x324   :  { %2656 = vmatpush.msra.mxu3 %v2627_v58 }
 0x326   :  { %2657 = vmatpush.msra.mxu3 %v2626_v3 }
 0x328   :  { %2658 = vmatpush.msra.mxu3 %v2625_v22 }
 0x32a   :  { %2659 = vmatpush.msra.mxu3 %v2624_v42 }
 0x395   :  { %v2430_v16 = vpop.f32.mrf.mxu1 }
 0x396   :  { %v2519_v1 = vpop.f32.mrf.mxu0 }
 0x39b   :  { %v2466_v41 = vpop.f32.mrf.mxu3 }
 0x39c   :  { %v2467_v56 = vadd.f32 %v2466_v41, %v2430_v16  ;;  %v2573_v11 = vpop.f32.mrf.mxu2 }
 0x39e   :  { %v2522_v43 = vadd.f32 %v2519_v1, %v2467_v56 }
 0x3a0   :  { %v2576_v60 = vadd.f32 %v2573_v11, %v2522_v43 }
 0x3a2   :  { %v2581_v51 = vadd.f32 %v2825_v47, %v2576_v60 }
 0x3a4   :  { %v2582_v63 = vmax.f32 %v2581_v51, 0.0 }
 0x3a6   :  { %2619 = vmatmul.f32.vlgmr.msra.gmra.mxu1 %v2582_v63 }
 0x423   :  { %v2620_v14 = vpop.f32.mrf.mxu1 }
 0x424   :  { %v2621_v2 = vadd.f32 %v2826_v28, %v2620_v14 }
 0x426   :  { %v2623_v8 = vmax.f32 %v2621_v2, 0.0 }
 0x428   :  { %2660 = vmatmul.f32.vlgmr.msra.gmra.mxu3 %v2623_v8 }
 0x4ab   :  { %v2661_v46 = vpop.f32.mrf.mxu3 }
 0x4ac   :  { %v2662_v10 = vadd.f32 %v2827_v17, %v2661_v46 }
 0x4ae   :  { %2664 = vst [vmem:[%s5798_s11] sm:$0xff] %v2662_v10 }

</bundles_post_ra>
